<compile_context>
chip_gen: v7x
topology: tpu7x:2x2x1
jax: 0.10.0
libtpu: 0.0.40
codegen_flags: <defaults>
</compile_context>

<pallas_src>
import functools

import jax
import jax.numpy as jnp
from jax.experimental import pallas as pl
from jax.experimental.pallas import tpu as pltpu


DILATIONS = (6, 12, 18)


# -----------------------------------------------------------------------------
# The fused decoder kernel (one grid step == one batch element).
# -----------------------------------------------------------------------------
def _decoder_kernel(*refs, H, W, C, pad_h, pad_w, edge_taps, n_center_cols):
    f32 = jnp.float32
    bf16 = jnp.bfloat16
    HW = H * W
    n_edge = len(edge_taps)

    xp_ref, y_ref = refs[0], refs[1]
    idx = 2
    edge_refs = []
    for _ in range(n_edge):
        edge_refs.append(refs[idx:idx + 3])            # (w, bias, w1_rows)
        idx += 3
    (wbig_ref, bbig_ref, w1big_ref, b1_ref, a_ref,
     w2x_ref, w2y_ref, b2_ref, w3_ref, b3_ref) = refs[idx:idx + 10]
    o_ref = refs[idx + 10]

    def load_tap(oy, ox):
        # Static window of the (bf16) zero-padded input, flattened to (H*W, C).
        t = xp_ref[oy:oy + H, ox:ox + W, :]
        return jnp.reshape(t, (HW, C))

    # Shared center (un-shifted) tap: used by every center-only dilated branch,
    # the 1x1 pointconv branch and the center tap of every edge branch.
    center = load_tap(pad_h, pad_w)

    # ---- fused center-only dilated branches + pointconv -> pconv1 ----------
    # One wide GEMM (HW, C) @ (C, 128*n_center + 128); ReLU6 on the dilated
    # columns only (pointconv = Conv1x1BN has no activation).
    fused = (jnp.dot(center, wbig_ref[...], preferred_element_type=f32)
             + bbig_ref[...])
    if n_center_cols > 0:
        col = jax.lax.broadcasted_iota(jnp.int32, fused.shape, 1)
        fused = jnp.where(col < n_center_cols, jnp.clip(fused, 0.0, 6.0), fused)
    x1 = jnp.dot(fused.astype(bf16), w1big_ref[...], preferred_element_type=f32)

    # ---- edge (multi-tap) dilated ConvBNReLU6 branches -> pconv1 -----------
    for (w_ref, b_ref, w1_ref), taps in zip(edge_refs, edge_taps):
        acc = None
        for ti, (oy, ox) in enumerate(taps):
            tap_v = center if (oy == pad_h and ox == pad_w) else load_tap(oy, ox)
            wk = w_ref[ti * C:(ti + 1) * C, :]
            dd = jnp.dot(tap_v, wk, preferred_element_type=f32)
            acc = dd if acc is None else acc + dd
        branch = jnp.clip(acc + b_ref[...], 0.0, 6.0)          # BN bias + ReLU6
        x1 = x1 + jnp.dot(branch.astype(bf16), w1_ref[...],
                          preferred_element_type=f32)

    x1 = x1 + b1_ref[...]                                      # pconv1 (BN) bias

    # ---- bilinear upsample + pconv2, reassociated: A @ (x1 @ W2x) ----------
    t_up = jnp.dot(x1.astype(bf16), w2x_ref[...], preferred_element_type=f32)
    z = (jnp.dot(a_ref[...], t_up, preferred_element_type=f32)        # f32 A-matmul
         + jnp.dot(y_ref[...], w2y_ref[...], preferred_element_type=f32)
         + b2_ref[...])                                        # pconv2 (no ReLU)

    # ---- pconv3 epilogue (channels zero-padded to 128 lanes, bf16 store) ---
    out = jnp.dot(z.astype(bf16), w3_ref[...], preferred_element_type=f32) + b3_ref[...]
    o_ref[...] = out.astype(o_ref.dtype)


# -----------------------------------------------------------------------------
# Bilinear (align_corners=True) interpolation matrix, combined over H and W.
# -----------------------------------------------------------------------------
def _interp_matrix(n_out, n_in):
    if n_out == 1:
        src = jnp.zeros((1,), jnp.float32)
    else:
        src = jnp.arange(n_out, dtype=jnp.float32) * ((n_in - 1) / (n_out - 1))
    i0 = jnp.clip(jnp.floor(src).astype(jnp.int32), 0, n_in - 1)
    i1 = jnp.clip(i0 + 1, 0, n_in - 1)
    w1 = src - i0.astype(jnp.float32)
    w0 = 1.0 - w1
    return (jax.nn.one_hot(i0, n_in, dtype=jnp.float32) * w0[:, None]
            + jax.nn.one_hot(i1, n_in, dtype=jnp.float32) * w1[:, None])


def _bilinear_matrix(hy, wy, h, w):
    Ah = _interp_matrix(hy, h)                     # (Hy, H)
    Aw = _interp_matrix(wy, w)                     # (Wy, W)
    A = jnp.einsum('ab,cd->acbd', Ah, Aw).reshape(hy * wy, h * w)
    return A.astype(jnp.float32)                   # keep f32 (tiny; tighter numerics)


# -----------------------------------------------------------------------------
# Deterministic parameter init (shapes mirror the PyTorch module), BN folded.
# -----------------------------------------------------------------------------
def _fold_bn(gamma, beta, mean, var, eps=1e-5):
    scale = gamma / jnp.sqrt(var + eps)
    bias = beta - mean * scale
    return scale, bias


def _init_conv_bn(key, cin, cout, ksize):
    kw, kg, kb, km, kv = jax.random.split(key, 5)
    w = jax.random.normal(kw, (cout, cin, ksize, ksize), jnp.float32) * 0.05
    gamma = 1.0 + 0.1 * jax.random.normal(kg, (cout,), jnp.float32)
    beta = 0.1 * jax.random.normal(kb, (cout,), jnp.float32)
    mean = 0.1 * jax.random.normal(km, (cout,), jnp.float32)
    var = 0.5 + jax.random.uniform(kv, (cout,), jnp.float32)
    scale, bias = _fold_bn(gamma, beta, mean, var)
    # (Cout, Cin, kh, kw) -> (kh*kw*Cin, Cout); matches the (ky, kx, c) tap order.
    wm = jnp.transpose(w, (2, 3, 1, 0)).reshape(ksize * ksize * cin, cout)
    wm = (wm * scale[None, :]).astype(jnp.bfloat16)       # fold BN scale into W
    return {'w': wm, 'b': bias.reshape(1, cout).astype(jnp.float32)}


def init_decoder_params(key, num_classes=2):
    keys = jax.random.split(key, 7)
    p = {
        'dw1':    _init_conv_bn(keys[0], 320, 128, 3),
        'dw2':    _init_conv_bn(keys[1], 320, 128, 3),
        'dw3':    _init_conv_bn(keys[2], 320, 128, 3),
        'pc':     _init_conv_bn(keys[3], 320, 128, 1),
        'pconv1': _init_conv_bn(keys[4], 512, 512, 1),
        'pconv2': _init_conv_bn(keys[5], 512 + 32, 128, 1),
        'pconv3': _init_conv_bn(keys[6], 128, num_classes, 1),
    }
    # Split pconv2 so the cat([up, y]) is folded into two GEMMs.
    c_up = p['pconv1']['w'].shape[1]               # 512
    pc2 = p['pconv2']
    p['pconv2'] = {'w_x': pc2['w'][:c_up, :], 'w_y': pc2['w'][c_up:, :],
                   'b': pc2['b']}
    # Zero-pad pconv3 output channels to a full 128-lane tile (lane-dense store).
    pc3 = p['pconv3']
    nc = pc3['w'].shape[1]
    nc_pad = ((nc + 127) // 128) * 128
    p['pconv3'] = {
        'w': jnp.pad(pc3['w'], ((0, 0), (0, nc_pad - nc))),
        'b': jnp.pad(pc3['b'], ((0, 0), (0, nc_pad - nc))),
        'b_orig': pc3['b'],                         # keeps num_classes statically
    }
    return p


# -----------------------------------------------------------------------------
# Decoder forward (matches PyTorch Decoder.forward semantics, inference BN).
# -----------------------------------------------------------------------------
def decoder_forward(params, x_nchw, y_nchw):
    x = jnp.transpose(x_nchw, (0, 2, 3, 1)).astype(jnp.bfloat16)     # (N,H,W,320)
    y = jnp.transpose(y_nchw, (0, 2, 3, 1)).astype(jnp.bfloat16)     # (N,Hy,Wy,32)
    N, H, W, C = x.shape
    _, Hy, Wy, Cy = y.shape

    # Minimal padding: only taps whose shifted window overlaps the valid region
    # are computed (static pruning), so the pad only has to cover those taps.
    pad_h = max([d for d in DILATIONS if d < H] + [0])
    pad_w = max([d for d in DILATIONS if d < W] + [0])
    Hp, Wp = H + 2 * pad_h, W + 2 * pad_w

    xp = jnp.pad(x, ((0, 0), (pad_h, pad_h), (pad_w, pad_w), (0, 0)))   # bf16
    y2 = y.reshape(N, Hy * Wy, Cy)
    A = _bilinear_matrix(Hy, Wy, H, W)                                  # (Hy*Wy, H*W)

    p = params
    w1_full = p['pconv1']['w']                     # (512, 512), rows: b1,b2,b3,pc

    # --- static tap pruning + host-side weight packing -----------------------
    edge_branches = []                             # (tap_offsets, w_sel, bias, w1_rows)
    center_ws, center_bs, center_w1 = [], [], []
    for bi, (name, dil) in enumerate(zip(('dw1', 'dw2', 'dw3'), DILATIONS)):
        taps = [(ky, kx) for ky in range(3) for kx in range(3)
                if abs((ky - 1) * dil) < H and abs((kx - 1) * dil) < W]
        wfull = p[name]['w']                       # (9*C, 128)
        bias = p[name]['b']
        w1_rows = w1_full[bi * 128:(bi + 1) * 128, :]
        if len(taps) == 1:                         # only center tap touches data
            center_ws.append(wfull[4 * C:5 * C, :])
            center_bs.append(bias)
            center_w1.append(w1_rows)
        else:                                      # keep only contributing taps
            w_sel = jnp.concatenate(
                [wfull[(ky * 3 + kx) * C:(ky * 3 + kx + 1) * C, :]
                 for ky, kx in taps], axis=0)
            offs = tuple((pad_h + (ky - 1) * dil, pad_w + (kx - 1) * dil)
                         for ky, kx in taps)
            edge_branches.append((offs, w_sel, bias, w1_rows))

    n_center_cols = 128 * len(center_ws)           # dilated (ReLU6) columns
    # 1x1 pointconv branch (Conv1x1BN, no ReLU) joins the fused center GEMM.
    center_ws.append(p['pc']['w'])
    center_bs.append(p['pc']['b'])
    center_w1.append(w1_full[3 * 128:4 * 128, :])
    w_big = jnp.concatenate(center_ws, axis=1)     # (C, 128*n_center + 128)
    b_big = jnp.concatenate(center_bs, axis=1)
    w1_big = jnp.concatenate(center_w1, axis=0)    # (128*n_center + 128, 512)

    num_classes = p['pconv3']['b_orig'].shape[1]
    nc_pad = p['pconv3']['w'].shape[1]

    weights, edge_taps = [], []
    for offs, w_sel, bias, w1_rows in edge_branches:
        weights += [w_sel, bias, w1_rows]
        edge_taps.append(offs)
    weights += [w_big, b_big, w1_big, p['pconv1']['b'], A,
                p['pconv2']['w_x'], p['pconv2']['w_y'], p['pconv2']['b'],
                p['pconv3']['w'], p['pconv3']['b']]

    kernel = functools.partial(
        _decoder_kernel, H=H, W=W, C=C, pad_h=pad_h, pad_w=pad_w,
        edge_taps=tuple(edge_taps), n_center_cols=n_center_cols)

    out = pl.pallas_call(
        kernel,
        out_shape=jax.ShapeDtypeStruct((N, Hy * Wy, nc_pad), jnp.bfloat16),
        grid=(N,),
        in_specs=[
            pl.BlockSpec((None, Hp, Wp, C), lambda n: (n, 0, 0, 0)),
            pl.BlockSpec((None, Hy * Wy, Cy), lambda n: (n, 0, 0)),
        ] + [pl.BlockSpec(wt.shape, lambda n: (0, 0)) for wt in weights],
        out_specs=pl.BlockSpec((None, Hy * Wy, nc_pad), lambda n: (n, 0, 0)),
        compiler_params=pltpu.CompilerParams(
            dimension_semantics=("parallel",),
            vmem_limit_bytes=16 * 1024 * 1024),
    )(xp, y2, *weights)

    out = out[:, :, :num_classes].astype(jnp.float32)
    out = out.reshape(N, Hy, Wy, num_classes)
    return jnp.transpose(out, (0, 3, 1, 2))                          # back to NCHW


if __name__ == "__main__":
    key = jax.random.PRNGKey(0)
    kx_, ky_, kp_ = jax.random.split(key, 3)

    # x: high-level features (N, 320, 8, 8); y: low-level features (N, 32, 16, 16)
    x = jax.random.normal(kx_, (2, 320, 8, 8), jnp.float32)
    y = jax.random.normal(ky_, (2, 32, 16, 16), jnp.float32)
    params = init_decoder_params(kp_, num_classes=2)

    fwd = jax.jit(decoder_forward)
    out = jax.block_until_ready(fwd(params, x, y))

    assert out.shape == (2, 2, 16, 16), out.shape
    assert bool(jnp.all(jnp.isfinite(out)))
    print("KERNEL_OK")
</pallas_src>

<mosaic_0001>
module attributes {stable_mosaic.version = 11 : i64} {
  func.func @_decoder_kernel(%arg0: i32, %arg1: memref<1x20x20x320xbf16, #tpu.memory_space<vmem>>, %arg2: memref<1x256x32xbf16, #tpu.memory_space<vmem>>, %arg3: memref<2880x128xbf16, #tpu.memory_space<vmem>>, %arg4: memref<1x128xf32, #tpu.memory_space<vmem>>, %arg5: memref<128x512xbf16, #tpu.memory_space<vmem>>, %arg6: memref<320x384xbf16, #tpu.memory_space<vmem>>, %arg7: memref<1x384xf32, #tpu.memory_space<vmem>>, %arg8: memref<384x512xbf16, #tpu.memory_space<vmem>>, %arg9: memref<1x512xf32, #tpu.memory_space<vmem>>, %arg10: memref<256x64xf32, #tpu.memory_space<vmem>>, %arg11: memref<512x128xbf16, #tpu.memory_space<vmem>>, %arg12: memref<32x128xbf16, #tpu.memory_space<vmem>>, %arg13: memref<1x128xf32, #tpu.memory_space<vmem>>, %arg14: memref<128x128xbf16, #tpu.memory_space<vmem>>, %arg15: memref<1x128xf32, #tpu.memory_space<vmem>>, %arg16: memref<1x256x128xbf16, #tpu.memory_space<vmem>>) attributes {dimension_semantics = [#tpu.dimension_semantics<parallel>], iteration_bounds = array<i64: 2>, scalar_prefetch = 0 : i64, scratch_operands = 0 : i64, tpu.core_type = #tpu.core_type<tc>, window_params = [{transform_indices = @transform_0, window_bounds = array<i64: 1, 20, 20, 320>}, {transform_indices = @transform_1, window_bounds = array<i64: 1, 256, 32>}, {pipeline_mode = #tpu.pipeline_mode<synchronous>, transform_indices = @transform_2, window_bounds = array<i64: 2880, 128>}, {pipeline_mode = #tpu.pipeline_mode<synchronous>, transform_indices = @transform_3, window_bounds = array<i64: 1, 128>}, {pipeline_mode = #tpu.pipeline_mode<synchronous>, transform_indices = @transform_4, window_bounds = array<i64: 128, 512>}, {pipeline_mode = #tpu.pipeline_mode<synchronous>, transform_indices = @transform_5, window_bounds = array<i64: 320, 384>}, {pipeline_mode = #tpu.pipeline_mode<synchronous>, transform_indices = @transform_6, window_bounds = array<i64: 1, 384>}, {pipeline_mode = #tpu.pipeline_mode<synchronous>, transform_indices = @transform_7, window_bounds = array<i64: 384, 512>}, {pipeline_mode = #tpu.pipeline_mode<synchronous>, transform_indices = @transform_8, window_bounds = array<i64: 1, 512>}, {pipeline_mode = #tpu.pipeline_mode<synchronous>, transform_indices = @transform_9, window_bounds = array<i64: 256, 64>}, {pipeline_mode = #tpu.pipeline_mode<synchronous>, transform_indices = @transform_10, window_bounds = array<i64: 512, 128>}, {pipeline_mode = #tpu.pipeline_mode<synchronous>, transform_indices = @transform_11, window_bounds = array<i64: 32, 128>}, {pipeline_mode = #tpu.pipeline_mode<synchronous>, transform_indices = @transform_12, window_bounds = array<i64: 1, 128>}, {pipeline_mode = #tpu.pipeline_mode<synchronous>, transform_indices = @transform_13, window_bounds = array<i64: 128, 128>}, {pipeline_mode = #tpu.pipeline_mode<synchronous>, transform_indices = @transform_14, window_bounds = array<i64: 1, 128>}, {transform_indices = @transform_15, window_bounds = array<i64: 1, 256, 128>}]} {
    %c0 = arith.constant 0 : index
    %c6 = arith.constant 6 : index
    %c6_0 = arith.constant 6 : index
    %c0_1 = arith.constant 0 : index
    %0 = vector.load %arg1[%c0, %c6, %c6_0, %c0_1] : memref<1x20x20x320xbf16, #tpu.memory_space<vmem>>, vector<1x8x8x320xbf16>
    %1 = vector.shape_cast %0 : vector<1x8x8x320xbf16> to vector<8x8x320xbf16>
    %2 = vector.shape_cast %1 : vector<8x8x320xbf16> to vector<64x320xbf16>
    %c0_2 = arith.constant 0 : index
    %c0_3 = arith.constant 0 : index
    %3 = vector.load %arg6[%c0_2, %c0_3] : memref<320x384xbf16, #tpu.memory_space<vmem>>, vector<320x384xbf16>
    %cst = arith.constant dense<0.000000e+00> : vector<64x384xf32>
    %4 = tpu.matmul %2, %3, %cst {dimension_numbers = #tpu.dot_dimension_numbers<[1], [0], [0], [1], [0, 0, 1, 1], [], []>} : vector<64x320xbf16>, vector<320x384xbf16>, vector<64x384xf32> -> vector<64x384xf32>
    %c0_4 = arith.constant 0 : index
    %c0_5 = arith.constant 0 : index
    %5 = vector.load %arg7[%c0_4, %c0_5] : memref<1x384xf32, #tpu.memory_space<vmem>>, vector<1x384xf32>
    %6 = vector.broadcast %5 : vector<1x384xf32> to vector<64x384xf32>
    %7 = arith.addf %4, %6 : vector<64x384xf32>
    %8 = tpu.iota {dimensions = array<i32: 1>} : vector<64x384xi32>
    %c256_i32 = arith.constant 256 : i32
    %9 = vector.broadcast %c256_i32 : i32 to vector<64x384xi32>
    %10 = arith.cmpi slt, %8, %9 : vector<64x384xi32>
    %cst_6 = arith.constant 0.000000e+00 : f32
    %cst_7 = arith.constant 6.000000e+00 : f32
    %11 = vector.broadcast %cst_6 : f32 to vector<64x384xf32>
    %12 = arith.maximumf %11, %7 : vector<64x384xf32>
    %13 = vector.broadcast %cst_7 : f32 to vector<64x384xf32>
    %14 = arith.minimumf %13, %12 : vector<64x384xf32>
    %15 = arith.select %10, %14, %7 : vector<64x384xi1>, vector<64x384xf32>
    %16 = arith.truncf %15 : vector<64x384xf32> to vector<64x384xbf16>
    %c0_8 = arith.constant 0 : index
    %c0_9 = arith.constant 0 : index
    %17 = vector.load %arg8[%c0_8, %c0_9] : memref<384x512xbf16, #tpu.memory_space<vmem>>, vector<384x512xbf16>
    %cst_10 = arith.constant dense<0.000000e+00> : vector<64x512xf32>
    %18 = tpu.matmul %16, %17, %cst_10 {dimension_numbers = #tpu.dot_dimension_numbers<[1], [0], [0], [1], [0, 0, 1, 1], [], []>} : vector<64x384xbf16>, vector<384x512xbf16>, vector<64x512xf32> -> vector<64x512xf32>
    %c0_11 = arith.constant 0 : index
    %c0_12 = arith.constant 0 : index
    %c0_13 = arith.constant 0 : index
    %c0_14 = arith.constant 0 : index
    %19 = vector.load %arg1[%c0_11, %c0_12, %c0_13, %c0_14] : memref<1x20x20x320xbf16, #tpu.memory_space<vmem>>, vector<1x8x8x320xbf16>
    %20 = vector.shape_cast %19 : vector<1x8x8x320xbf16> to vector<8x8x320xbf16>
    %21 = vector.shape_cast %20 : vector<8x8x320xbf16> to vector<64x320xbf16>
    %c0_15 = arith.constant 0 : index
    %c0_16 = arith.constant 0 : index
    %22 = vector.load %arg3[%c0_15, %c0_16] : memref<2880x128xbf16, #tpu.memory_space<vmem>>, vector<320x128xbf16>
    %cst_17 = arith.constant dense<0.000000e+00> : vector<64x128xf32>
    %23 = tpu.matmul %21, %22, %cst_17 {dimension_numbers = #tpu.dot_dimension_numbers<[1], [0], [0], [1], [0, 0, 1, 1], [], []>} : vector<64x320xbf16>, vector<320x128xbf16>, vector<64x128xf32> -> vector<64x128xf32>
    %c0_18 = arith.constant 0 : index
    %c0_19 = arith.constant 0 : index
    %c6_20 = arith.constant 6 : index
    %c0_21 = arith.constant 0 : index
    %24 = vector.load %arg1[%c0_18, %c0_19, %c6_20, %c0_21] : memref<1x20x20x320xbf16, #tpu.memory_space<vmem>>, vector<1x8x8x320xbf16>
    %25 = vector.shape_cast %24 : vector<1x8x8x320xbf16> to vector<8x8x320xbf16>
    %26 = vector.shape_cast %25 : vector<8x8x320xbf16> to vector<64x320xbf16>
    %c320 = arith.constant 320 : index
    %c0_22 = arith.constant 0 : index
    %27 = vector.load %arg3[%c320, %c0_22] : memref<2880x128xbf16, #tpu.memory_space<vmem>>, vector<320x128xbf16>
    %cst_23 = arith.constant dense<0.000000e+00> : vector<64x128xf32>
    %28 = tpu.matmul %26, %27, %cst_23 {dimension_numbers = #tpu.dot_dimension_numbers<[1], [0], [0], [1], [0, 0, 1, 1], [], []>} : vector<64x320xbf16>, vector<320x128xbf16>, vector<64x128xf32> -> vector<64x128xf32>
    %29 = arith.addf %23, %28 : vector<64x128xf32>
    %c0_24 = arith.constant 0 : index
    %c0_25 = arith.constant 0 : index
    %c12 = arith.constant 12 : index
    %c0_26 = arith.constant 0 : index
    %30 = vector.load %arg1[%c0_24, %c0_25, %c12, %c0_26] : memref<1x20x20x320xbf16, #tpu.memory_space<vmem>>, vector<1x8x8x320xbf16>
    %31 = vector.shape_cast %30 : vector<1x8x8x320xbf16> to vector<8x8x320xbf16>
    %32 = vector.shape_cast %31 : vector<8x8x320xbf16> to vector<64x320xbf16>
    %c640 = arith.constant 640 : index
    %c0_27 = arith.constant 0 : index
    %33 = vector.load %arg3[%c640, %c0_27] : memref<2880x128xbf16, #tpu.memory_space<vmem>>, vector<320x128xbf16>
    %cst_28 = arith.constant dense<0.000000e+00> : vector<64x128xf32>
    %34 = tpu.matmul %32, %33, %cst_28 {dimension_numbers = #tpu.dot_dimension_numbers<[1], [0], [0], [1], [0, 0, 1, 1], [], []>} : vector<64x320xbf16>, vector<320x128xbf16>, vector<64x128xf32> -> vector<64x128xf32>
    %35 = arith.addf %29, %34 : vector<64x128xf32>
    %c0_29 = arith.constant 0 : index
    %c6_30 = arith.constant 6 : index
    %c0_31 = arith.constant 0 : index
    %c0_32 = arith.constant 0 : index
    %36 = vector.load %arg1[%c0_29, %c6_30, %c0_31, %c0_32] : memref<1x20x20x320xbf16, #tpu.memory_space<vmem>>, vector<1x8x8x320xbf16>
    %37 = vector.shape_cast %36 : vector<1x8x8x320xbf16> to vector<8x8x320xbf16>
    %38 = vector.shape_cast %37 : vector<8x8x320xbf16> to vector<64x320xbf16>
    %c960 = arith.constant 960 : index
    %c0_33 = arith.constant 0 : index
    %39 = vector.load %arg3[%c960, %c0_33] : memref<2880x128xbf16, #tpu.memory_space<vmem>>, vector<320x128xbf16>
    %cst_34 = arith.constant dense<0.000000e+00> : vector<64x128xf32>
    %40 = tpu.matmul %38, %39, %cst_34 {dimension_numbers = #tpu.dot_dimension_numbers<[1], [0], [0], [1], [0, 0, 1, 1], [], []>} : vector<64x320xbf16>, vector<320x128xbf16>, vector<64x128xf32> -> vector<64x128xf32>
    %41 = arith.addf %35, %40 : vector<64x128xf32>
    %c1280 = arith.constant 1280 : index
    %c0_35 = arith.constant 0 : index
    %42 = vector.load %arg3[%c1280, %c0_35] : memref<2880x128xbf16, #tpu.memory_space<vmem>>, vector<320x128xbf16>
    %cst_36 = arith.constant dense<0.000000e+00> : vector<64x128xf32>
    %43 = tpu.matmul %2, %42, %cst_36 {dimension_numbers = #tpu.dot_dimension_numbers<[1], [0], [0], [1], [0, 0, 1, 1], [], []>} : vector<64x320xbf16>, vector<320x128xbf16>, vector<64x128xf32> -> vector<64x128xf32>
    %44 = arith.addf %41, %43 : vector<64x128xf32>
    %c0_37 = arith.constant 0 : index
    %c6_38 = arith.constant 6 : index
    %c12_39 = arith.constant 12 : index
    %c0_40 = arith.constant 0 : index
    %45 = vector.load %arg1[%c0_37, %c6_38, %c12_39, %c0_40] : memref<1x20x20x320xbf16, #tpu.memory_space<vmem>>, vector<1x8x8x320xbf16>
    %46 = vector.shape_cast %45 : vector<1x8x8x320xbf16> to vector<8x8x320xbf16>
    %47 = vector.shape_cast %46 : vector<8x8x320xbf16> to vector<64x320xbf16>
    %c1600 = arith.constant 1600 : index
    %c0_41 = arith.constant 0 : index
    %48 = vector.load %arg3[%c1600, %c0_41] : memref<2880x128xbf16, #tpu.memory_space<vmem>>, vector<320x128xbf16>
    %cst_42 = arith.constant dense<0.000000e+00> : vector<64x128xf32>
    %49 = tpu.matmul %47, %48, %cst_42 {dimension_numbers = #tpu.dot_dimension_numbers<[1], [0], [0], [1], [0, 0, 1, 1], [], []>} : vector<64x320xbf16>, vector<320x128xbf16>, vector<64x128xf32> -> vector<64x128xf32>
    %50 = arith.addf %44, %49 : vector<64x128xf32>
    %c0_43 = arith.constant 0 : index
    %c12_44 = arith.constant 12 : index
    %c0_45 = arith.constant 0 : index
    %c0_46 = arith.constant 0 : index
    %51 = vector.load %arg1[%c0_43, %c12_44, %c0_45, %c0_46] : memref<1x20x20x320xbf16, #tpu.memory_space<vmem>>, vector<1x8x8x320xbf16>
    %52 = vector.shape_cast %51 : vector<1x8x8x320xbf16> to vector<8x8x320xbf16>
    %53 = vector.shape_cast %52 : vector<8x8x320xbf16> to vector<64x320xbf16>
    %c1920 = arith.constant 1920 : index
    %c0_47 = arith.constant 0 : index
    %54 = vector.load %arg3[%c1920, %c0_47] : memref<2880x128xbf16, #tpu.memory_space<vmem>>, vector<320x128xbf16>
    %cst_48 = arith.constant dense<0.000000e+00> : vector<64x128xf32>
    %55 = tpu.matmul %53, %54, %cst_48 {dimension_numbers = #tpu.dot_dimension_numbers<[1], [0], [0], [1], [0, 0, 1, 1], [], []>} : vector<64x320xbf16>, vector<320x128xbf16>, vector<64x128xf32> -> vector<64x128xf32>
    %56 = arith.addf %50, %55 : vector<64x128xf32>
    %c0_49 = arith.constant 0 : index
    %c12_50 = arith.constant 12 : index
    %c6_51 = arith.constant 6 : index
    %c0_52 = arith.constant 0 : index
    %57 = vector.load %arg1[%c0_49, %c12_50, %c6_51, %c0_52] : memref<1x20x20x320xbf16, #tpu.memory_space<vmem>>, vector<1x8x8x320xbf16>
    %58 = vector.shape_cast %57 : vector<1x8x8x320xbf16> to vector<8x8x320xbf16>
    %59 = vector.shape_cast %58 : vector<8x8x320xbf16> to vector<64x320xbf16>
    %c2240 = arith.constant 2240 : index
    %c0_53 = arith.constant 0 : index
    %60 = vector.load %arg3[%c2240, %c0_53] : memref<2880x128xbf16, #tpu.memory_space<vmem>>, vector<320x128xbf16>
    %cst_54 = arith.constant dense<0.000000e+00> : vector<64x128xf32>
    %61 = tpu.matmul %59, %60, %cst_54 {dimension_numbers = #tpu.dot_dimension_numbers<[1], [0], [0], [1], [0, 0, 1, 1], [], []>} : vector<64x320xbf16>, vector<320x128xbf16>, vector<64x128xf32> -> vector<64x128xf32>
    %62 = arith.addf %56, %61 : vector<64x128xf32>
    %c0_55 = arith.constant 0 : index
    %c12_56 = arith.constant 12 : index
    %c12_57 = arith.constant 12 : index
    %c0_58 = arith.constant 0 : index
    %63 = vector.load %arg1[%c0_55, %c12_56, %c12_57, %c0_58] : memref<1x20x20x320xbf16, #tpu.memory_space<vmem>>, vector<1x8x8x320xbf16>
    %64 = vector.shape_cast %63 : vector<1x8x8x320xbf16> to vector<8x8x320xbf16>
    %65 = vector.shape_cast %64 : vector<8x8x320xbf16> to vector<64x320xbf16>
    %c2560 = arith.constant 2560 : index
    %c0_59 = arith.constant 0 : index
    %66 = vector.load %arg3[%c2560, %c0_59] : memref<2880x128xbf16, #tpu.memory_space<vmem>>, vector<320x128xbf16>
    %cst_60 = arith.constant dense<0.000000e+00> : vector<64x128xf32>
    %67 = tpu.matmul %65, %66, %cst_60 {dimension_numbers = #tpu.dot_dimension_numbers<[1], [0], [0], [1], [0, 0, 1, 1], [], []>} : vector<64x320xbf16>, vector<320x128xbf16>, vector<64x128xf32> -> vector<64x128xf32>
    %68 = arith.addf %62, %67 : vector<64x128xf32>
    %c0_61 = arith.constant 0 : index
    %c0_62 = arith.constant 0 : index
    %69 = vector.load %arg4[%c0_61, %c0_62] : memref<1x128xf32, #tpu.memory_space<vmem>>, vector<1x128xf32>
    %70 = vector.broadcast %69 : vector<1x128xf32> to vector<64x128xf32>
    %71 = arith.addf %68, %70 : vector<64x128xf32>
    %cst_63 = arith.constant 0.000000e+00 : f32
    %cst_64 = arith.constant 6.000000e+00 : f32
    %72 = vector.broadcast %cst_63 : f32 to vector<64x128xf32>
    %73 = arith.maximumf %72, %71 : vector<64x128xf32>
    %74 = vector.broadcast %cst_64 : f32 to vector<64x128xf32>
    %75 = arith.minimumf %74, %73 : vector<64x128xf32>
    %76 = arith.truncf %75 : vector<64x128xf32> to vector<64x128xbf16>
    %c0_65 = arith.constant 0 : index
    %c0_66 = arith.constant 0 : index
    %77 = vector.load %arg5[%c0_65, %c0_66] : memref<128x512xbf16, #tpu.memory_space<vmem>>, vector<128x512xbf16>
    %cst_67 = arith.constant dense<0.000000e+00> : vector<64x512xf32>
    %78 = tpu.matmul %76, %77, %cst_67 {dimension_numbers = #tpu.dot_dimension_numbers<[1], [0], [0], [1], [0, 0, 1, 1], [], []>} : vector<64x128xbf16>, vector<128x512xbf16>, vector<64x512xf32> -> vector<64x512xf32>
    %79 = arith.addf %18, %78 : vector<64x512xf32>
    %c0_68 = arith.constant 0 : index
    %c0_69 = arith.constant 0 : index
    %80 = vector.load %arg9[%c0_68, %c0_69] : memref<1x512xf32, #tpu.memory_space<vmem>>, vector<1x512xf32>
    %81 = vector.broadcast %80 : vector<1x512xf32> to vector<64x512xf32>
    %82 = arith.addf %79, %81 : vector<64x512xf32>
    %83 = arith.truncf %82 : vector<64x512xf32> to vector<64x512xbf16>
    %c0_70 = arith.constant 0 : index
    %c0_71 = arith.constant 0 : index
    %84 = vector.load %arg11[%c0_70, %c0_71] : memref<512x128xbf16, #tpu.memory_space<vmem>>, vector<512x128xbf16>
    %cst_72 = arith.constant dense<0.000000e+00> : vector<64x128xf32>
    %85 = tpu.matmul %83, %84, %cst_72 {dimension_numbers = #tpu.dot_dimension_numbers<[1], [0], [0], [1], [0, 0, 1, 1], [], []>} : vector<64x512xbf16>, vector<512x128xbf16>, vector<64x128xf32> -> vector<64x128xf32>
    %c0_73 = arith.constant 0 : index
    %c0_74 = arith.constant 0 : index
    %86 = vector.load %arg10[%c0_73, %c0_74] : memref<256x64xf32, #tpu.memory_space<vmem>>, vector<256x64xf32>
    %cst_75 = arith.constant dense<0.000000e+00> : vector<256x128xf32>
    %87 = tpu.matmul %86, %85, %cst_75 {dimension_numbers = #tpu.dot_dimension_numbers<[1], [0], [0], [1], [0, 0, 1, 1], [], []>} : vector<256x64xf32>, vector<64x128xf32>, vector<256x128xf32> -> vector<256x128xf32>
    %c0_76 = arith.constant 0 : index
    %c0_77 = arith.constant 0 : index
    %c0_78 = arith.constant 0 : index
    %88 = vector.load %arg2[%c0_76, %c0_77, %c0_78] : memref<1x256x32xbf16, #tpu.memory_space<vmem>>, vector<1x256x32xbf16>
    %89 = vector.shape_cast %88 : vector<1x256x32xbf16> to vector<256x32xbf16>
    %c0_79 = arith.constant 0 : index
    %c0_80 = arith.constant 0 : index
    %90 = vector.load %arg12[%c0_79, %c0_80] : memref<32x128xbf16, #tpu.memory_space<vmem>>, vector<32x128xbf16>
    %cst_81 = arith.constant dense<0.000000e+00> : vector<256x128xf32>
    %91 = tpu.matmul %89, %90, %cst_81 {dimension_numbers = #tpu.dot_dimension_numbers<[1], [0], [0], [1], [0, 0, 1, 1], [], []>} : vector<256x32xbf16>, vector<32x128xbf16>, vector<256x128xf32> -> vector<256x128xf32>
    %92 = arith.addf %87, %91 : vector<256x128xf32>
    %c0_82 = arith.constant 0 : index
    %c0_83 = arith.constant 0 : index
    %93 = vector.load %arg13[%c0_82, %c0_83] : memref<1x128xf32, #tpu.memory_space<vmem>>, vector<1x128xf32>
    %94 = vector.broadcast %93 : vector<1x128xf32> to vector<256x128xf32>
    %95 = arith.addf %92, %94 : vector<256x128xf32>
    %96 = arith.truncf %95 : vector<256x128xf32> to vector<256x128xbf16>
    %c0_84 = arith.constant 0 : index
    %c0_85 = arith.constant 0 : index
    %97 = vector.load %arg14[%c0_84, %c0_85] : memref<128x128xbf16, #tpu.memory_space<vmem>>, vector<128x128xbf16>
    %cst_86 = arith.constant dense<0.000000e+00> : vector<256x128xf32>
    %98 = tpu.matmul %96, %97, %cst_86 {dimension_numbers = #tpu.dot_dimension_numbers<[1], [0], [0], [1], [0, 0, 1, 1], [], []>} : vector<256x128xbf16>, vector<128x128xbf16>, vector<256x128xf32> -> vector<256x128xf32>
    %c0_87 = arith.constant 0 : index
    %c0_88 = arith.constant 0 : index
    %99 = vector.load %arg15[%c0_87, %c0_88] : memref<1x128xf32, #tpu.memory_space<vmem>>, vector<1x128xf32>
    %100 = vector.broadcast %99 : vector<1x128xf32> to vector<256x128xf32>
    %101 = arith.addf %98, %100 : vector<256x128xf32>
    %102 = arith.truncf %101 : vector<256x128xf32> to vector<256x128xbf16>
    %c0_89 = arith.constant 0 : index
    %c0_90 = arith.constant 0 : index
    %c0_91 = arith.constant 0 : index
    %103 = vector.load %arg16[%c0_89, %c0_90, %c0_91] : memref<1x256x128xbf16, #tpu.memory_space<vmem>>, vector<1x256x128xbf16>
    %104 = vector.shape_cast %103 : vector<1x256x128xbf16> to vector<256x128xbf16>
    %105 = vector.shape_cast %102 : vector<256x128xbf16> to vector<1x256x128xbf16>
    tpu.vector_store %arg16[%c0_89, %c0_90, %c0_91], %105 {strides = array<i32>} : memref<1x256x128xbf16, #tpu.memory_space<vmem>>, vector<1x256x128xbf16>,
    return
  }
  func.func @transform_0(%arg0: i32) -> (i32, i32, i32, i32) {
    %c0_i32 = arith.constant 0 : i32
    %c0_i32_0 = arith.constant 0 : i32
    %c0_i32_1 = arith.constant 0 : i32
    %c0_i32_2 = arith.constant 0 : i32
    return %arg0, %c0_i32, %c0_i32_0, %c0_i32_1 : i32, i32, i32, i32
  }
  func.func @transform_1(%arg0: i32) -> (i32, i32, i32) {
    %c0_i32 = arith.constant 0 : i32
    %c0_i32_0 = arith.constant 0 : i32
    %c0_i32_1 = arith.constant 0 : i32
    return %arg0, %c0_i32, %c0_i32_0 : i32, i32, i32
  }
  func.func @transform_2(%arg0: i32) -> (i32, i32) {
    %c0_i32 = arith.constant 0 : i32
    %c0_i32_0 = arith.constant 0 : i32
    %c0_i32_1 = arith.constant 0 : i32
    return %c0_i32, %c0_i32_0 : i32, i32
  }
  func.func @transform_3(%arg0: i32) -> (i32, i32) {
    %c0_i32 = arith.constant 0 : i32
    %c0_i32_0 = arith.constant 0 : i32
    %c0_i32_1 = arith.constant 0 : i32
    return %c0_i32, %c0_i32_0 : i32, i32
  }
  func.func @transform_4(%arg0: i32) -> (i32, i32) {
    %c0_i32 = arith.constant 0 : i32
    %c0_i32_0 = arith.constant 0 : i32
    %c0_i32_1 = arith.constant 0 : i32
    return %c0_i32, %c0_i32_0 : i32, i32
  }
  func.func @transform_5(%arg0: i32) -> (i32, i32) {
    %c0_i32 = arith.constant 0 : i32
    %c0_i32_0 = arith.constant 0 : i32
    %c0_i32_1 = arith.constant 0 : i32
    return %c0_i32, %c0_i32_0 : i32, i32
  }
  func.func @transform_6(%arg0: i32) -> (i32, i32) {
    %c0_i32 = arith.constant 0 : i32
    %c0_i32_0 = arith.constant 0 : i32
    %c0_i32_1 = arith.constant 0 : i32
    return %c0_i32, %c0_i32_0 : i32, i32
  }
  func.func @transform_7(%arg0: i32) -> (i32, i32) {
    %c0_i32 = arith.constant 0 : i32
    %c0_i32_0 = arith.constant 0 : i32
    %c0_i32_1 = arith.constant 0 : i32
    return %c0_i32, %c0_i32_0 : i32, i32
  }
  func.func @transform_8(%arg0: i32) -> (i32, i32) {
    %c0_i32 = arith.constant 0 : i32
    %c0_i32_0 = arith.constant 0 : i32
    %c0_i32_1 = arith.constant 0 : i32
    return %c0_i32, %c0_i32_0 : i32, i32
  }
  func.func @transform_9(%arg0: i32) -> (i32, i32) {
    %c0_i32 = arith.constant 0 : i32
    %c0_i32_0 = arith.constant 0 : i32
    %c0_i32_1 = arith.constant 0 : i32
    return %c0_i32, %c0_i32_0 : i32, i32
  }
  func.func @transform_10(%arg0: i32) -> (i32, i32) {
    %c0_i32 = arith.constant 0 : i32
    %c0_i32_0 = arith.constant 0 : i32
    %c0_i32_1 = arith.constant 0 : i32
    return %c0_i32, %c0_i32_0 : i32, i32
  }
  func.func @transform_11(%arg0: i32) -> (i32, i32) {
    %c0_i32 = arith.constant 0 : i32
    %c0_i32_0 = arith.constant 0 : i32
    %c0_i32_1 = arith.constant 0 : i32
    return %c0_i32, %c0_i32_0 : i32, i32
  }
  func.func @transform_12(%arg0: i32) -> (i32, i32) {
    %c0_i32 = arith.constant 0 : i32
    %c0_i32_0 = arith.constant 0 : i32
    %c0_i32_1 = arith.constant 0 : i32
    return %c0_i32, %c0_i32_0 : i32, i32
  }
  func.func @transform_13(%arg0: i32) -> (i32, i32) {
    %c0_i32 = arith.constant 0 : i32
    %c0_i32_0 = arith.constant 0 : i32
    %c0_i32_1 = arith.constant 0 : i32
    return %c0_i32, %c0_i32_0 : i32, i32
  }
  func.func @transform_14(%arg0: i32) -> (i32, i32) {
    %c0_i32 = arith.constant 0 : i32
    %c0_i32_0 = arith.constant 0 : i32
    %c0_i32_1 = arith.constant 0 : i32
    return %c0_i32, %c0_i32_0 : i32, i32
  }
  func.func @transform_15(%arg0: i32) -> (i32, i32, i32) {
    %c0_i32 = arith.constant 0 : i32
    %c0_i32_0 = arith.constant 0 : i32
    %c0_i32_1 = arith.constant 0 : i32
    return %arg0, %c0_i32, %c0_i32_0 : i32, i32, i32
  }
}

</mosaic_0001>

<bundles_post_ra>
// kernel: decoder_forward.1
= control target key start
LH: loop header
LB: loop body
LE: loop exit
PB: predicated region body
PF: predicated region fallthrough
CT: control target
= control target key end

     0   :  { %s11171_s18 = smov 0   ;;  %s13624_s0 = inlined_call_operand.vmem [shape: bf16[2,20,20,320], index: 0, kind: input, shape index: {}]   ;;  %s13625_s1 = inlined_call_operand.vmem [shape: bf16[2,256,32], index: 1, kind: input, shape index: {}]   ;;  %s13626_s2 = inlined_call_operand.vmem [shape: bf16[2880,128], index: 2, kind: input, shape index: {}]   ;;  %s13627_s3 = inlined_call_operand.vmem [shape: f32[1,128], index: 3, kind: input, shape index: {}]   ;;  %s13628_s4 = inlined_call_operand.vmem [shape: bf16[128,512], index: 4, kind: input, shape index: {}]   ;;  %s13629_s5 = inlined_call_operand.vmem [shape: bf16[320,384], index: 5, kind: input, shape index: {}]   ;;  %s13630_s6 = inlined_call_operand.vmem [shape: f32[1,384], index: 6, kind: input, shape index: {}]   ;;  %s13631_s7 = inlined_call_operand.vmem [shape: bf16[384,512], index: 7, kind: input, shape index: {}]   ;;  %s13632_s8 = inlined_call_operand.vmem [shape: f32[1,512], index: 8, kind: input, shape index: {}]   ;;  %s13633_s9 = inlined_call_operand.vmem [shape: f32[256,64], index: 9, kind: input, shape index: {}]   ;;  %s13634_s10 = inlined_call_operand.vmem [shape: bf16[512,128], index: 10, kind: input, shape index: {}]   ;;  %s13635_s11 = inlined_call_operand.vmem [shape: bf16[32,128], index: 11, kind: input, shape index: {}]   ;;  %s13636_s12 = inlined_call_operand.vmem [shape: f32[1,128], index: 12, kind: input, shape index: {}]   ;;  %s13637_s13 = inlined_call_operand.vmem [shape: bf16[128,128], index: 13, kind: input, shape index: {}]   ;;  %s13638_s14 = inlined_call_operand.vmem [shape: f32[1,128], index: 14, kind: input, shape index: {}]   ;;  %s13639_s15 = inlined_call_operand.vmem [shape: bf16[2,256,128], index: 15, kind: output, shape index: {}]  }
   0x1 LB: > { %s8245_s19 = sadd.s32 4294967295, %s11088_s18   ;;  %p8249_p0 = scmp.ge.s32.totalorder %s11088_s18, 1  ;;  %s11088_s18 = sphi %s11171_s18, %s25_s18  }
   0x2   : > { %p447_p1 = scmp.lt.s32.totalorder %s11088_s18, 3 }
   0x4   : > { %p448_p2 = pnand %p8249_p0, %p447_p1 }
   0x5   : > { %v10527_v0 = vld [vmem:[%s13629_s5 + $0x4] ss:$12 sps:$4 sm:$0xff] (!%p448_p2)   ;;  %p500_p3 = scmp.lt.s32.totalorder (!%p448_p2), %s8245_s19, 1  ;;  %v11090_v2 = vmov (!%p448_p2), 0   ;;  %v10531_v3 = vld [vmem:[%s13629_s5] ss:$12 sps:$4 sm:$0xff] (!%p448_p2)  }
   0x6   : > { %451 = sbr.rel (%p448_p2) target bundleno = 1755 (0x6db), region = 80  ;;  %v10529_v1 = vld [vmem:[%s13629_s5 + $0x184] ss:$12 sps:$4 sm:$0xff] (!%p448_p2)   ;;  %1227 = vmatprep.mubr.bf16.mxu1 (!%p448_p2), %v11090_v2  ;;  %1122 = vmatprep.subr.bf16.mxu0 (!%p448_p2), %v10527_v0  ;;  %v10532_v4 = vld [vmem:[%s13629_s5 + $0x180] ss:$12 sps:$4 sm:$0xff] (!%p448_p2)   ;;  %vm581_vm0 = vcmask (!%p448_p2), 1040384  }
   0x7   : > { %1195 = vmatprep.subr.bf16.mxu1 (!%p448_p2), %v10529_v1  ;;  %v10533_v5 = vld [vmem:[%s13629_s5 + $0x1c] ss:$12 sps:$4 sm:$0xff] (!%p448_p2)   ;;  %1123 = vmatpush1.bf16.msra.mxu0 (!%p448_p2), %v10531_v3  ;;  %v10537_v7 = vld [vmem:[%s13629_s5 + $0x18] ss:$12 sps:$4 sm:$0xff] (!%p448_p2)   ;;  %v10539_v9 = vld [vmem:[%s13629_s5 + $0x34] ss:$12 sps:$4 sm:$0xff] (!%p448_p2)  }
   0x8   : > { %1196 = vmatpush1.bf16.msra.mxu1 (!%p448_p2), %v10532_v4  ;;  %v10535_v6 = vld [vmem:[%s13629_s5 + $0x19c] ss:$12 sps:$4 sm:$0xff] (!%p448_p2)   ;;  %1124 = vmatprep.subr.bf16.mxu0 (!%p448_p2), %v10533_v5  ;;  %v10538_v8 = vld [vmem:[%s13629_s5 + $0x198] ss:$12 sps:$4 sm:$0xff] (!%p448_p2)   ;;  %v10541_v10 = vld [vmem:[%s13629_s5 + $0x1b4] ss:$12 sps:$4 sm:$0xff] (!%p448_p2)  }
   0x9   : > { %1197 = vmatprep.subr.bf16.mxu1 (!%p448_p2), %v10535_v6  ;;  %v10543_v11 = vld [vmem:[%s13629_s5 + $0x30] ss:$12 sps:$4 sm:$0xff] (!%p448_p2)   ;;  %v10545_v13 = vld [vmem:[%s13629_s5 + $0x4c] ss:$12 sps:$4 sm:$0xff] (!%p448_p2)   ;;  %v10549_v15 = vld [vmem:[%s13629_s5 + $0x48] ss:$12 sps:$4 sm:$0xff] (!%p448_p2)  }
   0xa   : > { %v10544_v12 = vld [vmem:[%s13629_s5 + $0x1b0] ss:$12 sps:$4 sm:$0xff] (!%p448_p2)   ;;  %v10547_v14 = vld [vmem:[%s13629_s5 + $0x1cc] ss:$12 sps:$4 sm:$0xff] (!%p448_p2)   ;;  %v10550_v16 = vld [vmem:[%s13629_s5 + $0x1c8] ss:$12 sps:$4 sm:$0xff] (!%p448_p2)  }
   0xb   : > { %1125 = vmatpush1.bf16.msra.mxu0 (!%p448_p2), %v10537_v7  ;;  %vm582_vm1 = vcmask (!%p448_p2), 1044484   ;;  %v10551_v17 = vld [vmem:[%s13629_s5 + $0x64] ss:$12 sps:$4 sm:$0xff] (!%p448_p2)   ;;  %v10553_v27 = vld [vmem:[%s13629_s5 + $0xc8] ss:$12 sps:$4 sm:$0xff] (!%p448_p2)   ;;  %vm1109_vm3 = vcmask (!%p448_p2), 523264  }
   0xc   : > { %1198 = vmatpush1.bf16.msra.mxu1 (!%p448_p2), %v10538_v8  ;;  %1126 = vmatprep.subr.bf16.mxu0 (!%p448_p2), %v10539_v9  ;;  %vm11243_vm2 = vmor (!%p448_p2), %vm581_vm0, %vm582_vm1  ;;  %v10554_v28 = vld [vmem:[%s13629_s5 + $0x60] ss:$12 sps:$4 sm:$0xff] (!%p448_p2)   ;;  %v10555_v31 = vld [vmem:[%s13629_s5 + $0x8] ss:$12 sps:$4 sm:$0xff] (!%p448_p2)   ;;  %vm2501_vm4 = vcmask (!%p448_p2), 1041408   ;;  %vm2502_vm5 = vcmask (!%p448_p2), 1045508  }
   0xd   : > { %s13645_s19 = smov (!%p500_p3, %s8245_s19), 1  ;;  %1199 = vmatprep.subr.bf16.mxu1 %v10541_v10  ;;  %v10556_v33 = vld [vmem:[%s13629_s5 + $0x7c] ss:$12 sps:$4 sm:$0xff]   ;;  %v10558_v34 = vld [vmem:[%s13629_s5 + $0xe0] ss:$12 sps:$4 sm:$0xff]   ;;  %vm11663_vm6 = vmor %vm2501_vm4, %vm2502_vm5  ;;  %vm7200_vm7 = vcmask 261120  }
   0xe   : > { %s10517_s21 = smul.u32 720, %s13645_s19  ;;  %v10559_v35 = vld [vmem:[%s13629_s5 + $0x78] ss:$12 sps:$4 sm:$0xff]   ;;  %v10560_v36 = vld [vmem:[%s13629_s5 + $0x20] ss:$12 sps:$4 sm:$0xff]   ;;  %s9174_s27 = sshll.u32 %s13645_s19, 7 }
   0xf   : > { %1127 = vmatpush1.bf16.msra.mxu0 %v10543_v11  ;;  %v10561_v37 = vld [vmem:[%s13629_s5 + $0x94] ss:$12 sps:$4 sm:$0xff]   ;;  %v10563_v47 = vld [vmem:[%s13629_s5 + $0xf8] ss:$12 sps:$4 sm:$0xff]   ;;  %v10564_v48 = vld [vmem:[%s13629_s5 + $0x90] ss:$12 sps:$4 sm:$0xff]   ;;  %s13242_s30 = scalar_lea.vmem %s13625_s1, %s9174_s27  ;;  %s13574_s17 = scalar_lea.vmem %s13639_s15, %s9174_s27 }
  0x10   : > { %s11225_s24 = scalar_lea.vmem %s13624_s0, %s10517_s21  ;;  %1200 = vmatpush1.bf16.msra.mxu1 %v10544_v12  ;;  %1128 = vmatprep.subr.bf16.mxu0 %v10545_v13  ;;  %v10565_v50 = vld [vmem:[%s13629_s5 + $0x38] ss:$12 sps:$4 sm:$0xff]   ;;  %v10568_v53 = vld [vmem:[%s13629_s5 + $0x110] ss:$12 sps:$4 sm:$0xff]   ;;  %v10569_v54 = vld [vmem:[%s13629_s5 + $0xa8] ss:$12 sps:$4 sm:$0xff]  }
  0x11   : > { %v8256_v18 = vld [vmem:[%s11225_s24 + $0xe0] sm:$0x8]  ;;  %v8258_v19 = vld [vmem:[%s11225_s24 + $0xec] sm:$0x7]  ;;  %v8260_v20 = vld [vmem:[%s11225_s24 + $0x104] sm:$0x8]  ;;  %1201 = vmatprep.subr.bf16.mxu1 %v10547_v14 }
  0x12   : > { %v8262_v21 = vld [vmem:[%s11225_s24 + $0x110] sm:$0x7]  ;;  %v8288_v23 = vrot.slane %v8256_v18, 11  ;;  %v590_v24 = vrot.slane %v8258_v19, 7  ;;  %v8290_v25 = vrot.slane %v8260_v20, 11 }
  0x13   : > { %v598_v26 = vrot.slane %v8262_v21, 7  ;;  %1129 = vmatpush1.bf16.msra.mxu0 %v10549_v15  ;;  %v8264_v38 = vld [vmem:[%s11225_s24 + $0x128] sm:$0x8]  ;;  %v8266_v39 = vld [vmem:[%s11225_s24 + $0x134] sm:$0x7] }
  0x14   : > { %v591_v29 = vsel %vm11243_vm2, %v8288_v23, %v590_v24  ;;  %1202 = vmatpush1.bf16.msra.mxu1 %v10550_v16  ;;  %1130 = vmatprep.subr.bf16.mxu0 %v10551_v17  ;;  %v8268_v40 = vld [vmem:[%s11225_s24 + $0x14c] sm:$0x8]  ;;  %v8270_v41 = vld [vmem:[%s11225_s24 + $0x158] sm:$0x7]  ;;  %v8292_v42 = vrot.slane %v8264_v38, 11  ;;  %v606_v43 = vrot.slane %v8266_v39, 7 }
  0x15   : > { %v599_v30 = vsel %vm11243_vm2, %v8290_v25, %v598_v26  ;;  %9303 = vmatprep.subr.bf16.mxu1 %v10553_v27  ;;  %v8294_v44 = vrot.slane %v8268_v40, 11  ;;  %v614_v45 = vrot.slane %v8270_v41, 7  ;;  %v10566_v52 = vld [vmem:[%s13629_s5 + $0xac] ss:$12 sps:$4 sm:$0xff]   ;;  %v10570_v55 = vld [vmem:[%s13629_s5 + $0x50] ss:$12 sps:$4 sm:$0xff]  }
  0x16   : > { %v11260_v32 = vcombine.low %v591_v29, %v599_v30  ;;  %v607_v46 = vsel %vm11243_vm2, %v8292_v42, %v606_v43  ;;  %v10571_v56 = vld [vmem:[%s13629_s5 + $0xc4] ss:$12 sps:$4 sm:$0xff]   ;;  %v8274_v58 = vld [vmem:[%s11225_s24 + $0x17c] sm:$0x7]  ;;  %v8276_v59 = vld [vmem:[%s11225_s24 + $0x194] sm:$0x8] }
  0x17   : > { %1131 = vmatpush1.bf16.msra.mxu0 %v10554_v28  ;;  %v615_v49 = vsel %vm11243_vm2, %v8294_v44, %v614_v45  ;;  %v8272_v57 = vld [vmem:[%s11225_s24 + $0x170] sm:$0x8]  ;;  %v8278_v60 = vld [vmem:[%s11225_s24 + $0x1a0] sm:$0x7]  ;;  %v622_v62 = vrot.slane %v8274_v58, 7  ;;  %v8298_v63 = vrot.slane %v8276_v59, 11 }
  0x18   : > { %8375 = vmatmul.mubr.msk.bf16.vlgmr.msra.gmra.mrb[0].mxu1 %vm1109_vm3, %v11260_v32  ;;  %1132 = vmatprep.subr.bf16.mxu0 %v10556_v33  ;;  %v11297_v51 = vcombine.low %v607_v46, %v615_v49  ;;  %v8296_v61 = vrot.slane %v8272_v57, 11  ;;  %v630_v0 = vrot.slane %v8278_v60, 7  ;;  %v10573_v3 = vld [vmem:[%s13629_s5 + $0x128] ss:$12 sps:$4 sm:$0xff]   ;;  %v10574_v4 = vld [vmem:[%s13629_s5 + $0xc0] ss:$12 sps:$4 sm:$0xff]  }
  0x19   : > { %9304 = vmatpush3.bf16.msra.mxu1 %v10555_v31  ;;  %1237 = vmatprep.mubr.bf16.mxu1 %v11090_v2  ;;  %v10575_v6 = vld [vmem:[%s13629_s5 + $0x68] ss:$12 sps:$4 sm:$0xff]   ;;  %v10578_v9 = vld [vmem:[%s13629_s5 + $0x140] ss:$12 sps:$4 sm:$0xff]   ;;  %v10579_v10 = vld [vmem:[%s13629_s5 + $0xd8] ss:$12 sps:$4 sm:$0xff]  }
  0x1a   : > { %9305 = vmatprep.subr.bf16.mxu1 %v10558_v34  ;;  %v623_v1 = vsel %vm11243_vm2, %v8296_v61, %v622_v62  ;;  %v631_v5 = vsel %vm11243_vm2, %v8298_v63, %v630_v0  ;;  %v10576_v7 = vld [vmem:[%s13629_s5 + $0xdc] ss:$12 sps:$4 sm:$0xff]   ;;  %v10580_v11 = vld [vmem:[%s13629_s5 + $0x80] ss:$12 sps:$4 sm:$0xff]   ;;  %v8280_v13 = vld [vmem:[%s11225_s24 + $0x1b8] sm:$0x8] }
  0x1b   : > { %1133 = vmatpush1.bf16.msra.mxu0 %v10559_v35  ;;  %v11337_v8 = vcombine.low %v623_v1, %v631_v5  ;;  %v10581_v12 = vld [vmem:[%s13629_s5 + $0xf4] ss:$12 sps:$4 sm:$0xff]   ;;  %v8282_v14 = vld [vmem:[%s11225_s24 + $0x1c4] sm:$0x7]  ;;  %v8284_v15 = vld [vmem:[%s11225_s24 + $0x1dc] sm:$0x8] }
  0x1c   : > { %1134 = vmatprep.subr.bf16.mxu0 %v10561_v37  ;;  %v8286_v16 = vld [vmem:[%s11225_s24 + $0x1e8] sm:$0x7]  ;;  %v8300_v17 = vrot.slane %v8280_v13, 11  ;;  %v638_v18 = vrot.slane %v8282_v14, 7  ;;  %v8302_v19 = vrot.slane %v8284_v15, 11 }
  0x1d   : > { %9306 = vmatpush3.bf16.msra.mxu1 %v10560_v36  ;;  %v646_v20 = vrot.slane %v8286_v16, 7  ;;  %v10583_v23 = vld [vmem:[%s13629_s5 + $0x158] ss:$12 sps:$4 sm:$0xff]   ;;  %v10584_v24 = vld [vmem:[%s13629_s5 + $0xf0] ss:$12 sps:$4 sm:$0xff]  }
  0x1e   : > { %9307 = vmatprep.subr.bf16.mxu1 %v10563_v47  ;;  %v639_v21 = vsel %vm11243_vm2, %v8300_v17, %v638_v18  ;;  %v10585_v26 = vld [vmem:[%s13629_s5 + $0x98] ss:$12 sps:$4 sm:$0xff]   ;;  %v10588_v29 = vld [vmem:[%s13629_s5 + $0x170] ss:$12 sps:$4 sm:$0xff]   ;;  %v10589_v30 = vld [vmem:[%s13629_s5 + $0x108] ss:$12 sps:$4 sm:$0xff]  }
  0x1f   : > { %1135 = vmatpush1.bf16.msra.mxu0 %v10564_v48  ;;  %v647_v25 = vsel %vm11243_vm2, %v8302_v19, %v646_v20  ;;  %v10586_v28 = vld [vmem:[%s13629_s5 + $0x10c] ss:$12 sps:$4 sm:$0xff]   ;;  %v10590_v31 = vld [vmem:[%s13629_s5 + $0xb0] ss:$12 sps:$4 sm:$0xff]   ;;  %v8257_v34 = vld [vmem:[%s11225_s24 + $0xe4] sm:$0x77] }
  0x20   : > { %8376 = vmatmul.mubr.msk.bf16.gmra.mrb[4].mxu1 %vm1109_vm3, %v11297_v51  ;;  %1136 = vmatprep.subr.bf16.mxu0 %v10566_v52  ;;  %v11371_v27 = vcombine.low %v639_v21, %v647_v25  ;;  %v8255_v33 = vld [vmem:[%s11225_s24 + $0xd8] sm:$0x88]  ;;  %v8261_v36 = vld [vmem:[%s11225_s24 + $0x108] sm:$0x77]  ;;  %v586_v38 = vrot.slane %v8257_v34, 7 }
  0x21   : > { %9308 = vmatpush3.bf16.msra.mxu1 %v10565_v50  ;;  %1247 = vmatprep.mubr.bf16.mxu1 %v11090_v2  ;;  %v8259_v35 = vld [vmem:[%s11225_s24 + $0xfc] sm:$0x88]  ;;  %v8287_v37 = vrot.slane %v8255_v33, 11  ;;  %v594_v40 = vrot.slane %v8261_v36, 7  ;;  %v10591_v41 = vld [vmem:[%s13629_s5 + $0x124] ss:$12 sps:$4 sm:$0xff]  }
  0x22   : > { %9309 = vmatprep.subr.bf16.mxu1 %v10568_v53  ;;  %v8289_v39 = vrot.slane %v8259_v35, 11  ;;  %v10593_v43 = vld [vmem:[%s13629_s5 + $0x120] ss:$12 sps:$4 sm:$0xff]   ;;  %v10594_v45 = vld [vmem:[%s13629_s5 + $0x13c] ss:$12 sps:$4 sm:$0xff]  }
  0x23   : > { %1137 = vmatpush1.bf16.msra.mxu0 %v10569_v54  ;;  %v587_v42 = vsel %vm11243_vm2, %v8287_v37, %v586_v38  ;;  %v8263_v46 = vld [vmem:[%s11225_s24 + $0x120] sm:$0x88]  ;;  %v8265_v47 = vld [vmem:[%s11225_s24 + $0x12c] sm:$0x77]  ;;  %v8271_v61 = vld [vmem:[%s11225_s24 + $0x168] sm:$0x88] }
  0x24   : > { %1138 = vmatprep.subr.bf16.mxu0 %v10571_v56  ;;  %v595_v44 = vsel %vm11243_vm2, %v8289_v39, %v594_v40  ;;  %v8267_v50 = vld [vmem:[%s11225_s24 + $0x144] sm:$0x88]  ;;  %v8269_v52 = vld [vmem:[%s11225_s24 + $0x150] sm:$0x77]  ;;  %v8291_v53 = vrot.slane %v8263_v46, 11  ;;  %v602_v54 = vrot.slane %v8265_v47, 7 }
  0x25   : > { %9310 = vmatpush3.bf16.msra.mxu1 %v10570_v55  ;;  %v11406_v48 = vcombine.low %v587_v42, %v595_v44  ;;  %v11408_v49 = vcombine.high %v587_v42, %v595_v44  ;;  %v8293_v55 = vrot.slane %v8267_v50, 11  ;;  %v610_v56 = vrot.slane %v8269_v52, 7  ;;  %v10596_v57 = vld [vmem:[%s13629_s5 + $0x138] ss:$12 sps:$4 sm:$0xff]   ;;  %v10597_v60 = vld [vmem:[%s13629_s5 + $0x154] ss:$12 sps:$4 sm:$0xff]  }
  0x26   : > { %9311 = vmatprep.subr.bf16.mxu1 %v10573_v3  ;;  %v603_v58 = vsel %vm11243_vm2, %v8291_v53, %v602_v54  ;;  %v10599_v63 = vld [vmem:[%s13629_s5 + $0x150] ss:$12 sps:$4 sm:$0xff]   ;;  %v8273_v0 = vld [vmem:[%s11225_s24 + $0x174] sm:$0x77]  ;;  %v8295_v5 = vrot.slane %v8271_v61, 11  ;;  %v10611_v35 = vld [vmem:[%s13626_s2 + $0x128] sm:$0xff]  }
  0x27   : > { %1139 = vmatpush1.bf16.msra.mxu0 %v10574_v4  ;;  %v611_v59 = vsel %vm11243_vm2, %v8293_v55, %v610_v56  ;;  %1154 = vmatprep.mubr.bf16.mxu0 %v11408_v49  ;;  %v8275_v1 = vld [vmem:[%s11225_s24 + $0x18c] sm:$0x88]  ;;  %v8277_v3 = vld [vmem:[%s11225_s24 + $0x198] sm:$0x77]  ;;  %v10602_v16 = vld [vmem:[%s13629_s5 + $0x168] ss:$12 sps:$4 sm:$0xff]  }
  0x28   : > { %8377 = vmatmul.mubr.msk.bf16.gmra.mrb[8].mxu1 %vm1109_vm3, %v11337_v8  ;;  %1140 = vmatprep.subr.bf16.mxu0 %v10576_v7  ;;  %v11425_v62 = vcombine.high %v603_v58, %v611_v59  ;;  %v10600_v4 = vld [vmem:[%s13629_s5 + $0x16c] ss:$12 sps:$4 sm:$0xff]   ;;  %v8297_v7 = vrot.slane %v8275_v1, 11  ;;  %v8279_v15 = vld [vmem:[%s11225_s24 + $0x1b0] sm:$0x88]  ;;  %v10607_v36 = vld [vmem:[%s13626_s2 + $0xe0] sm:$0xff]  }
  0x29   : > { %9312 = vmatpush3.bf16.msra.mxu1 %v10575_v6  ;;  %1257 = vmatprep.mubr.bf16.mxu1 %v11090_v2  ;;  %v618_v6 = vrot.slane %v8273_v0, 7  ;;  %v10604_v14 = vld [vmem:[%s13629_s5 + $0x1a0] ss:$12 sps:$4 sm:$0xff]   ;;  %v8283_v19 = vld [vmem:[%s11225_s24 + $0x1d4] sm:$0x88]  ;;  %v8299_v21 = vrot.slane %v8279_v15, 11 }
  0x2a   : > { %9313 = vmatprep.subr.bf16.mxu1 %v10578_v9  ;;  %v626_v9 = vrot.slane %v8277_v3, 7  ;;  %v8281_v18 = vld [vmem:[%s11225_s24 + $0x1bc] sm:$0x77]  ;;  %v10614_v37 = vld [vmem:[%s13626_s2 + $0x130] sm:$0xff]   ;;  %v1642_v40 = vld [vmem:[%s11225_s24 + $0x8] sm:$0x8] }
  0x2b   : > { %1141 = vmatpush1.bf16.msra.mxu0 %v10579_v10  ;;  %v10603_v10 = vld [vmem:[%s13629_s5 + $0x188] ss:$12 sps:$4 sm:$0xff]   ;;  %v8285_v20 = vld [vmem:[%s11225_s24 + $0x1e0] sm:$0x77]  ;;  %v10617_v39 = vld [vmem:[%s13626_s2 + $0x138] sm:$0xff]   ;;  %v8384_v46 = vrot.slane %v1642_v40, 11 }
  0x2c   : > { %1142 = vmatprep.subr.bf16.mxu0 %v10581_v12  ;;  %v619_v12 = vsel %vm11243_vm2, %v8295_v5, %v618_v6  ;;  %v627_v13 = vsel %vm11243_vm2, %v8297_v7, %v626_v9  ;;  %v642_v25 = vrot.slane %v8285_v20, 7  ;;  %v1646_v42 = vld [vmem:[%s11225_s24 + $0x2c] sm:$0x8]  ;;  %v11508_v44 = vld [vmem:[%s13626_s2 + $0x80] sm:$0xff]   ;;  %v1650_v53 = vld [vmem:[%s11225_s24 + $0x50] sm:$0x8] }
  0x2d   : > { %9314 = vmatpush3.bf16.msra.mxu1 %v10580_v11  ;;  %v11441_v11 = vcombine.low %v603_v58, %v611_v59  ;;  %v11454_v17 = vcombine.high %v619_v12, %v627_v13  ;;  %v11474_v33 = vcombine.low %v619_v12, %v627_v13  ;;  %v8386_v50 = vrot.slane %v1646_v42, 11  ;;  %v1652_v54 = vld [vmem:[%s11225_s24 + $0x5c] sm:$0x7]  ;;  %v10610_v55 = vld [vmem:[%s13626_s2 + $0xe8] sm:$0xff]   ;;  %v1656_v58 = vld [vmem:[%s11225_s24 + $0x80] sm:$0x7] }
  0x2e   : > { %9315 = vmatprep.subr.bf16.mxu1 %v10583_v23  ;;  %v634_v23 = vrot.slane %v8281_v18, 7  ;;  %v10612_v56 = vld [vmem:[%s13626_s2 + $0xa8] sm:$0xff]   ;;  %v10613_v59 = vld [vmem:[%s13626_s2 + $0xf0] sm:$0xff]   ;;  %v1727_v0 = vrot.slane %v1652_v54, 7  ;;  %v1658_v1 = vld [vmem:[%s11225_s24 + $0x98] sm:$0x8] }
  0x2f   : > { %1143 = vmatpush1.bf16.msra.mxu0 %v10584_v24  ;;  %v8301_v24 = vrot.slane %v8283_v19, 11  ;;  %v1660_v3 = vld [vmem:[%s11225_s24 + $0xa4] sm:$0x7]  ;;  %v1664_v5 = vld [vmem:[%s11225_s24 + $0xc8] sm:$0x7]  ;;  %v1735_v7 = vrot.slane %v1656_v58, 7 }
  0x30   : > { %8378 = vmatmul.mubr.msk.bf16.gmra.mrb[12].mxu1 %vm1109_vm3, %v11371_v27  ;;  %1144 = vmatprep.subr.bf16.mxu0 %v10586_v28  ;;  %v635_v28 = vsel %vm11243_vm2, %v8299_v21, %v634_v23  ;;  %v10616_v12 = vld [vmem:[%s13626_s2 + $0xf8] sm:$0xff]   ;;  %v8392_v13 = vrot.slane %v1658_v1, 11  ;;  %v1666_v18 = vld [vmem:[%s11225_s24 + $0xe0] sm:$0x8]  ;;  %v1668_v19 = vld [vmem:[%s11225_s24 + $0xec] sm:$0x7] }
  0x31   : > { %9316 = vmatpush3.bf16.msra.mxu1 %v10585_v26  ;;  %1300 = vmatprep.mubr.bf16.mxu1 %v11408_v49  ;;  %v10605_v26 = vld [vmem:[%s13629_s5 + $0x1b8] ss:$12 sps:$4 sm:$0xff]   ;;  %v1647_v40 = vld [vmem:[%s11225_s24 + $0x30] sm:$0x77]  ;;  %v10624_v58 = vld [vmem:[%s13626_s2 + $0xc8] sm:$0xff]  }
  0x32   : > { %9317 = vmatprep.subr.bf16.mxu1 %v10588_v29  ;;  %v643_v29 = vsel %vm11243_vm2, %v8301_v24, %v642_v25  ;;  %v1670_v23 = vld [vmem:[%s11225_s24 + $0x104] sm:$0x8]  ;;  %v10618_v24 = vld [vmem:[%s13626_s2 + $0xb8] sm:$0xff]   ;;  %v1672_v25 = vld [vmem:[%s11225_s24 + $0x110] sm:$0x7] }
  0x33   : > { %1145 = vmatpush1.bf16.msra.mxu0 %v10589_v30  ;;  %v10608_v30 = vld [vmem:[%s13626_s2 + $0x120] sm:$0xff]   ;;  %v11476_v34 = vcombine.high %v635_v28, %v643_v29  ;;  %v11491_v38 = vcombine.low %v635_v28, %v643_v29  ;;  %v1649_v1 = vld [vmem:[%s11225_s24 + $0x48] sm:$0x88] }
  0x34   : > { %1146 = vmatprep.subr.bf16.mxu0 %v10591_v41  ;;  %v1644_v41 = vld [vmem:[%s11225_s24 + $0x14] sm:$0x7] }
  0x35   : > { %9318 = vmatpush3.bf16.msra.mxu1 %v10590_v31  ;;  %v10606_v31 = vld [vmem:[%s13629_s5 + $0x1d0] ss:$12 sps:$4 sm:$0xff]   ;;  %v1711_v47 = vrot.slane %v1644_v41, 7 }
  0x36   : > { %9945 = vmatprep.subr.bf16.mxu1 %v10603_v10 }
  0x37   : > { %1147 = vmatpush1.bf16.msra.mxu0 %v10593_v43  ;;  %v1648_v43 = vld [vmem:[%s11225_s24 + $0x38] sm:$0x7] }
  0x38   : > { %1301 = vmatmul.mubr.bf16.vlgmr.msra.gmra.mrb[16].mxu1 %v11406_v48  ;;  %1148 = vmatprep.subr.bf16.mxu0 %v10594_v45  ;;  %v10609_v45 = vld [vmem:[%s13626_s2 + $0xa0] sm:$0xff]   ;;  %v1719_v52 = vrot.slane %v1648_v43, 7 }
  0x39   : > { %1308 = vmatprep.mubr.bf16.mxu1 %v11425_v62  ;;  %9946 = vmatpush3.bf16.msra.mxu1 %v10603_v10  ;;  %v10615_v10 = vld [vmem:[%s13626_s2 + $0xb0] sm:$0xff]  }
  0x3a   : > { %9947 = vmatprep.subr.bf16.mxu1 %v10604_v14  ;;  %v1720_v61 = vsel %vm11243_vm2, %v8386_v50, %v1719_v52  ;;  %v1767_v50 = vrot.slane %v1672_v25, 7  ;;  %v10623_v52 = vld [vmem:[%s13626_s2 + $0x88] sm:$0xff]  }
  0x3b   : > { %1149 = vmatpush1.bf16.msra.mxu0 %v10596_v57  ;;  %v1654_v57 = vld [vmem:[%s11225_s24 + $0x74] sm:$0x8] }
  0x3c   : > { %1150 = vmatprep.subr.bf16.mxu0 %v10597_v60  ;;  %v1712_v60 = vsel %vm11243_vm2, %v8384_v46, %v1711_v47  ;;  %v8390_v6 = vrot.slane %v1654_v57, 11  ;;  %v8398_v47 = vrot.slane %v1670_v23, 11  ;;  %v10622_v57 = vld [vmem:[%s13626_s2 + $0x108] sm:$0xff]   ;;  %v10634_v23 = vld [vmem:[%s13626_s2] sm:$0xff]  }
  0x3d   : > { %9948 = vmatpush3.bf16.msra.mxu1 %v10604_v14  ;;  %v8401_v9 = vcombine.low %v1712_v60, %v1720_v61  ;;  %v1743_v14 = vrot.slane %v1660_v3, 7  ;;  %v10625_v61 = vld [vmem:[%s13626_s2 + $0x110] sm:$0xff]  }
  0x3e   : > { %9949 = vmatprep.subr.bf16.mxu1 %v10605_v26  ;;  %v1736_v21 = vsel %vm11243_vm2, %v8390_v6, %v1735_v7  ;;  %v1768_v60 = vsel %vm11243_vm2, %v8398_v47, %v1767_v50  ;;  %v10627_v3 = vld [vmem:[%s13626_s2 + $0xd0] sm:$0xff]   ;;  %v1655_v6 = vld [vmem:[%s11225_s24 + $0x78] sm:$0x77]  ;;  %v10643_v47 = vld [vmem:[%s11225_s24 + $0xe0] ss:$36 sps:$4 sm:$0xff]  }
  0x3f   : > { %1151 = vmatpush1.bf16.msra.mxu0 %v10599_v63  ;;  %v8388_v63 = vrot.slane %v1650_v53, 11  ;;  %v1744_v28 = vsel %vm11243_vm2, %v8392_v13, %v1743_v14  ;;  %v10628_v7 = vld [vmem:[%s13626_s2 + $0x118] sm:$0xff]   ;;  %v1731_v14 = vrot.slane %v1655_v6, 7  ;;  %v2440_v50 = vld [vmem:[%s11225_s24 + $0x20] sm:$0x3] }
  0x40   : > { %1309 = vmatmul.mubr.bf16.gmra.mrb[20].mxu1 %v11441_v11  ;;  %1152 = vmatprep.subr.bf16.mxu0 %v10600_v4  ;;  %v1662_v4 = vld [vmem:[%s11225_s24 + $0xbc] sm:$0x8]  ;;  %v2452_v6 = vld [vmem:[%s11225_s24 + $0x8c] sm:$0x3] }
  0x41   : > { %1316 = vmatprep.mubr.bf16.mxu1 %v11454_v17  ;;  %9950 = vmatpush3.bf16.msra.mxu1 %v10605_v26  ;;  %v8394_v15 = vrot.slane %v1662_v4, 11  ;;  %v1728_v20 = vsel %vm11243_vm2, %v8388_v63, %v1727_v0  ;;  %v10619_v26 = vld [vmem:[%s13626_s2 + $0x100] sm:$0xff]   ;;  %v10632_v0 = vld [vmem:[%s11225_s24 + $0x8] ss:$36 sps:$4 sm:$0xff]   ;;  %v1651_v4 = vld [vmem:[%s11225_s24 + $0x54] sm:$0x77] }
  0x42   : > { %9951 = vmatprep.subr.bf16.mxu1 %v10606_v31 }
  0x43   : > { %1153 = vmatpush1.bf16.msra.mxu0 %v10602_v16  ;;  %v1751_v16 = vrot.slane %v1664_v5, 7  ;;  %v1653_v5 = vld [vmem:[%s11225_s24 + $0x6c] sm:$0x88] }
  0x44   : > { %9961 = vmatprep.subr.bf16.mxu0 %v10608_v30  ;;  %v8389_v13 = vrot.slane %v1653_v5, 11  ;;  %v2450_v5 = vld [vmem:[%s11225_s24 + $0x80] sm:$0xc] }
  0x45   : > { %9952 = vmatpush3.bf16.msra.mxu1 %v10606_v31  ;;  %v1752_v29 = vsel %vm11243_vm2, %v8394_v15, %v1751_v16  ;;  %v1759_v31 = vrot.slane %v1668_v19, 7  ;;  %v10630_v15 = vld [vmem:[%s13626_s2 + $0xd8] sm:$0xff]   ;;  %v10633_v16 = vld [vmem:[%s13626_s2 + $0x1c0] sm:$0xff]   ;;  %v10635_v19 = vld [vmem:[%s11225_s24 + $0x50] ss:$36 sps:$4 sm:$0xff]  }
  0x46   : > { %1155 = vmatmul.mubr.bf16.vlgmr.msra.gmra.mrb[0].mxu0 %v11406_v48  ;;  %9351 = vmatprep.subr.bf16.mxu1 %v10607_v36  ;;  %v8404_v36 = vcombine.low %v1728_v20, %v1736_v21  ;;  %v8407_v46 = vcombine.low %v1744_v28, %v1752_v29  ;;  %v11640_v21 = vsel %vm11243_vm2, %v8389_v13, %v1731_v14  ;;  %v10637_v28 = vld [vmem:[%s13626_s2 + $0x1c8] sm:$0xff]   ;;  %v1657_v29 = vld [vmem:[%s11225_s24 + $0x90] sm:$0x88]  ;;  %v8478_v13 = vrot.slane %v2450_v5, 10 }
  0x47   : > { %1164 = vmatprep.mubr.bf16.mxu0 %v11425_v62  ;;  %9962 = vmatpush3.bf16.msra.mxu0 %v10608_v30  ;;  %v8396_v30 = vrot.slane %v1666_v18, 11  ;;  %v10631_v18 = vld [vmem:[%s13626_s2 + $0x40] sm:$0xff]   ;;  %v2534_v14 = vrot.slane %v2452_v6, 6  ;;  %v10671_v5 = vld [vmem:[%s13626_s2 + $0x248] sm:$0xff]  }
  0x48   : > { %1317 = vmatmul.mubr.bf16.gmra.mrb[24].mxu1 %v11474_v33  ;;  %9963 = vmatprep.subr.bf16.mxu0 %v10611_v35  ;;  %v10673_v6 = vld [vmem:[%s13626_s2 + $0x208] sm:$0xff]  }
  0x49   : > { %1324 = vmatprep.mubr.bf16.mxu1 %v11476_v34 }
  0x4b   : > { %9964 = vmatpush3.bf16.msra.mxu0 %v10611_v35  ;;  %v1641_v35 = vld [vmem:[%s11225_s24] sm:$0x88] }
  0x4c   : > { %9965 = vmatprep.subr.bf16.mxu0 %v10614_v37  ;;  %v8383_v41 = vrot.slane %v1641_v35, 11  ;;  %v1661_v35 = vld [vmem:[%s11225_s24 + $0xb4] sm:$0x88] }
  0x4e   : > { %1165 = vmatmul.mubr.bf16.gmra.mrb[4].mxu0 %v11441_v11 }
  0x4f   : > { %1174 = vmatprep.mubr.bf16.mxu0 %v11454_v17  ;;  %9966 = vmatpush3.bf16.msra.mxu0 %v10614_v37  ;;  %v1643_v37 = vld [vmem:[%s11225_s24 + $0xc] sm:$0x77] }
  0x50   : > { %1325 = vmatmul.mubr.bf16.gmra.mrb[28].mxu1 %v11491_v38  ;;  %9967 = vmatprep.subr.bf16.mxu0 %v10617_v39  ;;  %v1707_v42 = vrot.slane %v1643_v37, 7  ;;  %v8391_v37 = vrot.slane %v1657_v29, 11  ;;  %v1669_v29 = vld [vmem:[%s11225_s24 + $0xfc] sm:$0x88] }
  0x51   : > { %9953 = vmatprep.mubr.msk.bf16.mxu1 %vm1109_vm3, %v11260_v32 }
  0x52   : > { %v11578_v53 = vsel %vm11243_vm2, %v8383_v41, %v1707_v42 }
  0x53   : > { %9968 = vmatpush3.bf16.msra.mxu0 %v10617_v39  ;;  %v1645_v39 = vld [vmem:[%s11225_s24 + $0x24] sm:$0x88] }
  0x54   : > { %9977 = vmatprep.subr.bf16.mxu0 %v11508_v44  ;;  %v8385_v43 = vrot.slane %v1645_v39, 11 }
  0x56   : > { %1175 = vmatmul.mubr.bf16.gmra.mrb[8].mxu0 %v11474_v33 }
  0x57   : > { %1184 = vmatprep.mubr.bf16.mxu0 %v11476_v34 }
  0x58   : > { %9954 = vmatmul.mubr.msk.bf16.vlgmr.msra.gmra.mrb[32].mxu1 %vm1109_vm3, %v11297_v51 }
  0x59   : > { %9352 = vmatpush3.bf16.msra.mxu1 %v10609_v45  ;;  %9957 = vmatprep.mubr.msk.bf16.mxu1 %vm1109_vm3, %v11337_v8  ;;  %v1715_v45 = vrot.slane %v1647_v40, 7  ;;  %v8393_v40 = vrot.slane %v1661_v35, 11 }
  0x5a   : > { %9353 = vmatprep.subr.bf16.mxu1 %v10610_v55  ;;  %v10621_v55 = vld [vmem:[%s13626_s2 + $0xc0] sm:$0xff]  }
  0x5b   : > { %v11582_v54 = vsel %vm11243_vm2, %v8385_v43, %v1715_v45  ;;  %v10638_v43 = vld [vmem:[%s13626_s2 + $0x8] sm:$0xff]   ;;  %v10641_v45 = vld [vmem:[%s13626_s2 + $0x1d0] sm:$0xff]  }
  0x5c   : > { %v8399_v25 = vcombine.low %v11578_v53, %v11582_v54 }
  0x5d   : > { %9354 = vmatpush3.bf16.msra.mxu1 %v10612_v56  ;;  %v8400_v56 = vcombine.high %v11578_v53, %v11582_v54  ;;  %v2444_v53 = vld [vmem:[%s11225_s24 + $0x44] sm:$0x3] }
  0x5e   : > { %9355 = vmatprep.subr.bf16.mxu1 %v10613_v59  ;;  %1185 = vmatmul.mubr.bf16.gmra.mrb[12].mxu0 %v11491_v38  ;;  %v1760_v59 = vsel %vm11243_vm2, %v8396_v30, %v1759_v31  ;;  %v1659_v31 = vld [vmem:[%s11225_s24 + $0x9c] sm:$0x77] }
  0x5f   : > { %9969 = vmatprep.mubr.msk.bf16.mxu0 %vm1109_vm3, %v8401_v9  ;;  %v8410_v63 = vcombine.low %v1760_v59, %v1768_v60  ;;  %v10629_v9 = vld [vmem:[%s13626_s2 + $0x98] sm:$0xff]   ;;  %v1739_v39 = vrot.slane %v1659_v31, 7 }
  0x60   : > { %9958 = vmatmul.mubr.msk.bf16.gmra.mrb[36].mxu1 %vm1109_vm3, %v11371_v27 }
  0x61   : > { %9356 = vmatpush3.bf16.msra.mxu1 %v10615_v10  ;;  %2017 = vmatprep.mubr.bf16.mxu1 %v8400_v56  ;;  %v8387_v10 = vrot.slane %v1649_v1, 11  ;;  %v10639_v56 = vld [vmem:[%s13626_s2 + $0x50] sm:$0xff]   ;;  %v2448_v1 = vld [vmem:[%s11225_s24 + $0x68] sm:$0x3] }
  0x62   : > { %9357 = vmatprep.subr.bf16.mxu1 %v10616_v12  ;;  %v1723_v12 = vrot.slane %v1651_v4, 7 }
  0x64   : > { %v11636_v20 = vsel %vm11243_vm2, %v8387_v10, %v1723_v12 }
  0x65   : > { %9358 = vmatpush3.bf16.msra.mxu1 %v10618_v24  ;;  %v10640_v24 = vld [vmem:[%s11225_s24 + $0x98] ss:$36 sps:$4 sm:$0xff]   ;;  %v8403_v30 = vcombine.high %v11636_v20, %v11640_v21 }
  0x66   : > { %9359 = vmatprep.subr.bf16.mxu1 %v10619_v26  ;;  %9970 = vmatmul.mubr.msk.bf16.vlgmr.msra.gmra.mrb[16].mxu0 %vm1109_vm3, %v8404_v36  ;;  %v10636_v26 = vld [vmem:[%s13626_s2 + $0x48] sm:$0xff]   ;;  %v1663_v36 = vld [vmem:[%s11225_s24 + $0xc0] sm:$0x77] }
  0x67   : > { %9978 = vmatpush3.bf16.msra.mxu0 %v11508_v44  ;;  %9973 = vmatprep.mubr.msk.bf16.mxu0 %vm1109_vm3, %v8407_v46  ;;  %v10626_v44 = vld [vmem:[%s13626_s2 + $0x90] sm:$0xff]   ;;  %v1747_v41 = vrot.slane %v1663_v36, 7 }
  0x68   : > { %9979 = vmatprep.subr.bf16.mxu0 %v10623_v52  ;;  %v2438_v46 = vld [vmem:[%s11225_s24 + $0x14] sm:$0xc] }
  0x69   : > { %9360 = vmatpush3.bf16.msra.mxu1 %v10621_v55  ;;  %v8472_v54 = vrot.slane %v2438_v46, 10  ;;  %v2510_v55 = vrot.slane %v2440_v50, 6  ;;  %v1748_v59 = vsel %vm11243_vm2, %v8393_v40, %v1747_v41  ;;  %v10649_v40 = vld [vmem:[%s13626_s2 + $0x20] sm:$0xff]   ;;  %v10654_v46 = vld [vmem:[%s13626_s2 + $0x1e8] sm:$0xff]   ;;  %v10656_v50 = vld [vmem:[%s13626_s2 + $0x230] sm:$0xff]  }
  0x6a   : > { %9361 = vmatprep.subr.bf16.mxu1 %v10622_v57  ;;  %v10645_v57 = vld [vmem:[%s13626_s2 + $0x1d8] sm:$0xff]  }
  0x6b   : > { %9980 = vmatpush3.bf16.msra.mxu0 %v10623_v52  ;;  %v2442_v52 = vld [vmem:[%s11225_s24 + $0x38] sm:$0xc] }
  0x6c   : > { %9981 = vmatprep.subr.bf16.mxu0 %v10626_v44  ;;  %v8474_v60 = vrot.slane %v2442_v52, 10  ;;  %v10653_v52 = vld [vmem:[%s13626_s2 + $0x28] sm:$0xff]  }
  0x6d   : > { %9362 = vmatpush3.bf16.msra.mxu1 %v10624_v58  ;;  %v1740_v58 = vsel %vm11243_vm2, %v8391_v37, %v1739_v39  ;;  %v8397_v37 = vrot.slane %v1669_v29, 11 }
  0x6e   : > { %9363 = vmatprep.subr.bf16.mxu1 %v10625_v61  ;;  %9974 = vmatmul.mubr.msk.bf16.gmra.mrb[20].mxu0 %vm1109_vm3, %v8410_v63  ;;  %v10642_v61 = vld [vmem:[%s13626_s2 + $0x10] sm:$0xff]   ;;  %v2511_v63 = vsel %vm11663_vm6, %v8472_v54, %v2510_v55  ;;  %v8406_v10 = vcombine.high %v1740_v58, %v1748_v59  ;;  %v8405_v36 = vcombine.low %v1740_v58, %v1748_v59  ;;  %v10665_v58 = vld [vmem:[%s11225_s24 + $0x4] ss:$36 sps:$4 sm:$0xff]   ;;  %v10659_v59 = vld [vmem:[%s13626_s2 + $0x78] sm:$0xff]  }
  0x6f   : > { %9982 = vmatpush3.bf16.msra.mxu0 %v10626_v44  ;;  %9985 = vmatprep.mubr.msk.bf16.mxu0 %vm1109_vm3, %v10632_v0  ;;  %v2518_v44 = vrot.slane %v2444_v53, 6  ;;  %v2446_v0 = vld [vmem:[%s11225_s24 + $0x5c] sm:$0xc]  ;;  %v10655_v53 = vld [vmem:[%s13626_s2 + $0x70] sm:$0xff]  }
  0x70   : > { %9983 = vmatprep.subr.bf16.mxu0 %v10629_v9  ;;  %v10658_v54 = vld [vmem:[%s13626_s2 + $0x1f0] sm:$0xff]  }
  0x71   : > { %9364 = vmatpush3.bf16.msra.mxu1 %v10627_v3  ;;  %v8402_v3 = vcombine.low %v11636_v20, %v11640_v21  ;;  %v2519_v4 = vsel %vm11663_vm6, %v8474_v60, %v2518_v44  ;;  %v10647_v20 = vld [vmem:[%s13626_s2 + $0x60] sm:$0xff]   ;;  %v10662_v60 = vld [vmem:[%s13626_s2 + $0x1f8] sm:$0xff]  }
  0x72   : > { %9365 = vmatprep.subr.bf16.mxu1 %v10628_v7  ;;  %v8476_v7 = vrot.slane %v2446_v0, 10  ;;  %v8489_v12 = vcombine.low %v2511_v63, %v2519_v4  ;;  %v10648_v21 = vld [vmem:[%s13626_s2 + $0x220] sm:$0xff]   ;;  %v10670_v4 = vld [vmem:[%s13626_s2 + $0x188] sm:$0xff]  }
  0x73   : > { %9984 = vmatpush3.bf16.msra.mxu0 %v10629_v9  ;;  %v2526_v9 = vrot.slane %v2448_v1, 6  ;;  %v10667_v44 = vld [vmem:[%s13626_s2 + $0x240] sm:$0xff]  }
  0x74   : > { %9993 = vmatprep.subr.bf16.mxu0 %v10633_v16  ;;  %v10663_v63 = vld [vmem:[%s11225_s24] ss:$36 sps:$4 sm:$0xff]  }
  0x75   : > { %9366 = vmatpush3.bf16.msra.mxu1 %v10630_v15  ;;  %v10644_v15 = vld [vmem:[%s13626_s2 + $0x58] sm:$0xff]   ;;  %v10666_v0 = vld [vmem:[%s13626_s2 + $0x180] sm:$0xff]  }
  0x76   : > { %9399 = vmatprep.subr.bf16.mxu1 %v10631_v18  ;;  %9986 = vmatmul.mubr.msk.bf16.vlgmr.msra.gmra.mrb[16].mxu0 %vm1109_vm3, %v10635_v19  ;;  %v2527_v18 = vsel %vm11663_vm6, %v8476_v7, %v2526_v9  ;;  %v2535_v19 = vsel %vm11663_vm6, %v8478_v13, %v2534_v14  ;;  %v10668_v1 = vld [vmem:[%s13626_s2 + $0x140] sm:$0xff]   ;;  %v10674_v7 = vld [vmem:[%s11225_s24 + $0x4c] ss:$36 sps:$4 sm:$0xff]   ;;  %v2460_v13 = vld [vmem:[%s11225_s24 + $0xd4] sm:$0x3] }
  0x77   : > { %9994 = vmatpush3.bf16.msra.mxu0 %v10633_v16  ;;  %9989 = vmatprep.mubr.msk.bf16.mxu0 %vm1109_vm3, %v10640_v24  ;;  %v10646_v16 = vld [vmem:[%s13626_s2 + $0x18] sm:$0xff]   ;;  %v8492_v24 = vcombine.low %v2527_v18, %v2535_v19  ;;  %v2454_v9 = vld [vmem:[%s11225_s24 + $0xa4] sm:$0xc]  ;;  %v10672_v14 = vld [vmem:[%s13626_s2 + $0x148] sm:$0xff]   ;;  %v2550_v19 = vrot.slane %v2460_v13, 6 }
  0x78   : > { %2018 = vmatmul.mubr.bf16.vlgmr.msra.gmra.mrb[40].mxu1 %v8399_v25  ;;  %9995 = vmatprep.subr.bf16.mxu0 %v10637_v28  ;;  %v10652_v25 = vld [vmem:[%s13626_s2 + $0x228] sm:$0xff]  }
  0x79   : > { %9400 = vmatpush3.bf16.msra.mxu1 %v10634_v23  ;;  %2025 = vmatprep.mubr.bf16.mxu1 %v8403_v30  ;;  %v10650_v23 = vld [vmem:[%s13626_s2 + $0x1e0] sm:$0xff]   ;;  %v1671_v30 = vld [vmem:[%s11225_s24 + $0x108] sm:$0x77] }
  0x7a   : > { %9401 = vmatprep.subr.bf16.mxu1 %v10636_v26  ;;  %v1665_v26 = vld [vmem:[%s11225_s24 + $0xd8] sm:$0x88]  ;;  %v1763_v39 = vrot.slane %v1671_v30, 7  ;;  %v2468_v30 = vld [vmem:[%s11225_s24 + $0x11c] sm:$0x3] }
  0x7b   : > { %9996 = vmatpush3.bf16.msra.mxu0 %v10637_v28  ;;  %v1667_v28 = vld [vmem:[%s11225_s24 + $0xe4] sm:$0x77]  ;;  %v8395_v31 = vrot.slane %v1665_v26, 11  ;;  %v2464_v26 = vld [vmem:[%s11225_s24 + $0xf8] sm:$0x3] }
  0x7c   : > { %9997 = vmatprep.subr.bf16.mxu0 %v10641_v45  ;;  %v1755_v35 = vrot.slane %v1667_v28, 7  ;;  %v2466_v28 = vld [vmem:[%s11225_s24 + $0x110] sm:$0xc] }
  0x7d   : > { %9402 = vmatpush3.bf16.msra.mxu1 %v10638_v43  ;;  %v10651_v43 = vld [vmem:[%s13626_s2 + $0x68] sm:$0xff]  }
  0x7e   : > { %9403 = vmatprep.subr.bf16.mxu1 %v10639_v56  ;;  %9990 = vmatmul.mubr.msk.bf16.gmra.mrb[20].mxu0 %vm1109_vm3, %v10643_v47  ;;  %v1756_v41 = vsel %vm11243_vm2, %v8395_v31, %v1755_v35  ;;  %v10660_v56 = vld [vmem:[%s13626_s2 + $0x238] sm:$0xff]   ;;  %v2558_v35 = vrot.slane %v2464_v26, 6  ;;  %v10708_v26 = vld [vmem:[%s13626_s2 + $0x268] sm:$0xff]  }
  0x7f   : > { %9998 = vmatpush3.bf16.msra.mxu0 %v10641_v45  ;;  %10001 = vmatprep.mubr.msk.bf16.mxu0 %vm1109_vm3, %v8489_v12  ;;  %v1764_v45 = vsel %vm11243_vm2, %v8397_v37, %v1763_v39  ;;  %v2458_v12 = vld [vmem:[%s11225_s24 + $0xc8] sm:$0xc]  ;;  %v10678_v37 = vld [vmem:[%s13626_s2 + $0x250] sm:$0xff]   ;;  %v2566_v39 = vrot.slane %v2468_v30, 6 }
  0x80   : > { %2026 = vmatmul.mubr.bf16.gmra.mrb[44].mxu1 %v8402_v3  ;;  %9999 = vmatprep.subr.bf16.mxu0 %v10645_v57  ;;  %v8409_v47 = vcombine.high %v1756_v41, %v1764_v45  ;;  %v8408_v55 = vcombine.low %v1756_v41, %v1764_v45  ;;  %v10669_v3 = vld [vmem:[%s13626_s2 + $0x200] sm:$0xff]   ;;  %v8482_v18 = vrot.slane %v2458_v12, 10  ;;  %v10680_v45 = vld [vmem:[%s13626_s2 + $0x210] sm:$0xff]  }
  0x81   : > { %9404 = vmatpush3.bf16.msra.mxu1 %v10642_v61  ;;  %2033 = vmatprep.mubr.bf16.mxu1 %v8406_v10  ;;  %v10661_v61 = vld [vmem:[%s13626_s2 + $0x38] sm:$0xff]   ;;  %v2456_v10 = vld [vmem:[%s11225_s24 + $0xb0] sm:$0x3] }
  0x82   : > { %9405 = vmatprep.subr.bf16.mxu1 %v10644_v15  ;;  %v8480_v15 = vrot.slane %v2454_v9, 10  ;;  %v2443_v9 = vld [vmem:[%s11225_s24 + $0x3c] sm:$0x33]  ;;  %v2445_v30 = vld [vmem:[%s11225_s24 + $0x54] sm:$0xcc] }
  0x83   : > { %10000 = vmatpush3.bf16.msra.mxu0 %v10645_v57  ;;  %v10657_v57 = vld [vmem:[%s13626_s2 + $0x30] sm:$0xff]  }
  0x84   : > { %9495 = vmatprep.subr.bf16.mxu0 %v10648_v21 }
  0x85   : > { %9406 = vmatpush3.bf16.msra.mxu1 %v10646_v16  ;;  %v2542_v16 = vrot.slane %v2456_v10, 6 }
  0x86   : > { %9407 = vmatprep.subr.bf16.mxu1 %v10647_v20  ;;  %10002 = vmatmul.mubr.msk.bf16.vlgmr.msra.gmra.mrb[16].mxu0 %vm1109_vm3, %v8492_v24  ;;  %v10677_v20 = vld [vmem:[%s13626_s2 + $0x190] sm:$0xff]   ;;  %v10676_v24 = vld [vmem:[%s11225_s24 + $0x48] ss:$36 sps:$4 sm:$0xff]  }
  0x87   : > { %9496 = vmatpush3.bf16.msra.mxu0 %v10650_v23  ;;  %v2543_v21 = vsel %vm11663_vm6, %v8480_v15, %v2542_v16  ;;  %v2551_v23 = vsel %vm11663_vm6, %v8482_v18, %v2550_v19  ;;  %v10702_v15 = vld [vmem:[%s11225_s24 + $0x16c] ss:$36 sps:$4 sm:$0xff]   ;;  %v10704_v19 = vld [vmem:[%s13626_s2 + $0x260] sm:$0xff]  }
  0x88   : > { %2034 = vmatmul.mubr.bf16.gmra.mrb[48].mxu1 %v8405_v36  ;;  %9497 = vmatprep.subr.bf16.mxu0 %v10652_v25  ;;  %v2462_v25 = vld [vmem:[%s11225_s24 + $0xec] sm:$0xc]  ;;  %v8495_v29 = vcombine.low %v2543_v21, %v2551_v23  ;;  %v8486_v36 = vrot.slane %v2466_v28, 10  ;;  %v10706_v23 = vld [vmem:[%s13626_s2 + $0x2c0] sm:$0xff]  }
  0x89   : > { %9408 = vmatpush3.bf16.msra.mxu1 %v10649_v40  ;;  %2041 = vmatprep.mubr.bf16.mxu1 %v8409_v47  ;;  %v8484_v31 = vrot.slane %v2462_v25, 10  ;;  %v10679_v40 = vld [vmem:[%s13626_s2 + $0x150] sm:$0xff]   ;;  %v10681_v47 = vld [vmem:[%s13626_s2 + $0x198] sm:$0xff]   ;;  %v10705_v21 = vld [vmem:[%s11225_s24 + $0x168] ss:$36 sps:$4 sm:$0xff]  }
  0x8a   : > { %9409 = vmatprep.subr.bf16.mxu1 %v10651_v43  ;;  %10005 = vmatprep.mubr.msk.bf16.mxu0 %vm1109_vm3, %v8495_v29  ;;  %v2567_v43 = vsel %vm11663_vm6, %v8486_v36, %v2566_v39  ;;  %v10707_v25 = vld [vmem:[%s13626_s2 + $0x280] sm:$0xff]   ;;  %v10709_v28 = vld [vmem:[%s13626_s2 + $0x2c8] sm:$0xff]  }
  0x8b   : > { %9498 = vmatpush3.bf16.msra.mxu0 %v10654_v46  ;;  %v2559_v41 = vsel %vm11663_vm6, %v8484_v31, %v2558_v35  ;;  %v10710_v29 = vld [vmem:[%s13626_s2 + $0x288] sm:$0xff]   ;;  %v2447_v31 = vld [vmem:[%s11225_s24 + $0x60] sm:$0x33]  ;;  %v2449_v35 = vld [vmem:[%s11225_s24 + $0x78] sm:$0xcc] }
  0x8c   : > { %9499 = vmatprep.subr.bf16.mxu0 %v10656_v50  ;;  %v8498_v46 = vcombine.low %v2559_v41, %v2567_v43  ;;  %v10682_v50 = vld [vmem:[%s13626_s2 + $0x258] sm:$0xff]   ;;  %v2451_v36 = vld [vmem:[%s11225_s24 + $0x84] sm:$0x33]  ;;  %v2522_v39 = vrot.slane %v2447_v31, 6 }
  0x8d   : > { %9410 = vmatpush3.bf16.msra.mxu1 %v10653_v52  ;;  %v10683_v52 = vld [vmem:[%s13626_s2 + $0x158] sm:$0xff]   ;;  %v2530_v41 = vrot.slane %v2451_v36, 6 }
  0x8e   : > { %9411 = vmatprep.subr.bf16.mxu1 %v10655_v53  ;;  %10006 = vmatmul.mubr.msk.bf16.gmra.mrb[20].mxu0 %vm1109_vm3, %v8498_v46  ;;  %v10684_v53 = vld [vmem:[%s13626_s2 + $0x218] sm:$0xff]  }
  0x8f   : > { %9500 = vmatpush3.bf16.msra.mxu0 %v10658_v54  ;;  %v10685_v54 = vld [vmem:[%s11225_s24 + $0x94] ss:$36 sps:$4 sm:$0xff]  }
  0x90   : > { %2042 = vmatmul.mubr.bf16.gmra.mrb[52].mxu1 %v8408_v55  ;;  %9501 = vmatprep.subr.bf16.mxu0 %v10660_v56  ;;  %v10687_v55 = vld [vmem:[%s11225_s24 + $0xd8] ss:$36 sps:$4 sm:$0xff]  }
  0x91   : > { %9412 = vmatpush3.bf16.msra.mxu1 %v10657_v57  ;;  %2339 = vmatprep.mubr.bf16.mxu1 %v10665_v58  ;;  %v10689_v56 = vld [vmem:[%s11225_s24 + $0xdc] ss:$36 sps:$4 sm:$0xff]   ;;  %v10690_v57 = vld [vmem:[%s11225_s24 + $0x90] ss:$36 sps:$4 sm:$0xff]  }
  0x92   : > { %9413 = vmatprep.subr.bf16.mxu1 %v10659_v59  ;;  %3202 = vmatprep.mubr.bf16.mxu0 %v10689_v56  ;;  %v10691_v58 = vld [vmem:[%s13626_s2 + $0x1a0] sm:$0xff]   ;;  %v10711_v43 = vld [vmem:[%s11225_s24 + $0x1b4] ss:$36 sps:$4 sm:$0xff]  }
  0x93   : > { %9502 = vmatpush3.bf16.msra.mxu0 %v10662_v60  ;;  %v10692_v59 = vld [vmem:[%s13626_s2 + $0x160] sm:$0xff]   ;;  %v10693_v60 = vld [vmem:[%s13626_s2 + $0x1a8] sm:$0xff]  }
  0x94   : > { %9503 = vmatprep.subr.bf16.mxu0 %v10667_v44  ;;  %v10694_v44 = vld [vmem:[%s13626_s2 + $0x168] sm:$0xff]  }
  0x95   : > { %9414 = vmatpush3.bf16.msra.mxu1 %v10661_v61  ;;  %v10695_v61 = vld [vmem:[%s11225_s24 + $0x124] ss:$36 sps:$4 sm:$0xff]  }
  0x96   : > { %9447 = vmatprep.subr.bf16.mxu1 %v10666_v0  ;;  %v10698_v0 = vld [vmem:[%s11225_s24 + $0x120] ss:$36 sps:$4 sm:$0xff]  }
  0x97   : > { %9504 = vmatpush3.bf16.msra.mxu0 %v10669_v3  ;;  %v10700_v3 = vld [vmem:[%s13626_s2 + $0x1b8] sm:$0xff]  }
  0x98   : > { %2340 = vmatmul.mubr.bf16.vlgmr.msra.gmra.mrb[56].mxu1 %v10663_v63  ;;  %9505 = vmatprep.subr.bf16.mxu0 %v10671_v5  ;;  %v10697_v63 = vld [vmem:[%s13626_s2 + $0x1b0] sm:$0xff]   ;;  %v10701_v5 = vld [vmem:[%s13626_s2 + $0x178] sm:$0xff]  }
  0x99   : > { %9448 = vmatpush3.bf16.msra.mxu1 %v10668_v1  ;;  %2347 = vmatprep.mubr.bf16.mxu1 %v10674_v7  ;;  %v10699_v1 = vld [vmem:[%s13626_s2 + $0x170] sm:$0xff]  }
  0x9a   : > { %9449 = vmatprep.subr.bf16.mxu1 %v10670_v4  ;;  %v2437_v4 = vld [vmem:[%s11225_s24 + $0xc] sm:$0xcc] }
  0x9b   : > { %9506 = vmatpush3.bf16.msra.mxu0 %v10673_v6  ;;  %v2439_v6 = vld [vmem:[%s11225_s24 + $0x18] sm:$0x33]  ;;  %v2441_v7 = vld [vmem:[%s11225_s24 + $0x30] sm:$0xcc]  ;;  %v8471_v10 = vrot.slane %v2437_v4, 10 }
  0x9c   : > { %9507 = vmatprep.subr.bf16.mxu0 %v10678_v37  ;;  %v2506_v12 = vrot.slane %v2439_v6, 6  ;;  %v8473_v13 = vrot.slane %v2441_v7, 10  ;;  %v8475_v37 = vrot.slane %v2445_v30, 10  ;;  %v10720_v4 = vld [vmem:[%s11225_s24 + $0xe0] ss:$36 sps:$4 sm:$0xff]  }
  0x9d   : > { %9450 = vmatpush3.bf16.msra.mxu1 %v10672_v14  ;;  %v2514_v14 = vrot.slane %v2443_v9, 6  ;;  %v10721_v7 = vld [vmem:[%s13626_s2 + $0x300] sm:$0xff]  }
  0x9e   : > { %9451 = vmatprep.subr.bf16.mxu1 %v10677_v20  ;;  %v2507_v16 = vsel %vm11663_vm6, %v8471_v10, %v2506_v12  ;;  %v10722_v12 = vld [vmem:[%s11225_s24 + $0x128] ss:$36 sps:$4 sm:$0xff]  }
  0x9f   : > { %9508 = vmatpush3.bf16.msra.mxu0 %v10680_v45  ;;  %v2515_v18 = vsel %vm11663_vm6, %v8473_v13, %v2514_v14  ;;  %v2523_v45 = vsel %vm11663_vm6, %v8475_v37, %v2522_v39  ;;  %v10723_v13 = vld [vmem:[%s13626_s2 + $0x2e0] sm:$0xff]   ;;  %v10730_v39 = vld [vmem:[%s11225_s24 + $0x1b8] ss:$36 sps:$4 sm:$0xff]  }
  0xa0   : > { %2348 = vmatmul.mubr.bf16.gmra.mrb[60].mxu1 %v10676_v24  ;;  %9509 = vmatprep.subr.bf16.mxu0 %v10682_v50  ;;  %v8488_v20 = vcombine.high %v2507_v16, %v2515_v18  ;;  %v8487_v24 = vcombine.low %v2507_v16, %v2515_v18  ;;  %v10714_v50 = vld [vmem:[%s11225_s24 + $0x1b0] ss:$36 sps:$4 sm:$0xff]   ;;  %v10724_v14 = vld [vmem:[%s13626_s2 + $0x2a0] sm:$0xff]   ;;  %v10726_v16 = vld [vmem:[%s13626_s2 + $0x2e8] sm:$0xff]  }
  0xa1   : > { %9452 = vmatpush3.bf16.msra.mxu1 %v10679_v40  ;;  %2355 = vmatprep.mubr.bf16.mxu1 %v10685_v54  ;;  %v8477_v40 = vrot.slane %v2449_v35, 10  ;;  %v10715_v54 = vld [vmem:[%s13626_s2 + $0x2d0] sm:$0xff]   ;;  %v10727_v18 = vld [vmem:[%s13626_s2 + $0x2a8] sm:$0xff]  }
  0xa2   : > { %9453 = vmatprep.subr.bf16.mxu1 %v10681_v47  ;;  %v10713_v47 = vld [vmem:[%s13626_s2 + $0x270] sm:$0xff]  }
  0xa3   : > { %9510 = vmatpush3.bf16.msra.mxu0 %v10684_v53  ;;  %v2531_v46 = vsel %vm11663_vm6, %v8477_v40, %v2530_v41  ;;  %v10729_v35 = vld [vmem:[%s13626_s2 + $0x310] sm:$0xff]  }
  0xa4   : > { %10009 = vmatprep.subr.bf16.mxu0 %v10704_v19  ;;  %v8490_v53 = vcombine.low %v2523_v45, %v2531_v46  ;;  %v10731_v40 = vld [vmem:[%s13626_s2 + $0x2f0] sm:$0xff]  }
  0xa5   : > { %9454 = vmatpush3.bf16.msra.mxu1 %v10683_v52  ;;  %v8491_v52 = vcombine.high %v2523_v45, %v2531_v46  ;;  %v10732_v41 = vld [vmem:[%s13626_s2 + $0x2b0] sm:$0xff]   ;;  %v10734_v45 = vld [vmem:[%s13626_s2 + $0x2f8] sm:$0xff]  }
  0xa6   : > { %9455 = vmatprep.subr.bf16.mxu1 %v10691_v58  ;;  %3203 = vmatmul.mubr.bf16.vlgmr.msra.gmra.mrb[24].mxu0 %v10687_v55  ;;  %v10719_v58 = vld [vmem:[%s13626_s2 + $0x298] sm:$0xff]  }
  0xa7   : > { %3210 = vmatprep.mubr.bf16.mxu0 %v10695_v61  ;;  %10010 = vmatpush3.bf16.msra.mxu0 %v10704_v19  ;;  %v2459_v61 = vld [vmem:[%s11225_s24 + $0xcc] sm:$0x33]  ;;  %v2461_v19 = vld [vmem:[%s11225_s24 + $0xe4] sm:$0xcc]  ;;  %v10735_v46 = vld [vmem:[%s13626_s2 + $0x2b8] sm:$0xff]  }
  0xa8   : > { %2356 = vmatmul.mubr.bf16.gmra.mrb[64].mxu1 %v10690_v57  ;;  %10011 = vmatprep.subr.bf16.mxu0 %v10708_v26  ;;  %v10718_v57 = vld [vmem:[%s13626_s2 + $0x2d8] sm:$0xff]  }
  0xa9   : > { %9456 = vmatpush3.bf16.msra.mxu1 %v10692_v59  ;;  %2363 = vmatprep.mubr.bf16.mxu1 %v10689_v56  ;;  %v10717_v56 = vld [vmem:[%s13626_s2 + $0x278] sm:$0xff]  }
  0xaa   : > { %9457 = vmatprep.subr.bf16.mxu1 %v10693_v60  ;;  %v2453_v59 = vld [vmem:[%s11225_s24 + $0x9c] sm:$0xcc]  ;;  %v2455_v60 = vld [vmem:[%s11225_s24 + $0xa8] sm:$0x33] }
  0xab   : > { %10012 = vmatpush3.bf16.msra.mxu0 %v10708_v26 }
  0xac   : > { %10013 = vmatprep.subr.bf16.mxu0 %v10713_v47 }
  0xad   : > { %9458 = vmatpush3.bf16.msra.mxu1 %v10694_v44  ;;  %v2457_v44 = vld [vmem:[%s11225_s24 + $0xc0] sm:$0xcc] }
  0xae   : > { %9459 = vmatprep.subr.bf16.mxu1 %v10697_v63  ;;  %3211 = vmatmul.mubr.bf16.gmra.mrb[28].mxu0 %v10698_v0  ;;  %v8479_v63 = vrot.slane %v2453_v59, 10  ;;  %v2538_v0 = vrot.slane %v2455_v60, 6  ;;  %v8606_v59 = vld [vmem:[%s11225_s24 + $0x11c] sm:$0x3] }
  0xaf   : > { %3218 = vmatprep.mubr.bf16.mxu0 %v10702_v15  ;;  %10014 = vmatpush3.bf16.msra.mxu0 %v10713_v47  ;;  %v10725_v15 = vld [vmem:[%s13626_s2 + $0x308] sm:$0xff]   ;;  %v10736_v47 = vld [vmem:[%s13626_s2 + $0x3a0] sm:$0xff]  }
  0xb0   : > { %2364 = vmatmul.mubr.bf16.gmra.mrb[68].mxu1 %v10687_v55  ;;  %v10716_v55 = vld [vmem:[%s13626_s2 + $0x290] sm:$0xff]   ;;  %10015 = vmatprep.subr.bf16.mxu0 %v10717_v56 }
  0xb1   : > { %9460 = vmatpush3.bf16.msra.mxu1 %v10699_v1  ;;  %2816 = vmatprep.mubr.bf16.mxu1 %v8488_v20  ;;  %v8481_v1 = vrot.slane %v2457_v44, 10  ;;  %v2463_v20 = vld [vmem:[%s11225_s24 + $0xf0] sm:$0x33] }
  0xb2   : > { %9461 = vmatprep.subr.bf16.mxu1 %v10700_v3  ;;  %v2546_v3 = vrot.slane %v2459_v61, 6 }
  0xb3   : > { %10016 = vmatpush3.bf16.msra.mxu0 %v10717_v56  ;;  %v10746_v56 = vld [vmem:[%s13626_s2 + $0x378] sm:$0xff]  }
  0xb4   : > { %v2547_v6 = vsel %vm11663_vm6, %v8481_v1, %v2546_v3  ;;  %10025 = vmatprep.subr.bf16.mxu0 %v10721_v7  ;;  %v10749_v1 = vld [vmem:[%s13626_s2 + $0x380] sm:$0xff]   ;;  %v8608_v3 = vld [vmem:[%s11225_s24 + $0x134] sm:$0xc] }
  0xb5   : > { %9462 = vmatpush3.bf16.msra.mxu1 %v10701_v5  ;;  %v2539_v5 = vsel %vm11663_vm6, %v8479_v63, %v2538_v0  ;;  %v3684_v63 = vrot.slane %v8606_v59, 6  ;;  %v10748_v0 = vld [vmem:[%s13626_s2 + $0x440] sm:$0xff]  }
  0xb6   : > { %9543 = vmatprep.subr.bf16.mxu1 %v10706_v23  ;;  %3219 = vmatmul.mubr.bf16.gmra.mrb[32].mxu0 %v10705_v21  ;;  %v8494_v9 = vcombine.high %v2539_v5, %v2547_v6  ;;  %v8493_v10 = vcombine.low %v2539_v5, %v2547_v6  ;;  %v2465_v21 = vld [vmem:[%s11225_s24 + $0x108] sm:$0xcc]  ;;  %v2467_v23 = vld [vmem:[%s11225_s24 + $0x114] sm:$0x33]  ;;  %v8610_v5 = vld [vmem:[%s11225_s24 + $0x140] sm:$0x3] }
  0xb7   : > { %3226 = vmatprep.mubr.bf16.mxu0 %v10711_v43  ;;  %v8485_v26 = vrot.slane %v2465_v21, 10  ;;  %v10733_v43 = vld [vmem:[%s13626_s2 + $0x318] sm:$0xff]   ;;  %v10753_v21 = vld [vmem:[%s13626_s2 + $0x348] sm:$0xff]  }
  0xb8   : > { %2817 = vmatmul.mubr.bf16.vlgmr.msra.gmra.mrb[72].mxu1 %v8487_v24  ;;  %v8483_v24 = vrot.slane %v2461_v19, 10  ;;  %v8612_v6 = vld [vmem:[%s11225_s24 + $0x158] sm:$0xc]  ;;  %v10752_v19 = vld [vmem:[%s13626_s2 + $0x388] sm:$0xff]  }
  0xb9   : > { %9544 = vmatpush3.bf16.msra.mxu1 %v10707_v25  ;;  %2824 = vmatprep.mubr.bf16.mxu1 %v8491_v52  ;;  %v2554_v25 = vrot.slane %v2463_v20, 6  ;;  %v10738_v52 = vld [vmem:[%s13626_s2 + $0x320] sm:$0xff]  }
  0xba   : > { %9545 = vmatprep.subr.bf16.mxu1 %v10709_v28  ;;  %v2562_v28 = vrot.slane %v2467_v23, 6  ;;  %v8616_v23 = vld [vmem:[%s11225_s24 + $0x17c] sm:$0xc] }
  0xbb   : > { %v2555_v30 = vsel %vm11663_vm6, %v8483_v24, %v2554_v25  ;;  %v8618_v25 = vld [vmem:[%s11225_s24 + $0x188] sm:$0x3] }
  0xbc   : > { %v2563_v31 = vsel %vm11663_vm6, %v8485_v26, %v2562_v28  ;;  %v8620_v26 = vld [vmem:[%s11225_s24 + $0x1a0] sm:$0xc]  ;;  %v8622_v28 = vld [vmem:[%s11225_s24 + $0x1ac] sm:$0x3] }
  0xbd   : > { %9546 = vmatpush3.bf16.msra.mxu1 %v10710_v29  ;;  %v10728_v29 = vld [vmem:[%s11225_s24 + $0x170] ss:$36 sps:$4 sm:$0xff]   ;;  %v8497_v36 = vcombine.high %v2555_v30, %v2563_v31  ;;  %v8496_v37 = vcombine.low %v2555_v30, %v2563_v31  ;;  %v8642_v30 = vrot.slane %v8620_v26, 10  ;;  %v3716_v31 = vrot.slane %v8622_v28, 6  ;;  %v8609_v26 = vld [vmem:[%s11225_s24 + $0x138] sm:$0x33] }
  0xbe   : > { %9547 = vmatprep.subr.bf16.mxu1 %v10715_v54  ;;  %3227 = vmatmul.mubr.bf16.gmra.mrb[36].mxu0 %v10714_v50  ;;  %v10737_v50 = vld [vmem:[%s13626_s2 + $0x360] sm:$0xff]   ;;  %v10742_v54 = vld [vmem:[%s13626_s2 + $0x3b0] sm:$0xff]  }
  0xbf   : > { %10017 = vmatprep.mubr.msk.bf16.mxu0 %vm1109_vm3, %v10720_v4  ;;  %v8611_v28 = vld [vmem:[%s11225_s24 + $0x150] sm:$0xcc] }
  0xc0   : > { %2825 = vmatmul.mubr.bf16.gmra.mrb[76].mxu1 %v8490_v53  ;;  %v10741_v53 = vld [vmem:[%s13626_s2 + $0x328] sm:$0xff]  }
  0xc1   : > { %9548 = vmatpush3.bf16.msra.mxu1 %v10716_v55  ;;  %2832 = vmatprep.mubr.bf16.mxu1 %v8494_v9  ;;  %v10745_v55 = vld [vmem:[%s13626_s2 + $0x3b8] sm:$0xff]   ;;  %v8636_v9 = vrot.slane %v8608_v3, 10 }
  0xc2   : > { %9549 = vmatprep.subr.bf16.mxu1 %v10718_v57  ;;  %v8602_v57 = vld [vmem:[%s11225_s24 + $0xf8] sm:$0x3] }
  0xc3   : > { %v3676_v44 = vrot.slane %v8602_v57, 6  ;;  %v10759_v57 = vld [vmem:[%s13626_s2 + $0x358] sm:$0xff]  }
  0xc4   : > { %v10760_v3 = vld [vmem:[%s11225_s24 + $0x1b8] ss:$36 sps:$4 sm:$0xff]  }
  0xc5   : > { %9550 = vmatpush3.bf16.msra.mxu1 %v10719_v58  ;;  %v8604_v58 = vld [vmem:[%s11225_s24 + $0x110] sm:$0xc] }
  0xc6   : > { %9551 = vmatprep.subr.bf16.mxu1 %v10723_v13  ;;  %10018 = vmatmul.mubr.msk.bf16.vlgmr.msra.gmra.mrb[16].mxu0 %vm1109_vm3, %v10722_v12  ;;  %v8634_v61 = vrot.slane %v8604_v58, 10  ;;  %v8638_v12 = vrot.slane %v8612_v6, 10  ;;  %v8599_v58 = vld [vmem:[%s11225_s24 + $0xe4] sm:$0xcc] }
  0xc7   : > { %10026 = vmatpush3.bf16.msra.mxu0 %v10721_v7  ;;  %10021 = vmatprep.mubr.msk.bf16.mxu0 %vm1109_vm3, %v10728_v29  ;;  %v8614_v7 = vld [vmem:[%s11225_s24 + $0x164] sm:$0x3]  ;;  %v8640_v29 = vrot.slane %v8616_v23, 10  ;;  %v8607_v23 = vld [vmem:[%s11225_s24 + $0x12c] sm:$0xcc] }
  0xc8   : > { %2833 = vmatmul.mubr.bf16.gmra.mrb[80].mxu1 %v8493_v10  ;;  %10027 = vmatprep.subr.bf16.mxu0 %v10725_v15  ;;  %v3692_v10 = vrot.slane %v8610_v5, 6  ;;  %v3700_v13 = vrot.slane %v8614_v7, 6  ;;  %v10761_v6 = vld [vmem:[%s13626_s2 + $0x4e0] sm:$0xff]  }
  0xc9   : > { %9552 = vmatpush3.bf16.msra.mxu1 %v10724_v14  ;;  %2840 = vmatprep.mubr.bf16.mxu1 %v8497_v36  ;;  %v10750_v14 = vld [vmem:[%s13626_s2 + $0x340] sm:$0xff]  }
  0xca   : > { %9553 = vmatprep.subr.bf16.mxu1 %v10726_v16  ;;  %v10751_v16 = vld [vmem:[%s13626_s2 + $0x448] sm:$0xff]  }
  0xcb   : > { %10028 = vmatpush3.bf16.msra.mxu0 %v10725_v15  ;;  %v3701_v15 = vsel %vm11663_vm6, %v8638_v12, %v3700_v13  ;;  %v10763_v13 = vld [vmem:[%s11225_s24 + $0x200] ss:$36 sps:$4 sm:$0xff]  }
  0xcc   : > { %10029 = vmatprep.subr.bf16.mxu0 %v10729_v35 }
  0xcd   : > { %9554 = vmatpush3.bf16.msra.mxu1 %v10727_v18 }
  0xce   : > { %10022 = vmatmul.mubr.msk.bf16.gmra.mrb[20].mxu0 %vm1109_vm3, %v10730_v39  ;;  %9555 = vmatprep.subr.bf16.mxu1 %v10731_v40  ;;  %v3717_v39 = vsel %vm11663_vm6, %v8642_v30, %v3716_v31  ;;  %v10755_v40 = vld [vmem:[%s13626_s2 + $0x390] sm:$0xff]   ;;  %v3688_v30 = vrot.slane %v8609_v26, 6  ;;  %v8637_v31 = vrot.slane %v8611_v28, 10  ;;  %v8746_v26 = vld [vmem:[%s11225_s24 + $0x20c] sm:$0x7] }
  0xcf   : > { %10030 = vmatpush3.bf16.msra.mxu0 %v10729_v35  ;;  %10033 = vmatprep.mubr.msk.bf16.mxu0 %vm1109_vm3, %v11260_v32  ;;  %v10739_v32 = vld [vmem:[%s13626_s2 + $0x3a8] sm:$0xff]   ;;  %v10754_v35 = vld [vmem:[%s13626_s2 + $0x450] sm:$0xff]  }
  0xd0   : > { %2841 = vmatmul.mubr.bf16.gmra.mrb[84].mxu1 %v8496_v37  ;;  %10031 = vmatprep.subr.bf16.mxu0 %v10733_v43 }
  0xd1   : > { %9556 = vmatpush3.bf16.msra.mxu1 %v10732_v41  ;;  %3500 = vmatprep.mubr.bf16.mxu1 %v11408_v49  ;;  %v10740_v49 = vld [vmem:[%s13626_s2 + $0x368] sm:$0xff]   ;;  %v8624_v41 = vld [vmem:[%s11225_s24 + $0x1c4] sm:$0xc] }
  0xd2   : > { %9557 = vmatprep.subr.bf16.mxu1 %v10734_v45  ;;  %v8626_v45 = vld [vmem:[%s11225_s24 + $0x1d0] sm:$0x3] }
  0xd3   : > { %10032 = vmatpush3.bf16.msra.mxu0 %v10733_v43 }
  0xd4   : > { %10041 = vmatprep.subr.bf16.mxu0 %v10736_v47 }
  0xd5   : > { %9558 = vmatpush3.bf16.msra.mxu1 %v10735_v46  ;;  %v8628_v46 = vld [vmem:[%s11225_s24 + $0x1e8] sm:$0xc] }
  0xd6   : > { %9591 = vmatprep.subr.bf16.mxu1 %v10737_v50  ;;  %10034 = vmatmul.mubr.msk.bf16.vlgmr.msra.gmra.mrb[16].mxu0 %vm1109_vm3, %v11297_v51  ;;  %v10743_v51 = vld [vmem:[%s13626_s2 + $0x370] sm:$0xff]   ;;  %v8644_v50 = vrot.slane %v8624_v41, 10 }
  0xd7   : > { %10042 = vmatpush3.bf16.msra.mxu0 %v10736_v47  ;;  %10037 = vmatprep.mubr.msk.bf16.mxu0 %vm1109_vm3, %v11337_v8  ;;  %v10747_v8 = vld [vmem:[%s13626_s2 + $0x338] sm:$0xff]   ;;  %v8630_v47 = vld [vmem:[%s11225_s24 + $0x1f4] sm:$0x3] }
  0xd8   : > { %3501 = vmatmul.mubr.bf16.vlgmr.msra.gmra.mrb[88].mxu1 %v11406_v48  ;;  %10043 = vmatprep.subr.bf16.mxu0 %v10739_v32  ;;  %v10744_v48 = vld [vmem:[%s13626_s2 + $0x330] sm:$0xff]  }
  0xd9   : > { %9592 = vmatpush3.bf16.msra.mxu1 %v10738_v52  ;;  %3508 = vmatprep.mubr.bf16.mxu1 %v11425_v62  ;;  %v8600_v62 = vld [vmem:[%s11225_s24 + $0xec] sm:$0xc]  ;;  %v3724_v52 = vrot.slane %v8626_v45, 6  ;;  %v10769_v41 = vld [vmem:[%s13626_s2 + $0x4f0] sm:$0xff]  }
  0xda   : > { %9593 = vmatprep.subr.bf16.mxu1 %v10740_v49  ;;  %v8632_v60 = vrot.slane %v8600_v62, 10  ;;  %v3732_v49 = vrot.slane %v8630_v47, 6  ;;  %v10770_v47 = vld [vmem:[%s13626_s2 + $0x410] sm:$0xff]  }
  0xdb   : > { %10044 = vmatpush3.bf16.msra.mxu0 %v10739_v32  ;;  %v8646_v32 = vrot.slane %v8628_v46, 10 }
  0xdc   : > { %10045 = vmatprep.subr.bf16.mxu0 %v10742_v54 }
  0xdd   : > { %9594 = vmatpush3.bf16.msra.mxu1 %v10741_v53  ;;  %v10756_v53 = vld [vmem:[%s13626_s2 + $0x350] sm:$0xff]  }
  0xde   : > { %9595 = vmatprep.subr.bf16.mxu1 %v10743_v51  ;;  %10038 = vmatmul.mubr.msk.bf16.gmra.mrb[20].mxu0 %vm1109_vm3, %v11371_v27  ;;  %v3685_v27 = vsel %vm11663_vm6, %v8634_v61, %v3684_v63  ;;  %v3725_v51 = vsel %vm11663_vm6, %v8644_v50, %v3724_v52  ;;  %v8605_v61 = vld [vmem:[%s11225_s24 + $0x114] sm:$0x33]  ;;  %v730_v63 = vlaneseq }
  0xdf   : > { %10046 = vmatpush3.bf16.msra.mxu0 %v10742_v54  ;;  %v10771_v52 = vld [vmem:[%s11225_s24 + $0x290] ss:$36 sps:$4 sm:$0xff]  }
  0xe0   : > { %3509 = vmatmul.mubr.bf16.gmra.mrb[92].mxu1 %v11441_v11  ;;  %10047 = vmatprep.subr.bf16.mxu0 %v10745_v55  ;;  %v3677_v11 = vsel %vm11663_vm6, %v8632_v60, %v3676_v44  ;;  %v8601_v60 = vld [vmem:[%s11225_s24 + $0xf0] sm:$0x33]  ;;  %v8603_v44 = vld [vmem:[%s11225_s24 + $0x108] sm:$0xcc]  ;;  %v12143_v12 = vshrl.u32 %v730_v63, 7 }
  0xe1   : > { %9596 = vmatpush3.bf16.msra.mxu1 %v10744_v48  ;;  %3516 = vmatprep.mubr.bf16.mxu1 %v11454_v17  ;;  %v8649_v4 = vcombine.low %v3677_v11, %v3685_v27  ;;  %v3693_v17 = vsel %vm11663_vm6, %v8636_v9, %v3692_v10  ;;  %v3733_v48 = vsel %vm11663_vm6, %v8646_v32, %v3732_v49  ;;  %v3672_v11 = vrot.slane %v8601_v60, 6  ;;  %v10762_v10 = vld [vmem:[%s13626_s2 + $0x400] sm:$0xff]   ;;  %v10772_v32 = vld [vmem:[%s13626_s2 + $0x3d0] sm:$0xff]  }
  0xe2   : > { %9597 = vmatprep.subr.bf16.mxu1 %v10746_v56  ;;  %v8652_v18 = vcombine.low %v3693_v17, %v3701_v15  ;;  %v8658_v62 = vcombine.low %v3725_v51, %v3733_v48  ;;  %v8633_v27 = vrot.slane %v8603_v44, 10  ;;  %v10765_v15 = vld [vmem:[%s13626_s2 + $0x4e8] sm:$0xff]   ;;  %v10774_v48 = vld [vmem:[%s13626_s2 + $0x418] sm:$0xff]  }
  0xe3   : > { %10048 = vmatpush3.bf16.msra.mxu0 %v10745_v55  ;;  %10049 = vmatprep.mubr.msk.bf16.mxu0 %vm1109_vm3, %v8649_v4  ;;  %v10757_v55 = vld [vmem:[%s13626_s2 + $0x458] sm:$0xff]   ;;  %v8621_v60 = vld [vmem:[%s11225_s24 + $0x1a4] sm:$0x33] }
  0xe4   : > { %10057 = vmatprep.subr.bf16.mxu0 %v10748_v0 }
  0xe5   : > { %9598 = vmatpush3.bf16.msra.mxu1 %v10747_v8 }
  0xe6   : > { %9599 = vmatprep.subr.bf16.mxu1 %v10749_v1  ;;  %10050 = vmatmul.mubr.msk.bf16.vlgmr.msra.gmra.mrb[16].mxu0 %vm1109_vm3, %v8652_v18  ;;  %v3680_v1 = vrot.slane %v8605_v61, 6  ;;  %v10766_v18 = vld [vmem:[%s13626_s2 + $0x408] sm:$0xff]  }
  0xe7   : > { %10058 = vmatpush3.bf16.msra.mxu0 %v10748_v0  ;;  %v8631_v0 = vrot.slane %v8599_v58, 10  ;;  %v8619_v58 = vld [vmem:[%s11225_s24 + $0x198] sm:$0xcc] }
  0xe8   : > { %3517 = vmatmul.mubr.bf16.gmra.mrb[96].mxu1 %v11474_v33  ;;  %v3708_v33 = vrot.slane %v8618_v25, 6  ;;  %10059 = vmatprep.subr.bf16.mxu0 %v10751_v16  ;;  %v3681_v5 = vsel %vm11663_vm6, %v8633_v27, %v3680_v1  ;;  %v8641_v63 = vrot.slane %v8619_v58, 10  ;;  %v8738_v27 = vld [vmem:[%s11225_s24 + $0x1c4] sm:$0x7]  ;;  %v8740_v1 = vld [vmem:[%s11225_s24 + $0x1dc] sm:$0x8] }
  0xe9   : > { %9600 = vmatpush3.bf16.msra.mxu1 %v10750_v14  ;;  %3524 = vmatprep.mubr.bf16.mxu1 %v11476_v34  ;;  %v3673_v4 = vsel %vm11663_vm6, %v8631_v0, %v3672_v11  ;;  %v10764_v14 = vld [vmem:[%s13626_s2 + $0x3c0] sm:$0xff]   ;;  %v3712_v0 = vrot.slane %v8621_v60, 6  ;;  %v8736_v11 = vld [vmem:[%s11225_s24 + $0x1b8] sm:$0x8]  ;;  %v10782_v58 = vld [vmem:[%s13626_s2 + $0x508] sm:$0xff]  }
  0xea   : > { %9601 = vmatprep.subr.bf16.mxu1 %v10752_v19  ;;  %v3709_v37 = vsel %vm11663_vm6, %v8640_v29, %v3708_v33  ;;  %v8647_v7 = vcombine.low %v3673_v4, %v3681_v5  ;;  %v8648_v9 = vcombine.high %v3673_v4, %v3681_v5  ;;  %v8613_v29 = vld [vmem:[%s11225_s24 + $0x15c] sm:$0x33]  ;;  %v8635_v33 = vrot.slane %v8607_v23, 10  ;;  %v8744_v23 = vld [vmem:[%s11225_s24 + $0x200] sm:$0x8] }
  0xeb   : > { %v12068_v20 = vpop.f32.mrb[0].mxu1  ;;  %v8655_v34 = vcombine.low %v3709_v37, %v3717_v39  ;;  %10060 = vmatpush3.bf16.msra.mxu0 %v10751_v16  ;;  %v10768_v37 = vld [vmem:[%s11225_s24 + $0x248] ss:$36 sps:$4 sm:$0xff]   ;;  %v3713_v5 = vsel %vm11663_vm6, %v8641_v63, %v3712_v0  ;;  %v8623_v63 = vld [vmem:[%s11225_s24 + $0x1bc] sm:$0xcc] }
  0xec   : > { %v12075_v24 = vpop.f32.mrb[1].mxu1  ;;  %10061 = vmatprep.subr.bf16.mxu0 %v10754_v35  ;;  %v3689_v39 = vsel %vm11663_vm6, %v8635_v33, %v3688_v30  ;;  %v8750_v33 = vld [vmem:[%s11225_s24 + $0x230] sm:$0x7]  ;;  %v8772_v30 = vrot.slane %v8744_v23, 11  ;;  %v8625_v0 = vld [vmem:[%s11225_s24 + $0x1c8] sm:$0x33] }
  0xed   : > { %v12085_v36 = vpop.f32.mrb[2].mxu1  ;;  %9602 = vmatpush3.bf16.msra.mxu1 %v10753_v21  ;;  %10053 = vmatprep.mubr.msk.bf16.mxu0 %vm1109_vm3, %v8655_v34  ;;  %v10767_v21 = vld [vmem:[%s13626_s2 + $0x3c8] sm:$0xff]  }
  0xee   : > { %v12095_v43 = vpop.f32.mrb[3].mxu1  ;;  %9603 = vmatprep.subr.bf16.mxu1 %v10755_v40  ;;  %10054 = vmatmul.mubr.msk.bf16.gmra.mrb[20].mxu0 %vm1109_vm3, %v8658_v62  ;;  %v8615_v62 = vld [vmem:[%s11225_s24 + $0x174] sm:$0xcc] }
  0xef   : > { %10062 = vmatpush3.bf16.msra.mxu0 %v10754_v35  ;;  %10065 = vmatprep.mubr.msk.bf16.mxu0 %vm1109_vm3, %v10760_v3  ;;  %v3696_v35 = vrot.slane %v8613_v29, 6  ;;  %v8639_v44 = vrot.slane %v8615_v62, 10  ;;  %v8742_v3 = vld [vmem:[%s11225_s24 + $0x1e8] sm:$0x7]  ;;  %v8748_v29 = vld [vmem:[%s11225_s24 + $0x224] sm:$0x8] }
  0xf0   : > { %3525 = vmatmul.mubr.bf16.gmra.mrb[100].mxu1 %v11491_v38  ;;  %v10758_v38 = vld [vmem:[%s13626_s2 + $0x398] sm:$0xff]   ;;  %10063 = vmatprep.subr.bf16.mxu0 %v10757_v55  ;;  %v10781_v62 = vld [vmem:[%s13626_s2 + $0x428] sm:$0xff]  }
  0xf1   : > { %9604 = vmatpush3.bf16.msra.mxu1 %v10756_v53  ;;  %3982 = vmatprep.mubr.bf16.mxu1 %v8648_v9  ;;  %v3697_v40 = vsel %vm11663_vm6, %v8637_v31, %v3696_v35  ;;  %v10773_v53 = vld [vmem:[%s13626_s2 + $0x4f8] sm:$0xff]   ;;  %v4561_v31 = vrot.slane %v8746_v26, 7  ;;  %v10786_v26 = vld [vmem:[%s13626_s2 + $0x510] sm:$0xff]  }
  0xf2   : > { %9605 = vmatprep.subr.bf16.mxu1 %v10758_v38  ;;  %v8651_v45 = vcombine.high %v3689_v39, %v3697_v40  ;;  %v8650_v46 = vcombine.low %v3689_v39, %v3697_v40  ;;  %v732_v38 = vsub.s32 0, %v12143_v12  ;;  %v4569_v39 = vrot.slane %v8750_v33, 7 }
  0xf3   : > { %v12104_v54 = vpop.f32.mrb[4].mxu1  ;;  %10064 = vmatpush3.bf16.msra.mxu0 %v10757_v55  ;;  %v10775_v55 = vld [vmem:[%s13626_s2 + $0x3d8] sm:$0xff]   ;;  %v4562_v40 = vsel %vm11243_vm2, %v8772_v30, %v4561_v31 }
  0xf4   : > { %v12114_v56 = vpop.f32.mrb[5].mxu1  ;;  %10073 = vmatprep.subr.bf16.mxu0 %v10761_v6  ;;  %v10788_v30 = vld [vmem:[%s13626_s2 + $0x558] sm:$0xff]  }
  0xf5   : > { %v12119_v8 = vpop.f32.mrb[6].mxu1  ;;  %9606 = vmatpush3.bf16.msra.mxu1 %v10759_v57  ;;  %v8617_v57 = vld [vmem:[%s11225_s24 + $0x180] sm:$0x33] }
  0xf6   : > { %v12125_v59 = vpop.f32.mrb[7].mxu1  ;;  %9639 = vmatprep.subr.bf16.mxu1 %v10762_v10  ;;  %10066 = vmatmul.mubr.msk.bf16.vlgmr.msra.gmra.mrb[16].mxu0 %vm1109_vm3, %v10763_v13  ;;  %v3704_v61 = vrot.slane %v8617_v57, 6  ;;  %v8770_v10 = vrot.slane %v8740_v1, 11  ;;  %v4553_v13 = vrot.slane %v8742_v3, 7  ;;  %v8629_v1 = vld [vmem:[%s11225_s24 + $0x1ec] sm:$0x33] }
  0xf7   : > { %10074 = vmatpush3.bf16.msra.mxu0 %v10761_v6  ;;  %10069 = vmatprep.mubr.msk.bf16.mxu0 %vm1109_vm3, %v10768_v37  ;;  %v8768_v6 = vrot.slane %v8736_v11, 11  ;;  %v8774_v37 = vrot.slane %v8748_v29, 11  ;;  %v8643_v3 = vrot.slane %v8623_v63, 10  ;;  %v10787_v29 = vld [vmem:[%s13626_s2 + $0x3f0] sm:$0xff]  }
  0xf8   : > { %3983 = vmatmul.mubr.bf16.vlgmr.msra.gmra.mrb[104].mxu1 %v8647_v7  ;;  %10075 = vmatprep.subr.bf16.mxu0 %v10765_v15  ;;  %v3705_v4 = vsel %vm11663_vm6, %v8639_v44, %v3704_v61  ;;  %v4545_v7 = vrot.slane %v8738_v27, 7  ;;  %v4554_v28 = vsel %vm11243_vm2, %v8770_v10, %v4553_v13  ;;  %v10783_v61 = vld [vmem:[%s13626_s2 + $0x3e8] sm:$0xff]   ;;  %v8627_v27 = vld [vmem:[%s11225_s24 + $0x1e0] sm:$0xcc]  ;;  %v10784_v10 = vld [vmem:[%s13626_s2 + $0x550] sm:$0xff]  }
  0xf9   : > { %9640 = vmatpush3.bf16.msra.mxu1 %v10764_v14  ;;  %3990 = vmatprep.mubr.bf16.mxu1 %v8651_v45  ;;  %v8654_v9 = vcombine.high %v3705_v4, %v3713_v5  ;;  %v10776_v14 = vld [vmem:[%s13626_s2 + $0x540] sm:$0xff]  }
  0xfa   : > { %9641 = vmatprep.subr.bf16.mxu1 %v10766_v18  ;;  %v10777_v18 = vld [vmem:[%s13626_s2 + $0x420] sm:$0xff]  }
  0xfb   : > { %v12149_v17 = vpop.f32.mrb[8].mxu1  ;;  %10076 = vmatpush3.bf16.msra.mxu0 %v10765_v15  ;;  %v8653_v15 = vcombine.low %v3705_v4, %v3713_v5  ;;  %v3720_v4 = vrot.slane %v8625_v0, 6  ;;  %v10798_v0 = vld [vmem:[%s13626_s2 + $0x460] sm:$0xff]  }
  0xfc   : > { %v12154_v16 = vpop.f32.mrb[9].mxu1  ;;  %10077 = vmatprep.subr.bf16.mxu0 %v10769_v41 }
  0xfd   : > { %v12160_v19 = vpop.f32.mrb[10].mxu1  ;;  %9642 = vmatpush3.bf16.msra.mxu1 %v10767_v21  ;;  %v4546_v21 = vsel %vm11243_vm2, %v8768_v6, %v4545_v7  ;;  %v8645_v6 = vrot.slane %v8627_v27, 10  ;;  %v3728_v7 = vrot.slane %v8629_v1, 6  ;;  %v10799_v27 = vld [vmem:[%s13626_s2 + $0x568] sm:$0xff]   ;;  %v728_v1 = vld [vmem:[%s13630_s6] sm:$0x7] }
  0xfe   : > { %v12166_v25 = vpop.f32.mrb[11].mxu1  ;;  %9643 = vmatprep.subr.bf16.mxu1 %v10770_v47  ;;  %10070 = vmatmul.mubr.msk.bf16.gmra.mrb[20].mxu0 %vm1109_vm3, %v10771_v52  ;;  %v8785_v35 = vcombine.low %v4546_v21, %v4554_v28  ;;  %v10779_v47 = vld [vmem:[%s13626_s2 + $0x3e0] sm:$0xff]  }
  0xff   : > { %10078 = vmatpush3.bf16.msra.mxu0 %v10769_v41  ;;  %v10778_v41 = vld [vmem:[%s13626_s2 + $0x500] sm:$0xff]  }
 0x100   : > { %3991 = vmatmul.mubr.bf16.gmra.mrb[108].mxu1 %v8650_v46  ;;  %10079 = vmatprep.subr.bf16.mxu0 %v10773_v53  ;;  %v4570_v46 = vsel %vm11243_vm2, %v8774_v37, %v4569_v39  ;;  %v10789_v37 = vld [vmem:[%s13626_s2 + $0x438] sm:$0xff]  }
 0x101   : > { %9644 = vmatpush3.bf16.msra.mxu1 %v10772_v32  ;;  %3998 = vmatprep.mubr.bf16.mxu1 %v8654_v9  ;;  %v8788_v32 = vcombine.low %v4562_v40, %v4570_v46  ;;  %v3721_v9 = vsel %vm11663_vm6, %v8643_v3, %v3720_v4  ;;  %v10790_v40 = vld [vmem:[%s13626_s2 + $0x518] sm:$0xff]   ;;  %v736_v46 = vsub.s32 1, %v12143_v12 }
 0x102   : > { %9645 = vmatprep.subr.bf16.mxu1 %v10774_v48  ;;  %10081 = vmatprep.mubr.msk.bf16.mxu0 %vm1109_vm3, %v8785_v35 }
 0x103   : > { %v12179_v34 = vpop.f32.mrb[12].mxu1  ;;  %10080 = vmatpush3.bf16.msra.mxu0 %v10773_v53  ;;  %v10780_v53 = vld [vmem:[%s13626_s2 + $0x548] sm:$0xff]  }
 0x104   : > { %v12185_v50 = vpop.f32.mrb[13].mxu1  ;;  %9735 = vmatprep.subr.bf16.mxu0 %v10776_v14  ;;  %v3729_v14 = vsel %vm11663_vm6, %v8645_v6, %v3728_v7  ;;  %v12324_v6 = vrot.slane %v728_v1, %v732_v38  ;;  %v10800_v7 = vld [vmem:[%s13626_s2 + $0x4a8] sm:$0xff]  }
 0x105   : > { %v12191_v49 = vpop.f32.mrb[14].mxu1  ;;  %9646 = vmatpush3.bf16.msra.mxu1 %v10775_v55  ;;  %v8657_v21 = vcombine.high %v3721_v9, %v3729_v14  ;;  %v8656_v23 = vcombine.low %v3721_v9, %v3729_v14  ;;  %v12331_v9 = vrot.slane %v728_v1, %v736_v46  ;;  %v10801_v14 = vld [vmem:[%s13626_s2 + $0x528] sm:$0xff]  }
 0x106   : > { %v12197_v51 = vpop.f32.mrb[15].mxu1  ;;  %9647 = vmatprep.subr.bf16.mxu1 %v10777_v18  ;;  %10082 = vmatmul.mubr.msk.bf16.vlgmr.msra.gmra.mrb[16].mxu0 %vm1109_vm3, %v8788_v32  ;;  %v10792_v32 = vld [vmem:[%s11225_s24 + $0x1b0] ss:$36 sps:$4 sm:$0xff]  }
 0x107   : > { %9736 = vmatpush3.bf16.msra.mxu0 %v10778_v41 }
 0x108   : > { %3999 = vmatmul.mubr.bf16.gmra.mrb[112].mxu1 %v8653_v15  ;;  %9737 = vmatprep.subr.bf16.mxu0 %v10780_v53  ;;  %v10785_v15 = vld [vmem:[%s13626_s2 + $0x430] sm:$0xff]  }
 0x109   : > { %9648 = vmatpush3.bf16.msra.mxu1 %v10779_v47  ;;  %4006 = vmatprep.mubr.bf16.mxu1 %v8657_v21  ;;  %v10794_v53 = vld [vmem:[%s11225_s24 + $0x1b4] ss:$36 sps:$4 sm:$0xff]  }
 0x10a   : > { %9649 = vmatprep.subr.bf16.mxu1 %v10781_v62  ;;  %v10795_v62 = vld [vmem:[%s13626_s2 + $0x560] sm:$0xff]  }
 0x10b   : > { %v9319_v45 = vpop.f32.mrb[16].mxu1  ;;  %9738 = vmatpush3.bf16.msra.mxu0 %v10782_v58  ;;  %v10796_v58 = vld [vmem:[%s13626_s2 + $0x4a0] sm:$0xff]  }
 0x10c   : > { %v9320_v52 = vpop.f32.mrb[17].mxu1  ;;  %9739 = vmatprep.subr.bf16.mxu0 %v10784_v10 }
 0x10d   : > { %v12246_v48 = vadd.f32 %v9320_v52, %v9319_v45  ;;  %v9322_v55 = vpop.f32.mrb[18].mxu1  ;;  %9650 = vmatpush3.bf16.msra.mxu1 %v10783_v61  ;;  %v10791_v45 = vld [vmem:[%s13626_s2 + $0x3f8] sm:$0xff]   ;;  %v740_v52 = vsub.s32 2, %v12143_v12  ;;  %v10797_v61 = vld [vmem:[%s13626_s2 + $0x520] sm:$0xff]  }
 0x10e   : > { %v9323_v57 = vpop.f32.mrb[19].mxu1  ;;  %9651 = vmatprep.subr.bf16.mxu1 %v10785_v15 }
 0x10f   : > { %v12255_v60 = vadd.f32 %v9323_v57, %v9322_v55  ;;  %9740 = vmatpush3.bf16.msra.mxu0 %v10786_v26  ;;  %v10802_v26 = vld [vmem:[%s13626_s2 + $0x468] sm:$0xff]  }
 0x110   : > { %4007 = vmatmul.mubr.bf16.gmra.mrb[116].mxu1 %v8656_v23  ;;  %9741 = vmatprep.subr.bf16.mxu0 %v10788_v30 }
 0x111   : > { %9652 = vmatpush3.bf16.msra.mxu1 %v10787_v29  ;;  %4369 = vmatprep.mubr.bf16.mxu1 %v10794_v53  ;;  %v8758_v53 = vld [vmem:[%s11225_s24 + $0x278] sm:$0x7] }
 0x112   : > { %9653 = vmatprep.subr.bf16.mxu1 %v10789_v37  ;;  %v8752_v37 = vld [vmem:[%s11225_s24 + $0x248] sm:$0x8] }
 0x113   : > { %v9325_v44 = vpop.f32.mrb[20].mxu1  ;;  %9742 = vmatpush3.bf16.msra.mxu0 %v10790_v40  ;;  %v8754_v40 = vld [vmem:[%s11225_s24 + $0x254] sm:$0x7] }
 0x114   : > { %v9326_v11 = vpop.f32.mrb[21].mxu1  ;;  %9743 = vmatprep.subr.bf16.mxu0 %v10795_v62  ;;  %v8776_v62 = vrot.slane %v8752_v37, 11 }
 0x115   : > { %v12264_v5 = vadd.f32 %v9326_v11, %v9325_v44  ;;  %v9328_v18 = vpop.f32.mrb[22].mxu1  ;;  %9654 = vmatpush3.bf16.msra.mxu1 %v10791_v45 }
 0x116   : > { %v9329_v33 = vpop.f32.mrb[23].mxu1  ;;  %9687 = vmatprep.subr.bf16.mxu1 %v10796_v58 }
 0x117   : > { %v12285_v31 = vadd.f32 %v9329_v33, %v9328_v18  ;;  %9744 = vmatpush3.bf16.msra.mxu0 %v10797_v61  ;;  %v12340_v18 = vrot.slane %v728_v1, %v740_v52  ;;  %v4585_v61 = vrot.slane %v8758_v53, 7  ;;  %v10807_v1 = vld [vmem:[%s13626_s2 + $0x4b0] sm:$0xff]   ;;  %v10806_v53 = vld [vmem:[%s11225_s24 + $0x1f8] ss:$36 sps:$4 sm:$0xff]  }
 0x118   : > { %4370 = vmatmul.mubr.bf16.vlgmr.msra.gmra.mrb[120].mxu1 %v10792_v32  ;;  %9745 = vmatprep.subr.bf16.mxu0 %v10799_v27 }
 0x119   : > { %v1156_v13 = vpop.f32.mrb[0].mxu0  ;;  %9688 = vmatpush3.bf16.msra.mxu1 %v10798_v0  ;;  %v10803_v0 = vld [vmem:[%s11225_s24 + $0x1fc] ss:$36 sps:$4 sm:$0xff]  }
 0x11a   : > { %v1158_v28 = vpop.f32.mrb[1].mxu0  ;;  %v1157_v21 = vadd.f32 %v1156_v13, %v12324_v6  ;;  %9689 = vmatprep.subr.bf16.mxu1 %v10800_v7  ;;  %4377 = vmatprep.mubr.bf16.mxu1 %v10803_v0 }
 0x11b   : > { %v1160_v35 = vpop.f32.mrb[2].mxu0  ;;  %v9331_v41 = vpop.f32.mrb[24].mxu1  ;;  %v1159_v23 = vadd.f32 %v1158_v28, %v12331_v9  ;;  %9746 = vmatpush3.bf16.msra.mxu0 %v10801_v14  ;;  %v8762_v14 = vld [vmem:[%s11225_s24 + $0x29c] sm:$0x7] }
 0x11c   : > { %v1162_v39 = vpop.f32.mrb[3].mxu0  ;;  %v9332_v47 = vpop.f32.mrb[25].mxu1  ;;  %v1161_v29 = vadd.f32 %v1160_v35, %v12324_v6  ;;  %v1230_v32 = vadd.f32 %v12068_v20, %v1157_v21  ;;  %v10805_v20 = vld [vmem:[%s13626_s2 + $0x570] sm:$0xff]  }
 0x11d   : > { %v12300_v55 = vadd.f32 %v9332_v47, %v9331_v41  ;;  %v9334_v44 = vpop.f32.mrb[26].mxu1  ;;  %v1163_v33 = vadd.f32 %v1162_v39, %v12331_v9  ;;  %v8756_v41 = vld [vmem:[%s11225_s24 + $0x26c] sm:$0x8]  ;;  %v1232_v35 = vadd.f32 %v12075_v24, %v1159_v23  ;;  %9690 = vmatpush3.bf16.msra.mxu1 %v10802_v26  ;;  %v8764_v21 = vld [vmem:[%s11225_s24 + $0x2b4] sm:$0x8]  ;;  %9747 = vmatprep.subr.bf16.mxu0 %v10805_v20 }
 0x11e   : > { %v9335_v11 = vpop.f32.mrb[27].mxu1  ;;  %v1234_v39 = vadd.f32 %v12085_v36, %v1161_v29  ;;  %v1405_v24 = vmax.f32 %v1230_v32, 0.0  ;;  %v8760_v36 = vld [vmem:[%s11225_s24 + $0x290] sm:$0x8]  ;;  %9691 = vmatprep.subr.bf16.mxu1 %v10807_v1  ;;  %v8782_v32 = vrot.slane %v8764_v21, 11  ;;  %v10813_v1 = vld [vmem:[%s13626_s2 + $0x478] sm:$0xff]  }
 0x11f   : > { %v12320_v3 = vadd.f32 %v9335_v11, %v9334_v44  ;;  %v4577_v44 = vrot.slane %v8754_v40, 7  ;;  %v1406_v11 = vmax.f32 %v1232_v35, 0.0  ;;  %v8780_v23 = vrot.slane %v8760_v36, 11  ;;  %v8766_v40 = vld [vmem:[%s11225_s24 + $0x2c0] sm:$0x7] }
 0x120   : > { %v1408_v27 = vmax.f32 %v1234_v39, 0.0  ;;  %v1429_v26 = vmin.f32 %v1405_v24, 6.0  ;;  %v4601_v35 = vrot.slane %v8766_v40, 7  ;;  %4378 = vmatmul.mubr.bf16.gmra.mrb[124].mxu1 %v10806_v53  ;;  %v10809_v24 = vld [vmem:[%s13626_s2 + $0x470] sm:$0xff]   ;;  %v10816_v40 = vld [vmem:[%s11225_s24 + $0x240] ss:$36 sps:$4 sm:$0xff]  }
 0x121   : > { %v1166_v57 = vpop.f32.mrb[4].mxu0  ;;  %v4578_v7 = vsel %vm11243_vm2, %v8776_v62, %v4577_v44  ;;  %v1430_v29 = vmin.f32 %v1406_v11, 6.0  ;;  %9692 = vmatpush3.bf16.msra.mxu1 %v10809_v24 }
 0x122   : > { %v1168_v63 = vpop.f32.mrb[5].mxu0  ;;  %v1167_v13 = vadd.f32 %v1166_v57, %v12324_v6  ;;  %v8778_v57 = vrot.slane %v8756_v41, 11 }
 0x123   : > { %v1170_v4 = vpop.f32.mrb[6].mxu0  ;;  %v12336_v15 = vpop.f32.mrb[28].mxu1  ;;  %v1169_v45 = vadd.f32 %v1168_v63, %v12331_v9  ;;  %v1236_v63 = vadd.f32 %v12095_v43, %v1163_v33  ;;  %v1432_v33 = vmin.f32 %v1408_v27, 6.0  ;;  %v10812_v27 = vld [vmem:[%s13626_s2 + $0x538] sm:$0xff]  }
 0x124   : > { %v1172_v10 = vpop.f32.mrb[7].mxu0  ;;  %v9338_v30 = vpop.f32.mrb[29].mxu1  ;;  %v1171_v28 = vadd.f32 %v1170_v4, %v12324_v6  ;;  %v1240_v4 = vadd.f32 %v12104_v54, %v1167_v13  ;;  %v4586_v43 = vsel %vm11243_vm2, %v8778_v57, %v4585_v61  ;;  %v10808_v54 = vld [vmem:[%s13626_s2 + $0x530] sm:$0xff]   ;;  %v4593_v13 = vrot.slane %v8762_v14, 7 }
 0x125   : > { %v1173_v47 = vadd.f32 %v1172_v10, %v12331_v9  ;;  %v12360_v58 = vpop.f32.mrb[30].mxu1  ;;  %v1409_v10 = vmax.f32 %v1236_v63, 0.0  ;;  %v8791_v37 = vcombine.low %v4578_v7, %v4586_v43  ;;  %v12382_v39 = vpack.c.bf16 %v1432_v33, %v1429_v26  ;;  %9748 = vmatpush3.bf16.msra.mxu0 %v10808_v54  ;;  %v8823_v7 = vld [vmem:[%s11225_s24 + $0x1e0] sm:$0xcc] }
 0x126   : > { %v1242_v62 = vadd.f32 %v12114_v56, %v1169_v45  ;;  %v1244_v44 = vadd.f32 %v12119_v8, %v1171_v28  ;;  %v4594_v57 = vsel %vm11243_vm2, %v8780_v23, %v4593_v13  ;;  %v4602_v61 = vsel %vm11243_vm2, %v8782_v32, %v4601_v35  ;;  %v10810_v45 = vld [vmem:[%s13626_s2 + $0x578] sm:$0xff]   ;;  %v10814_v33 = vld [vmem:[%s11225_s24 + $0x244] ss:$36 sps:$4 sm:$0xff]  }
 0x127   : > { %v1433_v41 = vmin.f32 %v1409_v10, 6.0  ;;  %10085 = vmatprep.mubr.msk.bf16.mxu0 %vm1109_vm3, %v8791_v37  ;;  %v1246_v63 = vadd.f32 %v12125_v59, %v1173_v47  ;;  %v9339_v0 = vadd.f32 %v9338_v30, %v12336_v15  ;;  %v8794_v20 = vcombine.low %v4594_v57, %v4602_v61  ;;  %9749 = vmatprep.subr.bf16.mxu0 %v10810_v45  ;;  %v8825_v10 = vld [vmem:[%s11225_s24 + $0x1ec] sm:$0x33]  ;;  %v10817_v32 = vld [vmem:[%s13626_s2 + $0x4c0] sm:$0xff]  }
 0x128   : > { %v1411_v11 = vmax.f32 %v1240_v4, 0.0  ;;  %v1311_v56 = vadd.f32 %v12264_v5, %v12340_v18  ;;  %v1303_v8 = vadd.f32 %v12246_v48, %v12340_v18  ;;  %v1412_v59 = vmax.f32 %v1242_v62, 0.0  ;;  %v10811_v5 = vld [vmem:[%s13626_s2 + $0x4b8] sm:$0xff]   ;;  %4385 = vmatprep.mubr.bf16.mxu1 %v10814_v33  ;;  %v10818_v62 = vld [vmem:[%s13626_s2 + $0x480] sm:$0xff]   ;;  %v10819_v61 = vld [vmem:[%s13626_s2 + $0x4c8] sm:$0xff]  }
 0x129   : > { %v12406_v15 = vadd.f32 %v12285_v31, %v12340_v18  ;;  %v12410_v30 = vadd.f32 %v12255_v60, %v12340_v18  ;;  %v12413_v28 = vadd.f32 %v9339_v0, %v12340_v18  ;;  %10086 = vmatmul.mubr.msk.bf16.gmra.mrb[20].mxu0 %vm1109_vm3, %v8794_v20  ;;  %v12421_v31 = vadd.f32 %v12300_v55, %v12340_v18  ;;  %v8819_v4 = vld [vmem:[%s11225_s24 + $0x1bc] sm:$0xcc]  ;;  %v1176_v57 = vpop.f32.mrb[8].mxu0 }
 0x12a   : > { %v1435_v48 = vmin.f32 %v1411_v11, 6.0  ;;  %v12425_v60 = vadd.f32 %v12320_v3, %v12340_v18  ;;  %v12427_v47 = vpack.c.bf16 %v1433_v41, %v1430_v29  ;;  %v1436_v36 = vmin.f32 %v1412_v59, 6.0  ;;  %9693 = vmatprep.subr.bf16.mxu1 %v10811_v5  ;;  %9750 = vmatpush3.bf16.msra.mxu0 %v10812_v27  ;;  %v8821_v3 = vld [vmem:[%s11225_s24 + $0x1c8] sm:$0x33]  ;;  %v1178_v24 = vpop.f32.mrb[9].mxu0 }
 0x12b   : > { %v1414_v55 = vmax.f32 %v1244_v44, 0.0  ;;  %9694 = vmatpush3.bf16.msra.mxu1 %v10813_v1  ;;  %v8851_v14 = vrot.slane %v8819_v4, 10  ;;  %v5023_v21 = vrot.slane %v8821_v3, 6  ;;  %v8853_v23 = vrot.slane %v8823_v7, 10  ;;  %v9341_v44 = vpop.f32.mrb[31].mxu1  ;;  %v1180_v5 = vpop.f32.mrb[10].mxu0 }
 0x12c   : > { %v5031_v26 = vrot.slane %v8825_v10, 6  ;;  %v1415_v29 = vmax.f32 %v1246_v63, 0.0  ;;  %4386 = vmatmul.mubr.bf16.gmra.mrb[128].mxu1 %v10816_v40  ;;  %9695 = vmatprep.subr.bf16.mxu1 %v10817_v32  ;;  %v9342_v63 = vadd.f32 %v9341_v44, %v12360_v58  ;;  %v1177_v0 = vadd.f32 %v1176_v57, %v12324_v6  ;;  %v9955_v20 = vpop.f32.mrb[32].mxu1  ;;  %v10820_v58 = vld [vmem:[%s13626_s2 + $0x488] sm:$0xff]   ;;  %v1182_v3 = vpop.f32.mrb[11].mxu0 }
 0x12d   : > { %v1438_v43 = vmin.f32 %v1414_v55, 6.0  ;;  %v5024_v37 = vsel %vm11663_vm6, %v8851_v14, %v5023_v21  ;;  %v1376_v45 = vadd.f32 %v9955_v20, %v1311_v56  ;;  %v1179_v59 = vadd.f32 %v1178_v24, %v12331_v9  ;;  %v8827_v4 = vld [vmem:[%s11225_s24 + $0x204] sm:$0xcc]  ;;  %v8829_v56 = vld [vmem:[%s11225_s24 + $0x210] sm:$0x33] }
 0x12e   : > { %v5032_v41 = vsel %vm11663_vm6, %v8853_v23, %v5031_v26  ;;  %v1439_v13 = vmin.f32 %v1415_v29, 6.0  ;;  %v1250_v27 = vadd.f32 %v12149_v17, %v1177_v0  ;;  %v8831_v10 = vld [vmem:[%s11225_s24 + $0x228] sm:$0xcc]  ;;  %v8833_v14 = vld [vmem:[%s11225_s24 + $0x234] sm:$0x33]  ;;  %v8855_v21 = vrot.slane %v8827_v4, 10 }
 0x12f   : > { %v12443_v54 = vpack.c.bf16 %v1438_v43, %v1435_v48  ;;  %v8867_v35 = vcombine.low %v5024_v37, %v5032_v41  ;;  %v8868_v53 = vcombine.high %v5024_v37, %v5032_v41  ;;  %9696 = vmatpush3.bf16.msra.mxu1 %v10818_v62  ;;  %v1367_v48 = vpop.f32.mrb[33].mxu1  ;;  %v1252_v7 = vadd.f32 %v12154_v16, %v1179_v59  ;;  %v10824_v37 = vld [vmem:[%s13626_s2 + $0x4d0] sm:$0xff]   ;;  %v10823_v32 = vld [vmem:[%s11225_s24 + $0x288] ss:$36 sps:$4 sm:$0xff]  }
 0x130   : > { %v12458_v11 = vpack.c.bf16 %v1439_v13, %v1436_v36  ;;  %9697 = vmatprep.subr.bf16.mxu1 %v10819_v61  ;;  %v1368_v1 = vadd.f32 %v1367_v48, %v1303_v8  ;;  %v1181_v36 = vadd.f32 %v1180_v5, %v12324_v6  ;;  %v9956_v55 = vpop.f32.mrb[34].mxu1  ;;  %v5039_v23 = vrot.slane %v8829_v56, 6  ;;  %v10821_v13 = vld [vmem:[%s11225_s24 + $0x28c] ss:$36 sps:$4 sm:$0xff]  }
 0x131   : > { %5333 = vmatprep.mubr.bf16.mxu0 %v8868_v53  ;;  %v1379_v43 = vadd.f32 %v9956_v55, %v12406_v15  ;;  %v1417_v26 = vmax.f32 %v1250_v27, 0.0  ;;  %v8857_v8 = vrot.slane %v8831_v10, 10  ;;  %v5047_v29 = vrot.slane %v8833_v14, 6  ;;  %v1370_v33 = vpop.f32.mrb[35].mxu1  ;;  %4393 = vmatprep.mubr.bf16.mxu1 %v10821_v13  ;;  %v1186_v24 = vpop.f32.mrb[12].mxu0 }
 0x132   : > { %5334 = vmatmul.mubr.bf16.vlgmr.msra.gmra.mrb[40].mxu0 %v8867_v35  ;;  %v1254_v17 = vadd.f32 %v12160_v19, %v1181_v36  ;;  %v1418_v40 = vmax.f32 %v1252_v7, 0.0  ;;  %v5040_v15 = vsel %vm11663_vm6, %v8855_v21, %v5039_v23  ;;  %v1183_v41 = vadd.f32 %v1182_v3, %v12331_v9  ;;  %v10825_v19 = vld [vmem:[%s13626_s2 + $0x490] sm:$0xff]   ;;  %v1188_v36 = vpop.f32.mrb[13].mxu0  ;;  %v10828_v3 = vld [vmem:[%s13626_s2 + $0x580] sm:$0xff]  }
 0x133   : > { %9698 = vmatpush3.bf16.msra.mxu1 %v10820_v58  ;;  %v12476_v16 = vpack.c.bf16 %v1379_v43, %v1376_v45  ;;  %v1441_v35 = vmin.f32 %v1417_v26, 6.0  ;;  %v5048_v62 = vsel %vm11663_vm6, %v8857_v8, %v5047_v29  ;;  %v1371_v44 = vadd.f32 %v1370_v33, %v12410_v30  ;;  %v9959_v58 = vpop.f32.mrb[36].mxu1  ;;  %v8835_v14 = vld [vmem:[%s11225_s24 + $0x24c] sm:$0xcc]  ;;  %v8841_v8 = vld [vmem:[%s11225_s24 + $0x27c] sm:$0x33]  ;;  %10089 = vmatprep.subr.bf16.mxu0 %v10828_v3 }
 0x134   : > { %v1420_v53 = vmax.f32 %v1254_v17, 0.0  ;;  %9699 = vmatprep.subr.bf16.mxu1 %v10824_v37  ;;  %v12489_v57 = vmin.f32 %v1418_v40, 6.0  ;;  %v8871_v61 = vcombine.high %v5040_v15, %v5048_v62  ;;  %v1256_v0 = vadd.f32 %v12166_v25, %v1183_v41  ;;  %4394 = vmatmul.mubr.bf16.gmra.mrb[132].mxu1 %v10823_v32  ;;  %v10826_v25 = vld [vmem:[%s13626_s2 + $0x4d8] sm:$0xff]   ;;  %v8839_v17 = vld [vmem:[%s11225_s24 + $0x270] sm:$0xcc] }
 0x135   : > { %v8870_v20 = vcombine.low %v5040_v15, %v5048_v62  ;;  %v12492_v59 = vpack.c.bf16 %v1371_v44, %v1368_v1  ;;  %v1187_v48 = vadd.f32 %v1186_v24, %v12324_v6  ;;  %v1330_v5 = vadd.f32 %v9342_v63, %v12340_v18  ;;  %v1383_v1 = vpop.f32.mrb[37].mxu1  ;;  %v1190_v63 = vpop.f32.mrb[14].mxu0  ;;  %v8735_v13 = vld [vmem:[%s11225_s24 + $0x1b0] sm:$0x88]  ;;  %10090 = vmatpush3.bf16.msra.mxu0 %v10828_v3  ;;  %v8849_v3 = vld [vmem:[%s11225_s24 + $0x2c4] sm:$0x33] }
 0x136   : > { %v1444_v45 = vmin.f32 %v1420_v53, 6.0  ;;  %5341 = vmatprep.mubr.bf16.mxu0 %v8871_v61  ;;  %v1421_v30 = vmax.f32 %v1256_v0, 0.0  ;;  %v1392_v27 = vadd.f32 %v9959_v58, %v12413_v28  ;;  %v1189_v4 = vadd.f32 %v1188_v36, %v12331_v9  ;;  %v10827_v28 = vld [vmem:[%s13626_s2 + $0x498] sm:$0xff]   ;;  %v9960_v56 = vpop.f32.mrb[38].mxu1  ;;  %v1192_v21 = vpop.f32.mrb[15].mxu0 }
 0x137   : > { %9700 = vmatpush3.bf16.msra.mxu1 %v10825_v19  ;;  %v1260_v55 = vadd.f32 %v12179_v34, %v1187_v48  ;;  %v1384_v18 = vadd.f32 %v1383_v1, %v12421_v31  ;;  %v1191_v34 = vadd.f32 %v1190_v63, %v12324_v6  ;;  %v1395_v10 = vadd.f32 %v9960_v56, %v1330_v5  ;;  %v8837_v31 = vld [vmem:[%s11225_s24 + $0x258] sm:$0x33]  ;;  %v1386_v41 = vpop.f32.mrb[39].mxu1  ;;  %v8739_v0 = vld [vmem:[%s11225_s24 + $0x1d4] sm:$0x88] }
 0x138   : > { %v12509_v7 = vpack.c.bf16 %v1444_v45, %v1441_v35  ;;  %v1445_v43 = vmin.f32 %v1421_v30, 6.0  ;;  %9701 = vmatprep.subr.bf16.mxu1 %v10826_v25  ;;  %v1262_v26 = vadd.f32 %v12185_v50, %v1189_v4  ;;  %v8859_v29 = vrot.slane %v8835_v14, 10  ;;  %v10829_v50 = vld [vmem:[%s13626_s2 + $0x588] sm:$0xff]   ;;  %v8737_v53 = vld [vmem:[%s11225_s24 + $0x1bc] sm:$0x77] }
 0x139   : > { %v1423_v23 = vmax.f32 %v1260_v55, 0.0  ;;  %v1193_v33 = vadd.f32 %v1192_v21, %v12331_v9  ;;  %v1264_v37 = vadd.f32 %v12191_v49, %v1191_v34  ;;  %v12519_v40 = vpack.c.bf16 %v1395_v10, %v1392_v27  ;;  %v10830_v49 = vld [vmem:[%s13626_s2 + $0x590] sm:$0xff]   ;;  %10091 = vmatprep.subr.bf16.mxu0 %v10829_v50  ;;  %v10831_v5 = vld [vmem:[%s13626_s2 + $0x598] sm:$0xff]   ;;  %v8845_v63 = vld [vmem:[%s11225_s24 + $0x2a0] sm:$0x33] }
 0x13a   : > { %5342 = vmatmul.mubr.bf16.gmra.mrb[44].mxu0 %v8870_v20  ;;  %v5055_v6 = vrot.slane %v8837_v31, 6  ;;  %v8861_v15 = vrot.slane %v8839_v17, 10  ;;  %v1424_v19 = vmax.f32 %v1262_v26, 0.0  ;;  %v5063_v9 = vrot.slane %v8841_v8, 6  ;;  %v8741_v20 = vld [vmem:[%s11225_s24 + $0x1e0] sm:$0x77] }
 0x13b   : > { %9702 = vmatpush3.bf16.msra.mxu1 %v10827_v28  ;;  %v1447_v32 = vmin.f32 %v1423_v23, 6.0  ;;  %v1266_v35 = vadd.f32 %v12197_v51, %v1193_v33  ;;  %v1426_v62 = vmax.f32 %v1264_v37, 0.0  ;;  %v1387_v61 = vadd.f32 %v1386_v41, %v12425_v60  ;;  %10092 = vmatpush3.bf16.msra.mxu0 %v10829_v50  ;;  %v8843_v28 = vld [vmem:[%s11225_s24 + $0x294] sm:$0xcc]  ;;  %v8745_v33 = vld [vmem:[%s11225_s24 + $0x204] sm:$0x77] }
 0x13c   : > { %v5056_v44 = vsel %vm11663_vm6, %v8859_v29, %v5055_v6  ;;  %v8767_v24 = vrot.slane %v8735_v13, 11  ;;  %v1448_v45 = vmin.f32 %v1424_v19, 6.0  ;;  %v5064_v51 = vsel %vm11663_vm6, %v8861_v15, %v5063_v9  ;;  %10093 = vmatprep.subr.bf16.mxu0 %v10830_v49  ;;  %v8847_v56 = vld [vmem:[%s11225_s24 + $0x2b8] sm:$0xcc] }
 0x13d   : > { %v1427_v48 = vmax.f32 %v1266_v35, 0.0  ;;  %v4541_v58 = vrot.slane %v8737_v53, 7  ;;  %v1450_v30 = vmin.f32 %v1426_v62, 6.0  ;;  %v8874_v60 = vcombine.high %v5056_v44, %v5064_v51  ;;  %v8743_v23 = vld [vmem:[%s11225_s24 + $0x1f8] sm:$0x88] }
 0x13e   : > { %v12540_v27 = vpack.c.bf16 %v1387_v61, %v1384_v18  ;;  %v8769_v25 = vrot.slane %v8739_v0, 11  ;;  %v4549_v55 = vrot.slane %v8741_v20, 7  ;;  %v8873_v4 = vcombine.low %v5056_v44, %v5064_v51  ;;  %v8747_v37 = vld [vmem:[%s11225_s24 + $0x21c] sm:$0x88]  ;;  %v8822_v62 = vld [vmem:[%s11225_s24 + $0x1d0] sm:$0x3] }
 0x13f   : > { %v1451_v36 = vmin.f32 %v1427_v48, 6.0  ;;  %v4542_v1 = vsel %vm11243_vm2, %v8767_v24, %v4541_v58  ;;  %5349 = vmatprep.mubr.bf16.mxu0 %v8874_v60  ;;  %v12549_v18 = vpack.c.bf16 %v1445_v43, %v12489_v57  ;;  %v12551_v34 = vpack.c.bf16 %v1450_v30, %v1447_v32  ;;  %10094 = vmatpush3.bf16.msra.mxu0 %v10830_v49  ;;  %v8749_v43 = vld [vmem:[%s11225_s24 + $0x228] sm:$0x77]  ;;  %v8820_v49 = vld [vmem:[%s11225_s24 + $0x1c4] sm:$0xc] }
 0x140   : > { %v4550_v10 = vsel %vm11243_vm2, %v8769_v25, %v4549_v55  ;;  %v8863_v14 = vrot.slane %v8843_v28, 10  ;;  %v5071_v31 = vrot.slane %v8845_v63, 6  ;;  %v8865_v21 = vrot.slane %v8847_v56, 10  ;;  %10095 = vmatprep.subr.bf16.mxu0 %v10831_v5  ;;  %v8824_v0 = vld [vmem:[%s11225_s24 + $0x1e8] sm:$0xc] }
 0x141   : > { %v8783_v17 = vcombine.low %v4542_v1, %v4550_v10  ;;  %v8784_v8 = vcombine.high %v4542_v1, %v4550_v10  ;;  %v5079_v29 = vrot.slane %v8849_v3, 6  ;;  %v8771_v6 = vrot.slane %v8743_v23, 11  ;;  %v8826_v20 = vld [vmem:[%s11225_s24 + $0x1f4] sm:$0x3]  ;;  %v8751_v30 = vld [vmem:[%s11225_s24 + $0x240] sm:$0x88] }
 0x142   : > { %5350 = vmatmul.mubr.bf16.gmra.mrb[48].mxu0 %v8873_v4  ;;  %v5072_v57 = vsel %vm11663_vm6, %v8863_v14, %v5071_v31  ;;  %v4557_v15 = vrot.slane %v8745_v33, 7  ;;  %v8773_v41 = vrot.slane %v8747_v37, 11  ;;  %v12561_v13 = vpack.c.bf16 %v1451_v36, %v1448_v45  ;;  %v8753_v60 = vld [vmem:[%s11225_s24 + $0x24c] sm:$0x77]  ;;  %v8755_v36 = vld [vmem:[%s11225_s24 + $0x264] sm:$0x88] }
 0x143   : > { %4851 = vmatprep.mubr.bf16.mxu1 %v8784_v8  ;;  %v5080_v50 = vsel %vm11663_vm6, %v8865_v21, %v5079_v29  ;;  %v4565_v32 = vrot.slane %v8749_v43, 7  ;;  %10096 = vmatpush3.bf16.msra.mxu0 %v10831_v5  ;;  %v8852_v24 = vrot.slane %v8820_v49, 10  ;;  %v5027_v45 = vrot.slane %v8822_v62, 6  ;;  %v8757_v1 = vld [vmem:[%s11225_s24 + $0x270] sm:$0x77] }
 0x144   : > { %4852 = vmatmul.mubr.bf16.vlgmr.msra.gmra.mrb[136].mxu1 %v8783_v17  ;;  %v8877_v9 = vcombine.high %v5072_v57, %v5080_v50  ;;  %v4558_v35 = vsel %vm11243_vm2, %v8771_v6, %v4557_v15  ;;  %v8876_v53 = vcombine.low %v5072_v57, %v5080_v50  ;;  %v8854_v48 = vrot.slane %v8824_v0, 10  ;;  %v8828_v3 = vld [vmem:[%s11225_s24 + $0x20c] sm:$0xc]  ;;  %v8830_v10 = vld [vmem:[%s11225_s24 + $0x218] sm:$0x3] }
 0x145   : > { %v4566_v61 = vsel %vm11243_vm2, %v8773_v41, %v4565_v32  ;;  %v5035_v58 = vrot.slane %v8826_v20, 6  ;;  %v5028_v25 = vsel %vm11663_vm6, %v8852_v24, %v5027_v45  ;;  %v8775_v5 = vrot.slane %v8751_v30, 11  ;;  %v8832_v21 = vld [vmem:[%s11225_s24 + $0x230] sm:$0xc]  ;;  %v8834_v23 = vld [vmem:[%s11225_s24 + $0x23c] sm:$0x3] }
 0x146   : > { %5357 = vmatprep.mubr.bf16.mxu0 %v8877_v9  ;;  %v8787_v51 = vcombine.high %v4558_v35, %v4566_v61  ;;  %v4573_v55 = vrot.slane %v8753_v60, 7  ;;  %v8786_v4 = vcombine.low %v4558_v35, %v4566_v61  ;;  %v8777_v63 = vrot.slane %v8755_v36, 11  ;;  %v8836_v37 = vld [vmem:[%s11225_s24 + $0x254] sm:$0xc]  ;;  %v8838_v6 = vld [vmem:[%s11225_s24 + $0x260] sm:$0x3] }
 0x147   : > { %v5036_v28 = vsel %vm11663_vm6, %v8854_v48, %v5035_v58  ;;  %v4581_v56 = vrot.slane %v8757_v1, 7  ;;  %v5043_v17 = vrot.slane %v8830_v10, 6  ;;  %v8858_v29 = vrot.slane %v8832_v21, 10  ;;  %v8840_v15 = vld [vmem:[%s11225_s24 + $0x278] sm:$0xc] }
 0x148   : > { %4859 = vmatprep.mubr.bf16.mxu1 %v8787_v51  ;;  %v8869_v14 = vcombine.low %v5028_v25, %v5036_v28  ;;  %v4574_v31 = vsel %vm11243_vm2, %v8775_v5, %v4573_v55  ;;  %v5051_v33 = vrot.slane %v8834_v23, 6  ;;  %v8842_v41 = vld [vmem:[%s11225_s24 + $0x284] sm:$0x3]  ;;  %v8860_v50 = vrot.slane %v8836_v37, 10  ;;  %v8759_v49 = vld [vmem:[%s11225_s24 + $0x288] sm:$0x88] }
 0x149   : > { %v4582_v8 = vsel %vm11243_vm2, %v8777_v63, %v4581_v56  ;;  %v5059_v9 = vrot.slane %v8838_v6, 6  ;;  %v8862_v35 = vrot.slane %v8840_v15, 10  ;;  %v8761_v0 = vld [vmem:[%s11225_s24 + $0x294] sm:$0x77]  ;;  %v8763_v20 = vld [vmem:[%s11225_s24 + $0x2ac] sm:$0x88] }
 0x14a   : > { %5358 = vmatmul.mubr.bf16.gmra.mrb[52].mxu0 %v8876_v53  ;;  %v8790_v57 = vcombine.high %v4574_v31, %v4582_v8  ;;  %v5067_v53 = vrot.slane %v8842_v41, 6  ;;  %v8765_v24 = vld [vmem:[%s11225_s24 + $0x2b8] sm:$0x77]  ;;  %v8779_v58 = vrot.slane %v8759_v49, 11  ;;  %v4589_v30 = vrot.slane %v8761_v0, 7 }
 0x14b   : > { %v9367_v26 = vpop.f32.mrb[40].mxu1  ;;  %10097 = vmatprep.mubr.msk.bf16.mxu0 %vm1109_vm3, %v8869_v14  ;;  %v5060_v51 = vsel %vm11663_vm6, %v8860_v50, %v5059_v9  ;;  %v8844_v60 = vld [vmem:[%s11225_s24 + $0x29c] sm:$0xc]  ;;  %v8846_v25 = vld [vmem:[%s11225_s24 + $0x2a8] sm:$0x3]  ;;  %v8789_v36 = vcombine.low %v4574_v31, %v4582_v8  ;;  %v8781_v5 = vrot.slane %v8763_v20, 11 }
 0x14c   : > { %v9368_v19 = vpop.f32.mrb[41].mxu1  ;;  %4860 = vmatmul.mubr.bf16.gmra.mrb[140].mxu1 %v8786_v4  ;;  %v5068_v48 = vsel %vm11663_vm6, %v8862_v35, %v5067_v53  ;;  %v4597_v55 = vrot.slane %v8765_v24, 7  ;;  %v8848_v4 = vld [vmem:[%s11225_s24 + $0x2c0] sm:$0xc]  ;;  %v8850_v28 = vld [vmem:[%s11225_s24 + $0x2cc] sm:$0x3]  ;;  %v4590_v63 = vsel %vm11243_vm2, %v8779_v58, %v4589_v30 }
 0x14d   : > { %v12569_v44 = vadd.f32 %v9368_v19, %v9367_v26  ;;  %v8856_v26 = vrot.slane %v8828_v3, 10  ;;  %v9370_v32 = vpop.f32.mrb[42].mxu1  ;;  %v5052_v19 = vsel %vm11663_vm6, %v8858_v29, %v5051_v33  ;;  %4867 = vmatprep.mubr.bf16.mxu1 %v8790_v57  ;;  %v8875_v1 = vcombine.low %v5060_v51, %v5068_v48 }
 0x14e   : > { %v9371_v62 = vpop.f32.mrb[43].mxu1  ;;  %v8864_v56 = vrot.slane %v8844_v60, 10  ;;  %v5075_v3 = vrot.slane %v8846_v25, 6  ;;  %v8866_v10 = vrot.slane %v8848_v4, 10  ;;  %v4598_v21 = vsel %vm11243_vm2, %v8781_v5, %v4597_v55 }
 0x14f   : > { %v5044_v43 = vsel %vm11663_vm6, %v8856_v26, %v5043_v17  ;;  %v9372_v45 = vadd.f32 %v9371_v62, %v9370_v32  ;;  %v5083_v31 = vrot.slane %v8850_v28, 6  ;;  %v8793_v26 = vcombine.high %v4590_v63, %v4598_v21 }
 0x150   : > { %v8872_v61 = vcombine.low %v5044_v43, %v5052_v19  ;;  %v5076_v17 = vsel %vm11663_vm6, %v8864_v56, %v5075_v3  ;;  %v8792_v32 = vcombine.low %v4590_v63, %v4598_v21 }
 0x151   : > { %v5084_v33 = vsel %vm11663_vm6, %v8866_v10, %v5083_v31 }
 0x152   : > { %10098 = vmatmul.mubr.msk.bf16.vlgmr.msra.gmra.mrb[16].mxu0 %vm1109_vm3, %v8872_v61  ;;  %v8878_v6 = vcombine.low %v5076_v17, %v5084_v33 }
 0x153   : > { %v9373_v14 = vpop.f32.mrb[44].mxu1  ;;  %10101 = vmatprep.mubr.msk.bf16.mxu0 %vm1109_vm3, %v8875_v1 }
 0x154   : > { %v9374_v23 = vpop.f32.mrb[45].mxu1  ;;  %4868 = vmatmul.mubr.bf16.gmra.mrb[144].mxu1 %v8789_v36 }
 0x155   : > { %v9375_v8 = vadd.f32 %v9374_v23, %v9373_v14  ;;  %v9376_v29 = vpop.f32.mrb[46].mxu1  ;;  %4875 = vmatprep.mubr.bf16.mxu1 %v8793_v26 }
 0x156   : > { %v9377_v37 = vpop.f32.mrb[47].mxu1 }
 0x157   : > { %v9378_v57 = vadd.f32 %v9377_v37, %v9376_v29 }
 0x15a   : > { %10102 = vmatmul.mubr.msk.bf16.gmra.mrb[20].mxu0 %vm1109_vm3, %v8878_v6 }
 0x15b   : > { %v9379_v43 = vpop.f32.mrb[48].mxu1 }
 0x15c   : > { %v9380_v15 = vpop.f32.mrb[49].mxu1  ;;  %4876 = vmatmul.mubr.bf16.gmra.mrb[148].mxu1 %v8792_v32 }
 0x15d   : > { %v9381_v22 = vadd.f32 %v9380_v15, %v9379_v43  ;;  %v9382_v41 = vpop.f32.mrb[50].mxu1  ;;  %5698 = vmatprep.mubr.bf16.mxu1 %v11090_v2 }
 0x15e   : > { %v9383_v50 = vpop.f32.mrb[51].mxu1 }
 0x15f   : > { %v9384_v19 = vadd.f32 %v9383_v50, %v9382_v41 }
 0x163   : > { %v9385_v9 = vpop.f32.mrb[52].mxu1 }
 0x164   : > { %v9386_v35 = vpop.f32.mrb[53].mxu1 }
 0x165   : > { %v9387_v53 = vadd.f32 %v9386_v35, %v9385_v9  ;;  %v9388_v49 = vpop.f32.mrb[54].mxu1 }
 0x166   : > { %v9389_v42 = vpop.f32.mrb[55].mxu1 }
 0x167   : > { %v9390_v62 = vadd.f32 %v9389_v42, %v9388_v49 }
 0x16b   : > { %v9415_v61 = vpop.f32.mrb[56].mxu1 }
 0x16c   : > { %v9416_v0 = vpop.f32.mrb[57].mxu1 }
 0x16d   : > { %v9417_v20 = vadd.f32 %v9416_v0, %v9415_v61  ;;  %v9418_v24 = vpop.f32.mrb[58].mxu1 }
 0x16e   : > { %v9419_v51 = vpop.f32.mrb[59].mxu1 }
 0x16f   : > { %v10326_v48 = vadd.f32 %v9417_v20, %v12569_v44  ;;  %v9420_v58 = vadd.f32 %v9419_v51, %v9418_v24 }
 0x171   : > { %v10344_v60 = vadd.f32 %v9420_v58, %v9372_v45 }
 0x173   : > { %v9421_v30 = vpop.f32.mrb[60].mxu1 }
 0x174   : > { %v9422_v25 = vpop.f32.mrb[61].mxu1 }
 0x175   : > { %v9423_v36 = vadd.f32 %v9422_v25, %v9421_v30  ;;  %v9424_v1 = vpop.f32.mrb[62].mxu1 }
 0x176   : > { %v9425_v5 = vpop.f32.mrb[63].mxu1 }
 0x177   : > { %v10317_v55 = vadd.f32 %v9423_v36, %v9375_v8  ;;  %v9426_v4 = vadd.f32 %v9425_v5, %v9424_v1 }
 0x179   : > { %v10335_v28 = vadd.f32 %v9426_v4, %v9378_v57  ;;  %v9511_v56 = vpop.f32.mrb[24].mxu0 }
 0x17a   : > { %v9512_v14 = vpop.f32.mrb[25].mxu0 }
 0x17b   : > { %v9427_v63 = vpop.f32.mrb[64].mxu1  ;;  %v9513_v31 = vadd.f32 %v9512_v14, %v9511_v56  ;;  %v9514_v23 = vpop.f32.mrb[26].mxu0 }
 0x17c   : > { %v9428_v3 = vpop.f32.mrb[65].mxu1  ;;  %v9515_v29 = vpop.f32.mrb[27].mxu0 }
 0x17d   : > { %v9429_v10 = vadd.f32 %v9428_v3, %v9427_v63  ;;  %v9430_v21 = vpop.f32.mrb[66].mxu1  ;;  %v9516_v45 = vadd.f32 %v9515_v29, %v9514_v23 }
 0x17e   : > { %v9431_v26 = vpop.f32.mrb[67].mxu1 }
 0x17f   : > { %v10362_v44 = vadd.f32 %v9429_v10, %v9381_v22  ;;  %v9432_v17 = vadd.f32 %v9431_v26, %v9430_v21 }
 0x181   : > { %v10380_v33 = vadd.f32 %v9432_v17, %v9384_v19  ;;  %v9517_v6 = vpop.f32.mrb[28].mxu0 }
 0x182   : > { %v9518_v15 = vpop.f32.mrb[29].mxu0 }
 0x183   : > { %v9433_v37 = vpop.f32.mrb[68].mxu1  ;;  %v9519_v41 = vadd.f32 %v9518_v15, %v9517_v6  ;;  %v9520_v50 = vpop.f32.mrb[30].mxu0 }
 0x184   : > { %v9434_v43 = vpop.f32.mrb[69].mxu1  ;;  %v9521_v49 = vpop.f32.mrb[31].mxu0 }
 0x185   : > { %v9435_v8 = vadd.f32 %v9434_v43, %v9433_v37  ;;  %v9436_v57 = vpop.f32.mrb[70].mxu1  ;;  %v9522_v42 = vadd.f32 %v9521_v49, %v9520_v50 }
 0x186   : > { %v9437_v32 = vpop.f32.mrb[71].mxu1 }
 0x187   : > { %v10353_v9 = vadd.f32 %v9435_v8, %v9387_v53  ;;  %v9438_v35 = vadd.f32 %v9437_v32, %v9436_v57 }
 0x189   : > { %v10371_v61 = vadd.f32 %v9438_v35, %v9390_v62  ;;  %v9523_v22 = vpop.f32.mrb[32].mxu0 }
 0x18a   : > { %v9524_v51 = vpop.f32.mrb[33].mxu0 }
 0x18b   : > { %v9463_v0 = vpop.f32.mrb[72].mxu1  ;;  %v9525_v58 = vadd.f32 %v9524_v51, %v9523_v22  ;;  %v9526_v30 = vpop.f32.mrb[34].mxu0 }
 0x18c   : > { %v9464_v20 = vpop.f32.mrb[73].mxu1  ;;  %v9527_v5 = vpop.f32.mrb[35].mxu0 }
 0x18d   : > { %v9465_v24 = vadd.f32 %v9464_v20, %v9463_v0  ;;  %v9466_v19 = vpop.f32.mrb[74].mxu1  ;;  %v9528_v4 = vadd.f32 %v9527_v5, %v9526_v30  ;;  %v10832_v0 = vld [vmem:[%s13628_s4] ss:$16 sps:$4 sm:$0xff]  }
 0x18e   : > { %v9467_v25 = vpop.f32.mrb[75].mxu1  ;;  %v10835_v30 = vld [vmem:[%s13628_s4 + $0x20] ss:$16 sps:$4 sm:$0xff]  }
 0x18f   : > { %v10327_v36 = vadd.f32 %v10326_v48, %v9465_v24  ;;  %v9468_v1 = vadd.f32 %v9467_v25, %v9466_v19  ;;  %v10838_v5 = vld [vmem:[%s13628_s4 + $0x40] ss:$16 sps:$4 sm:$0xff]  }
 0x191   : > { %v10345_v63 = vadd.f32 %v10344_v60, %v9468_v1  ;;  %v10328_v56 = vadd.f32 %v10327_v36, %v9513_v31  ;;  %v9529_v10 = vpop.f32.mrb[36].mxu0  ;;  %v10840_v1 = vld [vmem:[%s13628_s4 + $0x44] ss:$16 sps:$4 sm:$0xff]  }
 0x192   : > { %v9530_v21 = vpop.f32.mrb[37].mxu0 }
 0x193   : > { %v9469_v53 = vpop.f32.mrb[76].mxu1  ;;  %v10346_v3 = vadd.f32 %v10345_v63, %v9516_v45  ;;  %v9531_v26 = vadd.f32 %v9530_v21, %v9529_v10  ;;  %v9532_v17 = vpop.f32.mrb[38].mxu0 }
 0x194   : > { %v9470_v14 = vpop.f32.mrb[77].mxu1  ;;  %v9533_v43 = vpop.f32.mrb[39].mxu0 }
 0x195   : > { %v9471_v62 = vadd.f32 %v9470_v14, %v9469_v53  ;;  %v9472_v23 = vpop.f32.mrb[78].mxu1  ;;  %v9534_v8 = vadd.f32 %v9533_v43, %v9532_v17  ;;  %v10846_v17 = vld [vmem:[%s13628_s4 + $0x84] ss:$16 sps:$4 sm:$0xff]  }
 0x196   : > { %v9473_v29 = vpop.f32.mrb[79].mxu1 }
 0x197   : > { %v10318_v37 = vadd.f32 %v10317_v55, %v9471_v62  ;;  %v9474_v6 = vadd.f32 %v9473_v29, %v9472_v23  ;;  %v10834_v55 = vld [vmem:[%s13628_s4 + $0x4] ss:$16 sps:$4 sm:$0xff]   ;;  %v10841_v62 = vld [vmem:[%s13628_s4 + $0x60] ss:$16 sps:$4 sm:$0xff]  }
 0x198   : > { %5666 = vmatprep.subr.bf16.mxu1 %v10834_v55  ;;  %v10844_v29 = vld [vmem:[%s13628_s4 + $0x80] ss:$16 sps:$4 sm:$0xff]  }
 0x199   : > { %v10336_v48 = vadd.f32 %v10335_v28, %v9474_v6  ;;  %v10319_v15 = vadd.f32 %v10318_v37, %v9519_v41  ;;  %5667 = vmatpush1.bf16.msra.mxu1 %v10832_v0 }
 0x19b   : > { %v9475_v57 = vpop.f32.mrb[80].mxu1  ;;  %v10337_v50 = vadd.f32 %v10336_v48, %v9522_v42 }
 0x19c   : > { %v9476_v60 = vpop.f32.mrb[81].mxu1 }
 0x19d   : > { %v9477_v31 = vadd.f32 %v9476_v60, %v9475_v57  ;;  %v9478_v32 = vpop.f32.mrb[82].mxu1 }
 0x19e   : > { %v9479_v45 = vpop.f32.mrb[83].mxu1 }
 0x19f   : > { %v10363_v35 = vadd.f32 %v10362_v44, %v9477_v31  ;;  %v9480_v49 = vadd.f32 %v9479_v45, %v9478_v32  ;;  %v10837_v44 = vld [vmem:[%s13628_s4 + $0x24] ss:$16 sps:$4 sm:$0xff]  }
 0x1a0   : > { %5668 = vmatprep.subr.bf16.mxu1 %v10837_v44  ;;  %v10852_v32 = vld [vmem:[%s13628_s4 + $0xc4] ss:$16 sps:$4 sm:$0xff]  }
 0x1a1   : > { %v10381_v22 = vadd.f32 %v10380_v33, %v9480_v49  ;;  %v10364_v20 = vadd.f32 %v10363_v35, %v9525_v58  ;;  %5669 = vmatpush1.bf16.msra.mxu1 %v10835_v30  ;;  %v10850_v35 = vld [vmem:[%s13628_s4 + $0xc0] ss:$16 sps:$4 sm:$0xff]  }
 0x1a2   : > { %5670 = vmatprep.subr.bf16.mxu1 %v10840_v1 }
 0x1a3   : > { %v10382_v28 = vadd.f32 %v10381_v22, %v9528_v4  ;;  %v9481_v41 = vpop.f32.mrb[84].mxu1 }
 0x1a4   : > { %v9482_v42 = vpop.f32.mrb[85].mxu1 }
 0x1a5   : > { %v9483_v24 = vadd.f32 %v9482_v42, %v9481_v41  ;;  %v9484_v51 = vpop.f32.mrb[86].mxu1  ;;  %5671 = vmatpush1.bf16.msra.mxu1 %v10838_v5  ;;  %v10853_v42 = vld [vmem:[%s13628_s4 + $0xe0] ss:$16 sps:$4 sm:$0xff]  }
 0x1a6   : > { %v9485_v19 = vpop.f32.mrb[87].mxu1 }
 0x1a7   : > { %v10354_v25 = vadd.f32 %v10353_v9, %v9483_v24  ;;  %v9486_v36 = vadd.f32 %v9485_v19, %v9484_v51  ;;  %v10858_v51 = vld [vmem:[%s13628_s4 + $0xc] ss:$16 sps:$4 sm:$0xff]  }
 0x1a9   : > { %v10372_v33 = vadd.f32 %v10371_v61, %v9486_v36  ;;  %v10355_v58 = vadd.f32 %v10354_v25, %v9531_v26  ;;  %v10843_v61 = vld [vmem:[%s13628_s4 + $0x64] ss:$16 sps:$4 sm:$0xff]  }
 0x1aa   : > { %5672 = vmatprep.subr.bf16.mxu1 %v10843_v61 }
 0x1ab   : > { %v9559_v4 = vpop.f32.mrb[88].mxu1  ;;  %v10373_v63 = vadd.f32 %v10372_v33, %v9534_v8  ;;  %5673 = vmatpush1.bf16.msra.mxu1 %v10841_v62 }
 0x1ac   : > { %v9560_v53 = vpop.f32.mrb[89].mxu1  ;;  %5674 = vmatprep.subr.bf16.mxu1 %v10846_v17 }
 0x1ad   : > { %v9561_v10 = vadd.f32 %v9560_v53, %v9559_v4  ;;  %v9562_v9 = vpop.f32.mrb[90].mxu1 }
 0x1ae   : > { %v9563_v14 = vpop.f32.mrb[91].mxu1 }
 0x1af   : > { %v10329_v21 = vadd.f32 %v10328_v56, %v9561_v10  ;;  %v9564_v23 = vadd.f32 %v9563_v14, %v9562_v9  ;;  %5675 = vmatpush1.bf16.msra.mxu1 %v10844_v29  ;;  %v10849_v56 = vld [vmem:[%s13628_s4 + $0xa4] ss:$16 sps:$4 sm:$0xff]  }
 0x1b0   : > { %5676 = vmatprep.subr.bf16.mxu1 %v10849_v56 }
 0x1b1   : > { %v10347_v26 = vadd.f32 %v10346_v3, %v9564_v23  ;;  %v10847_v3 = vld [vmem:[%s13628_s4 + $0xa0] ss:$16 sps:$4 sm:$0xff]  }
 0x1b3   : > { %v9565_v37 = vpop.f32.mrb[92].mxu1  ;;  %5677 = vmatpush1.bf16.msra.mxu1 %v10847_v3 }
 0x1b4   : > { %v9566_v6 = vpop.f32.mrb[93].mxu1  ;;  %5678 = vmatprep.subr.bf16.mxu1 %v10852_v32 }
 0x1b5   : > { %v9567_v43 = vadd.f32 %v9566_v6, %v9565_v37  ;;  %v9568_v8 = vpop.f32.mrb[94].mxu1 }
 0x1b6   : > { %v9569_v48 = vpop.f32.mrb[95].mxu1 }
 0x1b7   : > { %v10320_v57 = vadd.f32 %v10319_v15, %v9567_v43  ;;  %v9570_v60 = vadd.f32 %v9569_v48, %v9568_v8  ;;  %5679 = vmatpush1.bf16.msra.mxu1 %v10850_v35  ;;  %v10855_v15 = vld [vmem:[%s13628_s4 + $0xe4] ss:$16 sps:$4 sm:$0xff]  }
 0x1b8   : > { %5680 = vmatprep.subr.bf16.mxu1 %v10855_v15 }
 0x1b9   : > { %v10338_v31 = vadd.f32 %v10337_v50, %v9570_v60 }
 0x1bb   : > { %v9571_v45 = vpop.f32.mrb[96].mxu1  ;;  %5681 = vmatpush1.bf16.msra.mxu1 %v10853_v42 }
 0x1bc   : > { %v9572_v49 = vpop.f32.mrb[97].mxu1  ;;  %5739 = vmatprep.subr.bf16.mxu1 %v10858_v51 }
 0x1bd   : > { %v9573_v0 = vadd.f32 %v9572_v49, %v9571_v45  ;;  %v9574_v55 = vpop.f32.mrb[98].mxu1 }
 0x1be   : > { %v9575_v22 = vpop.f32.mrb[99].mxu1 }
 0x1bf   : > { %v10365_v50 = vadd.f32 %v10364_v20, %v9573_v0  ;;  %v9576_v41 = vadd.f32 %v9575_v22, %v9574_v55 }
 0x1c1   : > { %v10383_v24 = vadd.f32 %v10382_v28, %v9576_v41 }
 0x1c3   : > { %v9577_v44 = vpop.f32.mrb[100].mxu1 }
 0x1c4   : > { %v9578_v19 = vpop.f32.mrb[101].mxu1 }
 0x1c5   : > { %v9579_v30 = vadd.f32 %v9578_v19, %v9577_v44  ;;  %v9580_v25 = vpop.f32.mrb[102].mxu1 }
 0x1c6   : > { %v9581_v36 = vpop.f32.mrb[103].mxu1 }
 0x1c7   : > { %v10356_v33 = vadd.f32 %v10355_v58, %v9579_v30  ;;  %v9582_v20 = vadd.f32 %v9581_v36, %v9580_v25 }
 0x1c9   : > { %v10374_v1 = vadd.f32 %v10373_v63, %v9582_v20 }
 0x1cb   : > { %v9607_v5 = vpop.f32.mrb[104].mxu1 }
 0x1cc   : > { %v9608_v4 = vpop.f32.mrb[105].mxu1 }
 0x1cd   : > { %v9609_v53 = vadd.f32 %v9608_v4, %v9607_v5  ;;  %v9610_v10 = vpop.f32.mrb[106].mxu1 }
 0x1ce   : > { %v9611_v9 = vpop.f32.mrb[107].mxu1 }
 0x1cf   : > { %v10330_v28 = vadd.f32 %v10329_v21, %v9609_v53  ;;  %v9612_v61 = vadd.f32 %v9611_v9, %v9610_v10 }
 0x1d1   : > { %v10348_v14 = vadd.f32 %v10347_v26, %v9612_v61 }
 0x1d3   : > { %v9613_v62 = vpop.f32.mrb[108].mxu1 }
 0x1d4   : > { %v9614_v23 = vpop.f32.mrb[109].mxu1 }
 0x1d5   : > { %v9615_v17 = vadd.f32 %v9614_v23, %v9613_v62  ;;  %v9616_v29 = vpop.f32.mrb[110].mxu1 }
 0x1d6   : > { %v9617_v37 = vpop.f32.mrb[111].mxu1 }
 0x1d7   : > { %v10321_v6 = vadd.f32 %v10320_v57, %v9615_v17  ;;  %v9618_v43 = vadd.f32 %v9617_v37, %v9616_v29 }
 0x1d9   : > { %v10339_v8 = vadd.f32 %v10338_v31, %v9618_v43 }
 0x1db   : > { %v9619_v56 = vpop.f32.mrb[112].mxu1 }
 0x1dc   : > { %v9620_v58 = vpop.f32.mrb[113].mxu1 }
 0x1dd   : > { %v9621_v48 = vadd.f32 %v9620_v58, %v9619_v56  ;;  %v9622_v63 = vpop.f32.mrb[114].mxu1 }
 0x1de   : > { %v9623_v3 = vpop.f32.mrb[115].mxu1 }
 0x1df   : > { %v10366_v60 = vadd.f32 %v10365_v50, %v9621_v48  ;;  %v9624_v32 = vadd.f32 %v9623_v3, %v9622_v63 }
 0x1e1   : > { %v10384_v45 = vadd.f32 %v10383_v24, %v9624_v32 }
 0x1e3   : > { %v9625_v35 = vpop.f32.mrb[116].mxu1 }
 0x1e4   : > { %v9626_v21 = vpop.f32.mrb[117].mxu1 }
 0x1e5   : > { %v9627_v49 = vadd.f32 %v9626_v21, %v9625_v35  ;;  %v9628_v26 = vpop.f32.mrb[118].mxu1 }
 0x1e6   : > { %v9629_v0 = vpop.f32.mrb[119].mxu1 }
 0x1e7   : > { %v10357_v55 = vadd.f32 %v10356_v33, %v9627_v49  ;;  %v9630_v22 = vadd.f32 %v9629_v0, %v9628_v26 }
 0x1e9   : > { %v10375_v15 = vadd.f32 %v10374_v1, %v9630_v22 }
 0x1eb   : > { %v9655_v41 = vpop.f32.mrb[120].mxu1 }
 0x1ec   : > { %v9656_v57 = vpop.f32.mrb[121].mxu1 }
 0x1ed   : > { %v9657_v42 = vadd.f32 %v9656_v57, %v9655_v41  ;;  %v9658_v31 = vpop.f32.mrb[122].mxu1 }
 0x1ee   : > { %v9659_v51 = vpop.f32.mrb[123].mxu1 }
 0x1ef   : > { %v10331_v44 = vadd.f32 %v10330_v28, %v9657_v42  ;;  %v9660_v19 = vadd.f32 %v9659_v51, %v9658_v31 }
 0x1f1   : > { %v10349_v30 = vadd.f32 %v10348_v14, %v9660_v19 }
 0x1f3   : > { %v9661_v25 = vpop.f32.mrb[124].mxu1 }
 0x1f4   : > { %v9662_v50 = vpop.f32.mrb[125].mxu1 }
 0x1f5   : > { %v9663_v36 = vadd.f32 %v9662_v50, %v9661_v25  ;;  %v9664_v24 = vpop.f32.mrb[126].mxu1 }
 0x1f6   : > { %v9665_v20 = vpop.f32.mrb[127].mxu1 }
 0x1f7   : > { %v10322_v5 = vadd.f32 %v10321_v6, %v9663_v36  ;;  %v9666_v4 = vadd.f32 %v9665_v20, %v9664_v24 }
 0x1f9   : > { %v10340_v53 = vadd.f32 %v10339_v8, %v9666_v4 }
 0x1ff   : > { %v9667_v10 = vpop.f32.mrb[128].mxu1 }
 0x200   : > { %v9668_v33 = vpop.f32.mrb[129].mxu1 }
 0x201   : > { %v9669_v9 = vadd.f32 %v9668_v33, %v9667_v10  ;;  %v9670_v1 = vpop.f32.mrb[130].mxu1 }
 0x202   : > { %v9671_v62 = vpop.f32.mrb[131].mxu1 }
 0x203   : > { %v12676_v17 = vadd.f32 %v10366_v60, %v9669_v9  ;;  %v9672_v28 = vadd.f32 %v9671_v62, %v9670_v1 }
 0x205   : > { %v9751_v61 = vpop.f32.mrb[40].mxu0  ;;  %v12678_v43 = vadd.f32 %v10384_v45, %v9672_v28 }
 0x206   : > { %v9752_v23 = vpop.f32.mrb[41].mxu0 }
 0x207   : > { %v9753_v29 = vadd.f32 %v9752_v23, %v9751_v61  ;;  %v9754_v14 = vpop.f32.mrb[42].mxu0  ;;  %v9673_v58 = vpop.f32.mrb[132].mxu1 }
 0x208   : > { %v9755_v37 = vpop.f32.mrb[43].mxu0  ;;  %v9674_v6 = vpop.f32.mrb[133].mxu1 }
 0x209   : > { %v9756_v56 = vadd.f32 %v9755_v37, %v9754_v14  ;;  %v9675_v8 = vadd.f32 %v9674_v6, %v9673_v58  ;;  %v9676_v63 = vpop.f32.mrb[134].mxu1 }
 0x20a   : > { %v9677_v32 = vpop.f32.mrb[135].mxu1 }
 0x20b   : > { %v12680_v21 = vadd.f32 %v10357_v55, %v9675_v8  ;;  %v9678_v60 = vadd.f32 %v9677_v32, %v9676_v63 }
 0x20d   : > { %v9757_v48 = vpop.f32.mrb[44].mxu0  ;;  %v12682_v22 = vadd.f32 %v10375_v15, %v9678_v60 }
 0x20e   : > { %v9758_v3 = vpop.f32.mrb[45].mxu0 }
 0x20f   : > { %v9759_v35 = vadd.f32 %v9758_v3, %v9757_v48  ;;  %v9760_v49 = vpop.f32.mrb[46].mxu0 }
 0x210   : > { %v9761_v26 = vpop.f32.mrb[47].mxu0 }
 0x211   : > { %v9762_v0 = vadd.f32 %v9761_v26, %v9760_v49 }
 0x215   : > { %v9763_v41 = vpop.f32.mrb[48].mxu0 }
 0x216   : > { %v9764_v45 = vpop.f32.mrb[49].mxu0 }
 0x217   : > { %v9765_v57 = vadd.f32 %v9764_v45, %v9763_v41  ;;  %v9766_v42 = vpop.f32.mrb[50].mxu0  ;;  %v9703_v51 = vpop.f32.mrb[136].mxu1 }
 0x218   : > { %v9767_v31 = vpop.f32.mrb[51].mxu0  ;;  %v9704_v25 = vpop.f32.mrb[137].mxu1 }
 0x219   : > { %v12684_v19 = vadd.f32 %v9767_v31, %v9766_v42  ;;  %v9705_v50 = vadd.f32 %v9704_v25, %v9703_v51  ;;  %v9706_v36 = vpop.f32.mrb[138].mxu1 }
 0x21a   : > { %v9707_v24 = vpop.f32.mrb[139].mxu1 }
 0x21b   : > { %v10332_v55 = vadd.f32 %v10331_v44, %v9705_v50  ;;  %v9708_v20 = vadd.f32 %v9707_v24, %v9706_v36 }
 0x21d   : > { %v9769_v4 = vpop.f32.mrb[52].mxu0  ;;  %v10350_v33 = vadd.f32 %v10349_v30, %v9708_v20  ;;  %v10333_v1 = vadd.f32 %v10332_v55, %v9753_v29  ;;  %v12693_v30 = vld [vmem:[%s13627_s3] ss:$0 sm:$0xff] }
 0x21e   : > { %v9770_v10 = vpop.f32.mrb[53].mxu0 }
 0x21f   : > { %v12686_v9 = vadd.f32 %v9770_v10, %v9769_v4  ;;  %v9772_v15 = vpop.f32.mrb[54].mxu0  ;;  %v9709_v62 = vpop.f32.mrb[140].mxu1  ;;  %v10351_v28 = vadd.f32 %v10350_v33, %v9756_v56 }
 0x220   : > { %v9773_v61 = vpop.f32.mrb[55].mxu0  ;;  %v9710_v14 = vpop.f32.mrb[141].mxu1 }
 0x221   : > { %v12688_v23 = vadd.f32 %v9773_v61, %v9772_v15  ;;  %v9711_v37 = vadd.f32 %v9710_v14, %v9709_v62  ;;  %v9712_v58 = vpop.f32.mrb[142].mxu1 }
 0x222   : > { %v9713_v6 = vpop.f32.mrb[143].mxu1 }
 0x223   : > { %v10323_v48 = vadd.f32 %v10322_v5, %v9711_v37  ;;  %v9714_v8 = vadd.f32 %v9713_v6, %v9712_v58 }
 0x225   : > { %v10099_v44 = vpop.f32.mrb[16].mxu0  ;;  %v10341_v3 = vadd.f32 %v10340_v53, %v9714_v8  ;;  %v10324_v29 = vadd.f32 %v10323_v48, %v9759_v35 }
 0x226   : > { %v5400_v63 = vpop.f32.mrb[17].mxu0 }
 0x227   : > { %v10334_v32 = vadd.f32 %v10333_v1, %v5400_v63  ;;  %v10100_v49 = vpop.f32.mrb[18].mxu0  ;;  %v10325_v26 = vadd.f32 %v10324_v29, %v10099_v44  ;;  %v9715_v56 = vpop.f32.mrb[144].mxu1  ;;  %v10342_v45 = vadd.f32 %v10341_v3, %v9762_v0 }
 0x228   : > { %v5403_v60 = vpop.f32.mrb[19].mxu0  ;;  %v9716_v5 = vpop.f32.mrb[145].mxu1 }
 0x229   : > { %v5446_v41 = vadd.f32 %v10334_v32, %v12693_v30  ;;  %v10352_v42 = vadd.f32 %v10351_v28, %v5403_v60  ;;  %v5448_v31 = vadd.f32 %v10325_v26, %v12693_v30  ;;  %v9717_v51 = vadd.f32 %v9716_v5, %v9715_v56  ;;  %v9718_v50 = vpop.f32.mrb[146].mxu1  ;;  %v10864_v5 = vld [vmem:[%s13628_s4 + $0x4c] ss:$16 sps:$4 sm:$0xff]  }
 0x22a   : > { %v10343_v25 = vadd.f32 %v10342_v45, %v10100_v49  ;;  %v9719_v53 = vpop.f32.mrb[147].mxu1 }
 0x22b   : > { %v5454_v36 = vmax.f32 %v5446_v41, 0.0  ;;  %v5447_v24 = vadd.f32 %v10352_v42, %v12693_v30  ;;  %v5456_v35 = vmax.f32 %v5448_v31, 0.0  ;;  %v10368_v55 = vadd.f32 %v12676_v17, %v9717_v51  ;;  %v10856_v17 = vld [vmem:[%s13628_s4 + $0x8] ss:$16 sps:$4 sm:$0xff]  }
 0x22c   : > { %v5449_v20 = vadd.f32 %v10343_v25, %v12693_v30  ;;  %v9720_v33 = vadd.f32 %v9719_v53, %v9718_v50 }
 0x22d   : > { %v10103_v4 = vpop.f32.mrb[20].mxu0  ;;  %v5455_v10 = vmax.f32 %v5447_v24, 0.0  ;;  %v10369_v1 = vadd.f32 %v10368_v55, %v9765_v57  ;;  %v5462_v62 = vmin.f32 %v5454_v36, 6.0  ;;  %v5464_v58 = vmin.f32 %v5456_v35, 6.0  ;;  %v10861_v57 = vld [vmem:[%s13628_s4 + $0x2c] ss:$16 sps:$4 sm:$0xff]  }
 0x22e   : > { %v5416_v0 = vpop.f32.mrb[21].mxu0  ;;  %v5457_v15 = vmax.f32 %v5449_v20, 0.0  ;;  %v10386_v14 = vadd.f32 %v12678_v43, %v9720_v33  ;;  %v10862_v36 = vld [vmem:[%s13628_s4 + $0x48] ss:$16 sps:$4 sm:$0xff]   ;;  %v10867_v35 = vld [vmem:[%s13628_s4 + $0x6c] ss:$16 sps:$4 sm:$0xff]  }
 0x22f   : > { %v10104_v61 = vpop.f32.mrb[22].mxu0  ;;  %v5463_v28 = vmin.f32 %v5455_v10, 6.0  ;;  %v9721_v48 = vpop.f32.mrb[148].mxu1  ;;  %v10370_v8 = vadd.f32 %v10369_v1, %v5416_v0  ;;  %v10870_v10 = vld [vmem:[%s13628_s4 + $0x8c] ss:$16 sps:$4 sm:$0xff]  }
 0x230   : > { %v5419_v37 = vpop.f32.mrb[23].mxu0  ;;  %v5465_v6 = vmin.f32 %v5457_v15, 6.0  ;;  %v9722_v63 = vpop.f32.mrb[149].mxu1  ;;  %v10387_v3 = vadd.f32 %v10386_v14, %v12684_v19  ;;  %v10859_v19 = vld [vmem:[%s13628_s4 + $0x28] ss:$16 sps:$4 sm:$0xff]  }
 0x231   : > { %v12704_v44 = vpack.c.bf16 %v5463_v28, %v5462_v62  ;;  %v5450_v43 = vadd.f32 %v10370_v8, %v12693_v30  ;;  %v9723_v29 = vadd.f32 %v9722_v63, %v9721_v48  ;;  %v9724_v32 = vpop.f32.mrb[150].mxu1  ;;  %v10868_v0 = vld [vmem:[%s13628_s4 + $0x88] ss:$16 sps:$4 sm:$0xff]   ;;  %v10876_v28 = vld [vmem:[%s13628_s4 + $0xcc] ss:$16 sps:$4 sm:$0xff]  }
 0x232   : > { %v12711_v49 = vpack.c.bf16 %v5465_v6, %v5464_v58  ;;  %v10388_v60 = vadd.f32 %v10387_v3, %v5419_v37  ;;  %v9725_v26 = vpop.f32.mrb[151].mxu1  ;;  %v10871_v62 = vld [vmem:[%s13628_s4 + $0xa8] ss:$16 sps:$4 sm:$0xff]   ;;  %v10879_v37 = vld [vmem:[%s13628_s4 + $0xec] ss:$16 sps:$4 sm:$0xff]  }
 0x233   : > { %5699 = vmatmul.mubr.bf16.vlgmr.msra.gmra.mrb[152].mxu1 %v12704_v44  ;;  %v10359_v56 = vadd.f32 %v12680_v21, %v9723_v29  ;;  %v9726_v41 = vadd.f32 %v9725_v26, %v9724_v32  ;;  %v5458_v45 = vmax.f32 %v5450_v43, 0.0  ;;  %v10874_v14 = vld [vmem:[%s13628_s4 + $0xc8] ss:$16 sps:$4 sm:$0xff]   ;;  %v10882_v6 = vld [vmem:[%s13631_s7 + $0x4] ss:$16 sps:$4 sm:$0xff]  }
 0x234   : > { %5740 = vmatpush1.bf16.msra.mxu1 %v10856_v17  ;;  %5708 = vmatprep.mubr.bf16.mxu1 %v11090_v2  ;;  %v5451_v42 = vadd.f32 %v10388_v60, %v12693_v30  ;;  %v10877_v58 = vld [vmem:[%s13628_s4 + $0xe8] ss:$16 sps:$4 sm:$0xff]   ;;  %v10880_v48 = vld [vmem:[%s13631_s7] ss:$16 sps:$4 sm:$0xff]   ;;  %v10885_v8 = vld [vmem:[%s13631_s7 + $0x24] ss:$16 sps:$4 sm:$0xff]  }
 0x235   : > { %5741 = vmatprep.subr.bf16.mxu1 %v10861_v57  ;;  %v10360_v31 = vadd.f32 %v10359_v56, %v12686_v9  ;;  %v10377_v21 = vadd.f32 %v12682_v22, %v9726_v41  ;;  %v5466_v24 = vmin.f32 %v5458_v45, 6.0  ;;  %v10883_v17 = vld [vmem:[%s13631_s7 + $0x20] ss:$16 sps:$4 sm:$0xff]   ;;  %v10888_v63 = vld [vmem:[%s13631_s7 + $0x44] ss:$16 sps:$4 sm:$0xff]  }
 0x236   : > { %v5459_v51 = vmax.f32 %v5451_v42, 0.0  ;;  %v10886_v3 = vld [vmem:[%s13631_s7 + $0x40] ss:$16 sps:$4 sm:$0xff]   ;;  %v10894_v43 = vld [vmem:[%s13631_s7 + $0x84] ss:$16 sps:$4 sm:$0xff]  }
 0x237   : > { %v10361_v25 = vadd.f32 %v10360_v31, %v10103_v4  ;;  %v10378_v50 = vadd.f32 %v10377_v21, %v12688_v23  ;;  %v10865_v23 = vld [vmem:[%s13628_s4 + $0x68] ss:$16 sps:$4 sm:$0xff]   ;;  %v10889_v57 = vld [vmem:[%s13631_s7 + $0x60] ss:$16 sps:$4 sm:$0xff]   ;;  %v10897_v32 = vld [vmem:[%s13631_s7 + $0xa4] ss:$16 sps:$4 sm:$0xff]  }
 0x238   : > { %5742 = vmatpush1.bf16.msra.mxu1 %v10859_v19  ;;  %v5467_v53 = vmin.f32 %v5459_v51, 6.0  ;;  %v10892_v29 = vld [vmem:[%s13631_s7 + $0x80] ss:$16 sps:$4 sm:$0xff]   ;;  %v10900_v60 = vld [vmem:[%s13631_s7 + $0xc4] ss:$16 sps:$4 sm:$0xff]  }
 0x239   : > { %5743 = vmatprep.subr.bf16.mxu1 %v10864_v5  ;;  %v10379_v55 = vadd.f32 %v10378_v50, %v10104_v61  ;;  %v5452_v9 = vadd.f32 %v10361_v25, %v12693_v30  ;;  %v10873_v61 = vld [vmem:[%s13628_s4 + $0xac] ss:$16 sps:$4 sm:$0xff]   ;;  %v10898_v26 = vld [vmem:[%s13631_s7 + $0xc0] ss:$16 sps:$4 sm:$0xff]   ;;  %v10903_v56 = vld [vmem:[%s13631_s7 + $0xe4] ss:$16 sps:$4 sm:$0xff]  }
 0x23a   : > { %v5472_v22 = vpack.c.bf16 %v5467_v53, %v5466_v24  ;;  %v10901_v41 = vld [vmem:[%s13631_s7 + $0xe0] ss:$16 sps:$4 sm:$0xff]   ;;  %v10906_v19 = vld [vmem:[%s13631_s7 + $0x104] ss:$16 sps:$4 sm:$0xff]  }
 0x23b   : > { %5709 = vmatmul.mubr.bf16.gmra.mrb[156].mxu1 %v12711_v49  ;;  %v5453_v20 = vadd.f32 %v10379_v55, %v12693_v30  ;;  %v5460_v4 = vmax.f32 %v5452_v9, 0.0  ;;  %v10904_v45 = vld [vmem:[%s13631_s7 + $0x100] ss:$16 sps:$4 sm:$0xff]   ;;  %v10909_v42 = vld [vmem:[%s13631_s7 + $0x124] ss:$16 sps:$4 sm:$0xff]  }
 0x23c   : > { %5744 = vmatpush1.bf16.msra.mxu1 %v10862_v36  ;;  %5718 = vmatprep.mubr.bf16.mxu1 %v11090_v2  ;;  %v10907_v5 = vld [vmem:[%s13631_s7 + $0x120] ss:$16 sps:$4 sm:$0xff]   ;;  %v10912_v31 = vld [vmem:[%s13631_s7 + $0x144] ss:$16 sps:$4 sm:$0xff]  }
 0x23d   : > { %5745 = vmatprep.subr.bf16.mxu1 %v10867_v35  ;;  %v5461_v33 = vmax.f32 %v5453_v20, 0.0  ;;  %v5468_v15 = vmin.f32 %v5460_v4, 6.0  ;;  %v10910_v21 = vld [vmem:[%s13631_s7 + $0x140] ss:$16 sps:$4 sm:$0xff]   ;;  %v10915_v51 = vld [vmem:[%s13631_s7 + $0x164] ss:$16 sps:$4 sm:$0xff]  }
 0x23e   : > { %v10913_v25 = vld [vmem:[%s13631_s7 + $0x160] ss:$16 sps:$4 sm:$0xff]   ;;  %v10918_v50 = vld [vmem:[%s13631_s7 + $0x184] ss:$16 sps:$4 sm:$0xff]  }
 0x23f   : > { %v5469_v1 = vmin.f32 %v5461_v33, 6.0  ;;  %v10916_v36 = vld [vmem:[%s13631_s7 + $0x180] ss:$16 sps:$4 sm:$0xff]   ;;  %v10921_v24 = vld [vmem:[%s13631_s7 + $0x1a4] ss:$16 sps:$4 sm:$0xff]  }
 0x240   : > { %5746 = vmatpush1.bf16.msra.mxu1 %v10865_v23  ;;  %v10919_v53 = vld [vmem:[%s13631_s7 + $0x1a0] ss:$16 sps:$4 sm:$0xff]   ;;  %v10924_v35 = vld [vmem:[%s13631_s7 + $0x1c4] ss:$16 sps:$4 sm:$0xff]  }
 0x241   : > { %5747 = vmatprep.subr.bf16.mxu1 %v10870_v10  ;;  %v5473_v30 = vpack.c.bf16 %v5469_v1, %v5468_v15  ;;  %v10922_v55 = vld [vmem:[%s13631_s7 + $0x1c0] ss:$16 sps:$4 sm:$0xff]   ;;  %v10927_v9 = vld [vmem:[%s13631_s7 + $0x1e4] ss:$16 sps:$4 sm:$0xff]  }
 0x242   : > { %v10930_v23 = vld [vmem:[%s13631_s7 + $0x204] ss:$16 sps:$4 sm:$0xff]   ;;  %v10928_v20 = vld [vmem:[%s13631_s7 + $0x200] ss:$16 sps:$4 sm:$0xff]  }
 0x243   : > { %5719 = vmatmul.mubr.bf16.gmra.mrb[160].mxu1 %v5472_v22  ;;  %v10933_v4 = vld [vmem:[%s13631_s7 + $0x224] ss:$16 sps:$4 sm:$0xff]   ;;  %v10931_v10 = vld [vmem:[%s13631_s7 + $0x220] ss:$16 sps:$4 sm:$0xff]  }
 0x244   : > { %5748 = vmatpush1.bf16.msra.mxu1 %v10868_v0  ;;  %5728 = vmatprep.mubr.bf16.mxu1 %v11090_v2  ;;  %v10936_v33 = vld [vmem:[%s13631_s7 + $0x244] ss:$16 sps:$4 sm:$0xff]   ;;  %v10934_v0 = vld [vmem:[%s13631_s7 + $0x240] ss:$16 sps:$4 sm:$0xff]  }
 0x245   : > { %5749 = vmatprep.subr.bf16.mxu1 %v10873_v61  ;;  %v10939_v15 = vld [vmem:[%s13631_s7 + $0x264] ss:$16 sps:$4 sm:$0xff]   ;;  %v10937_v1 = vld [vmem:[%s13631_s7 + $0x260] ss:$16 sps:$4 sm:$0xff]  }
 0x246   : > { %v10942_v61 = vld [vmem:[%s13631_s7 + $0x284] ss:$16 sps:$4 sm:$0xff]  }
 0x248   : > { %5750 = vmatpush1.bf16.msra.mxu1 %v10871_v62  ;;  %v10945_v62 = vld [vmem:[%s13631_s7 + $0x2a4] ss:$16 sps:$4 sm:$0xff]  }
 0x249   : > { %5751 = vmatprep.subr.bf16.mxu1 %v10876_v28  ;;  %v10943_v28 = vld [vmem:[%s13631_s7 + $0x2a0] ss:$16 sps:$4 sm:$0xff]  }
 0x24b   : > { %5729 = vmatmul.mubr.bf16.gmra.mrb[164].mxu1 %v5473_v30 }
 0x24c   : > { %5752 = vmatpush1.bf16.msra.mxu1 %v10874_v14  ;;  %5771 = vmatprep.mubr.bf16.mxu1 %v11090_v2  ;;  %v10948_v14 = vld [vmem:[%s13631_s7 + $0x2c4] ss:$16 sps:$4 sm:$0xff]  }
 0x24d   : > { %5753 = vmatprep.subr.bf16.mxu1 %v10879_v37  ;;  %v10946_v37 = vld [vmem:[%s13631_s7 + $0x2c0] ss:$16 sps:$4 sm:$0xff]  }
 0x250   : > { %5754 = vmatpush1.bf16.msra.mxu1 %v10877_v58  ;;  %v10951_v58 = vld [vmem:[%s13631_s7 + $0x2e4] ss:$16 sps:$4 sm:$0xff]  }
 0x251   : > { %6292 = vmatprep.subr.bf16.mxu1 %v10882_v6  ;;  %v11024_v6 = vld [vmem:[%s13634_s10 + $0x40] sm:$0xff]  }
 0x252   : > { %9783 = vmatprep.subr.bf16.mxu0 %v11024_v6  ;;  %v11003_v6 = vld [vmem:[%s13631_s7 + $0x228] ss:$16 sps:$4 sm:$0xff]  }
 0x253   : > { %5772 = vmatmul.mubr.bf16.vlgmr.msra.gmra.mrb[168].mxu1 %v12704_v44  ;;  %v10891_v44 = vld [vmem:[%s13631_s7 + $0x64] ss:$16 sps:$4 sm:$0xff]  }
 0x254   : > { %6293 = vmatpush1.bf16.msra.mxu1 %v10880_v48  ;;  %5781 = vmatprep.mubr.bf16.mxu1 %v11090_v2  ;;  %v11025_v48 = vld [vmem:[%s13634_s10] sm:$0xff]  }
 0x255   : > { %6294 = vmatprep.subr.bf16.mxu1 %v10885_v8  ;;  %v11026_v8 = vld [vmem:[%s13634_s10 + $0x48] sm:$0xff]   ;;  %9784 = vmatpush3.bf16.msra.mxu0 %v11025_v48 }
 0x256   : > { %9785 = vmatprep.subr.bf16.mxu0 %v11026_v8  ;;  %v11008_v48 = vld [vmem:[%s13631_s7 + $0x24c] ss:$16 sps:$4 sm:$0xff]   ;;  %v11006_v8 = vld [vmem:[%s13631_s7 + $0x248] ss:$16 sps:$4 sm:$0xff]  }
 0x258   : > { %6295 = vmatpush1.bf16.msra.mxu1 %v10883_v17  ;;  %v10949_v17 = vld [vmem:[%s13631_s7 + $0x2e0] ss:$16 sps:$4 sm:$0xff]  }
 0x259   : > { %6296 = vmatprep.subr.bf16.mxu1 %v10888_v63  ;;  %v10954_v63 = vld [vmem:[%s13631_s7 + $0xc] ss:$16 sps:$4 sm:$0xff]  }
 0x25b   : > { %5782 = vmatmul.mubr.bf16.gmra.mrb[172].mxu1 %v12711_v49  ;;  %v10895_v49 = vld [vmem:[%s13631_s7 + $0xa0] ss:$16 sps:$4 sm:$0xff]  }
 0x25c   : > { %6297 = vmatpush1.bf16.msra.mxu1 %v10886_v3  ;;  %5791 = vmatprep.mubr.bf16.mxu1 %v11090_v2  ;;  %v11027_v3 = vld [vmem:[%s13634_s10 + $0x8] sm:$0xff]  }
 0x25d   : > { %6298 = vmatprep.subr.bf16.mxu1 %v10891_v44  ;;  %v11028_v44 = vld [vmem:[%s13634_s10 + $0x50] sm:$0xff]   ;;  %9786 = vmatpush3.bf16.msra.mxu0 %v11027_v3  ;;  %v11020_v3 = vld [vmem:[%s13631_s7 + $0x2cc] ss:$16 sps:$4 sm:$0xff]  }
 0x25e   : > { %9787 = vmatprep.subr.bf16.mxu0 %v11028_v44  ;;  %v11036_v44 = vld [vmem:[%s13634_s10 + $0x70] sm:$0xff]  }
 0x260   : > { %6299 = vmatpush1.bf16.msra.mxu1 %v10889_v57  ;;  %v10952_v57 = vld [vmem:[%s13631_s7 + $0x8] ss:$16 sps:$4 sm:$0xff]  }
 0x261   : > { %6300 = vmatprep.subr.bf16.mxu1 %v10894_v43  ;;  %v10957_v43 = vld [vmem:[%s13631_s7 + $0x2c] ss:$16 sps:$4 sm:$0xff]  }
 0x263   : > { %5792 = vmatmul.mubr.bf16.gmra.mrb[176].mxu1 %v5472_v22  ;;  %v10925_v22 = vld [vmem:[%s13631_s7 + $0x1e0] ss:$16 sps:$4 sm:$0xff]  }
 0x264   : > { %6301 = vmatpush1.bf16.msra.mxu1 %v10892_v29  ;;  %5801 = vmatprep.mubr.bf16.mxu1 %v11090_v2  ;;  %v11029_v29 = vld [vmem:[%s13634_s10 + $0x10] sm:$0xff]  }
 0x265   : > { %6302 = vmatprep.subr.bf16.mxu1 %v10897_v32  ;;  %v11030_v32 = vld [vmem:[%s13634_s10 + $0x58] sm:$0xff]   ;;  %9788 = vmatpush3.bf16.msra.mxu0 %v11029_v29 }
 0x266   : > { %9789 = vmatprep.subr.bf16.mxu0 %v11030_v32  ;;  %v11021_v29 = vld [vmem:[%s13631_s7 + $0x2e8] ss:$16 sps:$4 sm:$0xff]  }
 0x267   : > { %v11039_v32 = vld [vmem:[%s13634_s10 + $0x38] sm:$0xff]  }
 0x268   : > { %6303 = vmatpush1.bf16.msra.mxu1 %v10895_v49  ;;  %v10955_v49 = vld [vmem:[%s13631_s7 + $0x28] ss:$16 sps:$4 sm:$0xff]  }
 0x269   : > { %6304 = vmatprep.subr.bf16.mxu1 %v10900_v60  ;;  %v10960_v60 = vld [vmem:[%s13631_s7 + $0x4c] ss:$16 sps:$4 sm:$0xff]  }
 0x26b   : > { %5802 = vmatmul.mubr.bf16.gmra.mrb[180].mxu1 %v5473_v30  ;;  %v10940_v30 = vld [vmem:[%s13631_s7 + $0x280] ss:$16 sps:$4 sm:$0xff]  }
 0x26c   : > { %6305 = vmatpush1.bf16.msra.mxu1 %v10898_v26  ;;  %6324 = vmatprep.mubr.bf16.mxu1 %v12427_v47  ;;  %v11031_v26 = vld [vmem:[%s13634_s10 + $0x18] sm:$0xff]  }
 0x26d   : > { %6306 = vmatprep.subr.bf16.mxu1 %v10903_v56  ;;  %v11032_v56 = vld [vmem:[%s13634_s10 + $0x60] sm:$0xff]   ;;  %9790 = vmatpush3.bf16.msra.mxu0 %v11031_v26 }
 0x26e   : > { %9791 = vmatprep.subr.bf16.mxu0 %v11032_v56  ;;  %v11048_v26 = vld [vmem:[%s13634_s10 + $0xe0] sm:$0xff]  }
 0x26f   : > { %v13168_v56 = vld [vmem:[%s13634_s10 + $0xa0] sm:$0xff]  }
 0x270   : > { %6307 = vmatpush1.bf16.msra.mxu1 %v10901_v41  ;;  %v10958_v41 = vld [vmem:[%s13631_s7 + $0x48] ss:$16 sps:$4 sm:$0xff]  }
 0x271   : > { %6308 = vmatprep.subr.bf16.mxu1 %v10906_v19  ;;  %v10963_v19 = vld [vmem:[%s13631_s7 + $0x6c] ss:$16 sps:$4 sm:$0xff]  }
 0x274   : > { %6309 = vmatpush1.bf16.msra.mxu1 %v10904_v45  ;;  %v11033_v45 = vld [vmem:[%s13634_s10 + $0x20] sm:$0xff]  }
 0x275   : > { %6310 = vmatprep.subr.bf16.mxu1 %v10909_v42  ;;  %v11034_v42 = vld [vmem:[%s13634_s10 + $0x68] sm:$0xff]   ;;  %9792 = vmatpush3.bf16.msra.mxu0 %v11033_v45  ;;  %v13186_v45 = vld [vmem:[%s13634_s10 + $0xf0] sm:$0xff]  }
 0x276   : > { %9793 = vmatprep.subr.bf16.mxu0 %v11034_v42  ;;  %v13191_v42 = vld [vmem:[%s13634_s10 + $0xb0] sm:$0xff]  }
 0x278   : > { %6311 = vmatpush1.bf16.msra.mxu1 %v10907_v5  ;;  %v10961_v5 = vld [vmem:[%s13631_s7 + $0x68] ss:$16 sps:$4 sm:$0xff]  }
 0x279   : > { %6312 = vmatprep.subr.bf16.mxu1 %v10912_v31  ;;  %v10966_v31 = vld [vmem:[%s13631_s7 + $0x8c] ss:$16 sps:$4 sm:$0xff]  }
 0x27c   : > { %6313 = vmatpush1.bf16.msra.mxu1 %v10910_v21  ;;  %v11035_v21 = vld [vmem:[%s13634_s10 + $0x28] sm:$0xff]  }
 0x27d   : > { %6314 = vmatprep.subr.bf16.mxu1 %v10915_v51  ;;  %v10964_v51 = vld [vmem:[%s13631_s7 + $0x88] ss:$16 sps:$4 sm:$0xff]   ;;  %9794 = vmatpush3.bf16.msra.mxu0 %v11035_v21  ;;  %v13210_v21 = vld [vmem:[%s13632_s8] sm:$0xf] }
 0x27e   : > { %9795 = vmatprep.subr.bf16.mxu0 %v11036_v44 }
 0x280   : > { %6315 = vmatpush1.bf16.msra.mxu1 %v10913_v25  ;;  %v10969_v25 = vld [vmem:[%s13631_s7 + $0xac] ss:$16 sps:$4 sm:$0xff]  }
 0x281   : > { %6316 = vmatprep.subr.bf16.mxu1 %v10918_v50  ;;  %v10967_v50 = vld [vmem:[%s13631_s7 + $0xa8] ss:$16 sps:$4 sm:$0xff]  }
 0x284   : > { %6317 = vmatpush1.bf16.msra.mxu1 %v10916_v36  ;;  %v10972_v36 = vld [vmem:[%s13631_s7 + $0xcc] ss:$16 sps:$4 sm:$0xff]  }
 0x285   : > { %6318 = vmatprep.subr.bf16.mxu1 %v10921_v24  ;;  %v10970_v24 = vld [vmem:[%s13631_s7 + $0xc8] ss:$16 sps:$4 sm:$0xff]  }
 0x288   : > { %6319 = vmatpush1.bf16.msra.mxu1 %v10919_v53  ;;  %v10975_v53 = vld [vmem:[%s13631_s7 + $0xec] ss:$16 sps:$4 sm:$0xff]  }
 0x289   : > { %6320 = vmatprep.subr.bf16.mxu1 %v10924_v35  ;;  %v10973_v35 = vld [vmem:[%s13631_s7 + $0xe8] ss:$16 sps:$4 sm:$0xff]  }
 0x28c   : > { %6321 = vmatpush1.bf16.msra.mxu1 %v10922_v55  ;;  %v10978_v55 = vld [vmem:[%s13631_s7 + $0x10c] ss:$16 sps:$4 sm:$0xff]  }
 0x28d   : > { %6322 = vmatprep.subr.bf16.mxu1 %v10927_v9  ;;  %v10976_v9 = vld [vmem:[%s13631_s7 + $0x108] ss:$16 sps:$4 sm:$0xff]  }
 0x290   : > { %6323 = vmatpush1.bf16.msra.mxu1 %v10925_v22  ;;  %v10981_v22 = vld [vmem:[%s13631_s7 + $0x12c] ss:$16 sps:$4 sm:$0xff]  }
 0x291   : > { %6365 = vmatprep.subr.bf16.mxu1 %v10930_v23  ;;  %v10984_v23 = vld [vmem:[%s13631_s7 + $0x14c] ss:$16 sps:$4 sm:$0xff]  }
 0x293   : > { %6325 = vmatmul.mubr.bf16.vlgmr.msra.gmra.mrb[152].mxu1 %v12382_v39 }
 0x294   : > { %6334 = vmatprep.mubr.bf16.mxu1 %v12458_v11  ;;  %6366 = vmatpush1.bf16.msra.mxu1 %v10928_v20  ;;  %v10982_v20 = vld [vmem:[%s13631_s7 + $0x148] ss:$16 sps:$4 sm:$0xff]  }
 0x295   : > { %6367 = vmatprep.subr.bf16.mxu1 %v10933_v4  ;;  %v10987_v4 = vld [vmem:[%s13631_s7 + $0x16c] ss:$16 sps:$4 sm:$0xff]  }
 0x298   : > { %6368 = vmatpush1.bf16.msra.mxu1 %v10931_v10  ;;  %v10985_v10 = vld [vmem:[%s13631_s7 + $0x168] ss:$16 sps:$4 sm:$0xff]  }
 0x299   : > { %6369 = vmatprep.subr.bf16.mxu1 %v10936_v33  ;;  %v10990_v33 = vld [vmem:[%s13631_s7 + $0x18c] ss:$16 sps:$4 sm:$0xff]  }
 0x29b   : > { %6335 = vmatmul.mubr.bf16.gmra.mrb[156].mxu1 %v12443_v54 }
 0x29c   : > { %6344 = vmatprep.mubr.bf16.mxu1 %v12549_v18  ;;  %6370 = vmatpush1.bf16.msra.mxu1 %v10934_v0  ;;  %v10988_v0 = vld [vmem:[%s13631_s7 + $0x188] ss:$16 sps:$4 sm:$0xff]  }
 0x29d   : > { %6371 = vmatprep.subr.bf16.mxu1 %v10939_v15  ;;  %v10993_v15 = vld [vmem:[%s13631_s7 + $0x1ac] ss:$16 sps:$4 sm:$0xff]  }
 0x2a0   : > { %6372 = vmatpush1.bf16.msra.mxu1 %v10937_v1  ;;  %v10991_v1 = vld [vmem:[%s13631_s7 + $0x1a8] ss:$16 sps:$4 sm:$0xff]  }
 0x2a1   : > { %6373 = vmatprep.subr.bf16.mxu1 %v10942_v61  ;;  %v10996_v61 = vld [vmem:[%s13631_s7 + $0x1cc] ss:$16 sps:$4 sm:$0xff]  }
 0x2a3   : > { %6345 = vmatmul.mubr.bf16.gmra.mrb[160].mxu1 %v12509_v7 }
 0x2a4   : > { %6354 = vmatprep.mubr.bf16.mxu1 %v12561_v13  ;;  %6374 = vmatpush1.bf16.msra.mxu1 %v10940_v30  ;;  %v10994_v30 = vld [vmem:[%s13631_s7 + $0x1c8] ss:$16 sps:$4 sm:$0xff]  }
 0x2a5   : > { %6375 = vmatprep.subr.bf16.mxu1 %v10945_v62  ;;  %v10999_v62 = vld [vmem:[%s13631_s7 + $0x1ec] ss:$16 sps:$4 sm:$0xff]  }
 0x2a8   : > { %6376 = vmatpush1.bf16.msra.mxu1 %v10943_v28  ;;  %v10997_v28 = vld [vmem:[%s13631_s7 + $0x1e8] ss:$16 sps:$4 sm:$0xff]  }
 0x2a9   : > { %6377 = vmatprep.subr.bf16.mxu1 %v10948_v14  ;;  %v11002_v14 = vld [vmem:[%s13631_s7 + $0x20c] ss:$16 sps:$4 sm:$0xff]  }
 0x2ab   : > { %6355 = vmatmul.mubr.bf16.gmra.mrb[164].mxu1 %v12551_v34 }
 0x2ac   : > { %6378 = vmatpush1.bf16.msra.mxu1 %v10946_v37  ;;  %6397 = vmatprep.mubr.bf16.mxu1 %v11090_v2  ;;  %v11000_v37 = vld [vmem:[%s13631_s7 + $0x208] ss:$16 sps:$4 sm:$0xff]  }
 0x2ad   : > { %6379 = vmatprep.subr.bf16.mxu1 %v10951_v58  ;;  %v11005_v58 = vld [vmem:[%s13631_s7 + $0x22c] ss:$16 sps:$4 sm:$0xff]  }
 0x2b0   : > { %6380 = vmatpush1.bf16.msra.mxu1 %v10949_v17  ;;  %v11014_v17 = vld [vmem:[%s13631_s7 + $0x28c] ss:$16 sps:$4 sm:$0xff]  }
 0x2b1   : > { %6438 = vmatprep.subr.bf16.mxu1 %v10954_v63  ;;  %v11012_v63 = vld [vmem:[%s13631_s7 + $0x288] ss:$16 sps:$4 sm:$0xff]  }
 0x2b3   : > { %6398 = vmatmul.mubr.bf16.vlgmr.msra.gmra.mrb[152].mxu1 %v12492_v59 }
 0x2b4   : > { %6439 = vmatpush1.bf16.msra.mxu1 %v10952_v57  ;;  %6407 = vmatprep.mubr.bf16.mxu1 %v11090_v2  ;;  %v11023_v57 = vld [vmem:[%s13631_s7 + $0x2ec] ss:$16 sps:$4 sm:$0xff]  }
 0x2b5   : > { %6440 = vmatprep.subr.bf16.mxu1 %v10957_v43  ;;  %v11038_v43 = vld [vmem:[%s13634_s10 + $0x78] sm:$0xff]  }
 0x2b8   : > { %6441 = vmatpush1.bf16.msra.mxu1 %v10955_v49  ;;  %v11041_v49 = vld [vmem:[%s13634_s10 + $0x80] sm:$0xff]  }
 0x2b9   : > { %6442 = vmatprep.subr.bf16.mxu1 %v10960_v60  ;;  %v11046_v60 = vld [vmem:[%s13634_s10 + $0xd8] sm:$0xff]  }
 0x2bb   : > { %6408 = vmatmul.mubr.bf16.gmra.mrb[156].mxu1 %v12476_v16 }
 0x2bc   : > { %6443 = vmatpush1.bf16.msra.mxu1 %v10958_v41  ;;  %6417 = vmatprep.mubr.bf16.mxu1 %v11090_v2  ;;  %v13173_v41 = vld [vmem:[%s13634_s10 + $0xe8] sm:$0xff]  }
 0x2bd   : > { %6444 = vmatprep.subr.bf16.mxu1 %v10963_v19  ;;  %v13180_v19 = vld [vmem:[%s13634_s10 + $0xa8] sm:$0xff]  }
 0x2c0   : > { %6445 = vmatpush1.bf16.msra.mxu1 %v10961_v5  ;;  %v13198_v5 = vld [vmem:[%s13634_s10 + $0xf8] sm:$0xff]  }
 0x2c1   : > { %6446 = vmatprep.subr.bf16.mxu1 %v10966_v31  ;;  %v13203_v31 = vld [vmem:[%s13634_s10 + $0xb8] sm:$0xff]  }
 0x2c3   : > { %6418 = vmatmul.mubr.bf16.gmra.mrb[160].mxu1 %v12540_v27 }
 0x2c4   : > { %6447 = vmatpush1.bf16.msra.mxu1 %v10964_v51  ;;  %6427 = vmatprep.mubr.bf16.mxu1 %v11090_v2  ;;  %v6589_v51 = vrot.slane %v13210_v21, %v732_v38 }
 0x2c5   : > { %6448 = vmatprep.subr.bf16.mxu1 %v10969_v25 }
 0x2c8   : > { %6449 = vmatpush1.bf16.msra.mxu1 %v10967_v50  ;;  %v6593_v50 = vrot.slane %v13210_v21, %v736_v46 }
 0x2c9   : > { %6450 = vmatprep.subr.bf16.mxu1 %v10972_v36 }
 0x2cb   : > { %6428 = vmatmul.mubr.bf16.gmra.mrb[164].mxu1 %v12519_v40 }
 0x2cc   : > { %6451 = vmatpush1.bf16.msra.mxu1 %v10970_v24  ;;  %6470 = vmatprep.mubr.bf16.mxu1 %v12427_v47  ;;  %v10979_v47 = vld [vmem:[%s13631_s7 + $0x128] ss:$16 sps:$4 sm:$0xff]  }
 0x2cd   : > { %6452 = vmatprep.subr.bf16.mxu1 %v10975_v53 }
 0x2d0   : > { %6453 = vmatpush1.bf16.msra.mxu1 %v10973_v35 }
 0x2d1   : > { %6454 = vmatprep.subr.bf16.mxu1 %v10978_v55 }
 0x2d4   : > { %6455 = vmatpush1.bf16.msra.mxu1 %v10976_v9 }
 0x2d5   : > { %6456 = vmatprep.subr.bf16.mxu1 %v10981_v22 }
 0x2d8   : > { %6457 = vmatpush1.bf16.msra.mxu1 %v10979_v47 }
 0x2d9   : > { %6458 = vmatprep.subr.bf16.mxu1 %v10984_v23 }
 0x2dc   : > { %6459 = vmatpush1.bf16.msra.mxu1 %v10982_v20 }
 0x2dd   : > { %6460 = vmatprep.subr.bf16.mxu1 %v10987_v4 }
 0x2e0   : > { %6461 = vmatpush1.bf16.msra.mxu1 %v10985_v10 }
 0x2e1   : > { %6462 = vmatprep.subr.bf16.mxu1 %v10990_v33 }
 0x2e4   : > { %6463 = vmatpush1.bf16.msra.mxu1 %v10988_v0 }
 0x2e5   : > { %6464 = vmatprep.subr.bf16.mxu1 %v10993_v15 }
 0x2e8   : > { %6465 = vmatpush1.bf16.msra.mxu1 %v10991_v1 }
 0x2e9   : > { %6466 = vmatprep.subr.bf16.mxu1 %v10996_v61 }
 0x2ec   : > { %6467 = vmatpush1.bf16.msra.mxu1 %v10994_v30 }
 0x2ed   : > { %6468 = vmatprep.subr.bf16.mxu1 %v10999_v62 }
 0x2f0   : > { %6469 = vmatpush1.bf16.msra.mxu1 %v10997_v28 }
 0x2f1   : > { %6511 = vmatprep.subr.bf16.mxu1 %v11002_v14 }
 0x2f3   : > { %6471 = vmatmul.mubr.bf16.vlgmr.msra.gmra.mrb[168].mxu1 %v12382_v39  ;;  %v11011_v39 = vld [vmem:[%s13631_s7 + $0x26c] ss:$16 sps:$4 sm:$0xff]  }
 0x2f4   : > { %6480 = vmatprep.mubr.bf16.mxu1 %v12458_v11  ;;  %6512 = vmatpush1.bf16.msra.mxu1 %v11000_v37  ;;  %v11009_v11 = vld [vmem:[%s13631_s7 + $0x268] ss:$16 sps:$4 sm:$0xff]  }
 0x2f5   : > { %6513 = vmatprep.subr.bf16.mxu1 %v11005_v58 }
 0x2f8   : > { %6514 = vmatpush1.bf16.msra.mxu1 %v11003_v6 }
 0x2f9   : > { %6515 = vmatprep.subr.bf16.mxu1 %v11008_v48 }
 0x2fb   : > { %6481 = vmatmul.mubr.bf16.gmra.mrb[172].mxu1 %v12443_v54  ;;  %v11017_v54 = vld [vmem:[%s13631_s7 + $0x2ac] ss:$16 sps:$4 sm:$0xff]  }
 0x2fc   : > { %6490 = vmatprep.mubr.bf16.mxu1 %v12549_v18  ;;  %6516 = vmatpush1.bf16.msra.mxu1 %v11006_v8  ;;  %v11015_v18 = vld [vmem:[%s13631_s7 + $0x2a8] ss:$16 sps:$4 sm:$0xff]  }
 0x2fd   : > { %6517 = vmatprep.subr.bf16.mxu1 %v11011_v39 }
 0x300   : > { %6518 = vmatpush1.bf16.msra.mxu1 %v11009_v11 }
 0x301   : > { %6519 = vmatprep.subr.bf16.mxu1 %v11014_v17 }
 0x303   : > { %6491 = vmatmul.mubr.bf16.gmra.mrb[176].mxu1 %v12509_v7  ;;  %v11018_v7 = vld [vmem:[%s13631_s7 + $0x2c8] ss:$16 sps:$4 sm:$0xff]  }
 0x304   : > { %6500 = vmatprep.mubr.bf16.mxu1 %v12561_v13  ;;  %6520 = vmatpush1.bf16.msra.mxu1 %v11012_v63  ;;  %v11037_v13 = vld [vmem:[%s13634_s10 + $0x30] sm:$0xff]  }
 0x305   : > { %6521 = vmatprep.subr.bf16.mxu1 %v11017_v54  ;;  %9796 = vmatpush3.bf16.msra.mxu0 %v11037_v13 }
 0x306   : > { %9797 = vmatprep.subr.bf16.mxu0 %v11038_v43  ;;  %v6600_v43 = vsub.s32 3, %v12143_v12 }
 0x308   : > { %6522 = vmatpush1.bf16.msra.mxu1 %v11015_v18 }
 0x309   : > { %6523 = vmatprep.subr.bf16.mxu1 %v11020_v3  ;;  %9798 = vmatpush3.bf16.msra.mxu0 %v11039_v32 }
 0x30b   : > { %6501 = vmatmul.mubr.bf16.gmra.mrb[180].mxu1 %v12551_v34  ;;  %v11040_v34 = vld [vmem:[%s13634_s10 + $0xc0] sm:$0xff]  }
 0x30c   : > { %6524 = vmatpush1.bf16.msra.mxu1 %v11018_v7  ;;  %6543 = vmatprep.mubr.bf16.mxu1 %v11090_v2 }
 0x30d   : > { %6525 = vmatprep.subr.bf16.mxu1 %v11023_v57  ;;  %9823 = vmatprep.subr.bf16.mxu0 %v11040_v34 }
 0x310   : > { %6526 = vmatpush1.bf16.msra.mxu1 %v11021_v29  ;;  %v6597_v29 = vrot.slane %v13210_v21, %v740_v52 }
 0x311   : > { %10269 = vmatprep.subr.bf16.mxu1 %v11040_v34  ;;  %v6601_v34 = vrot.slane %v13210_v21, %v6600_v43 }
 0x313   : > { %6544 = vmatmul.mubr.bf16.vlgmr.msra.gmra.mrb[168].mxu1 %v12492_v59  ;;  %v11042_v59 = vld [vmem:[%s13634_s10 + $0xc8] sm:$0xff]  }
 0x314   : > { %6553 = vmatprep.mubr.bf16.mxu1 %v11090_v2  ;;  %10277 = vmatpush3.bf16.msra.mxu1 %v11041_v49 }
 0x315   : > { %10270 = vmatprep.subr.bf16.mxu1 %v11042_v59 }
 0x31b   : > { %6554 = vmatmul.mubr.bf16.gmra.mrb[172].mxu1 %v12476_v16  ;;  %v11044_v16 = vld [vmem:[%s13634_s10 + $0xd0] sm:$0xff]  }
 0x31c   : > { %6563 = vmatprep.mubr.bf16.mxu1 %v11090_v2 }
 0x323   : > { %6564 = vmatmul.mubr.bf16.gmra.mrb[176].mxu1 %v12540_v27  ;;  %v11045_v27 = vld [vmem:[%s13634_s10 + $0x90] sm:$0xff]  }
 0x324   : > { %6573 = vmatprep.mubr.bf16.mxu1 %v11090_v2  ;;  %v11043_v2 = vld [vmem:[%s13634_s10 + $0x88] sm:$0xff]  }
 0x325   : > { %10278 = vmatpush3.bf16.msra.mxu1 %v11043_v2 }
 0x326   : > { %10271 = vmatprep.subr.bf16.mxu1 %v11044_v16 }
 0x329   : > { %10279 = vmatpush3.bf16.msra.mxu1 %v11045_v27 }
 0x32a   : > { %10272 = vmatprep.subr.bf16.mxu1 %v11046_v60 }
 0x32b   : > { %6574 = vmatmul.mubr.bf16.gmra.mrb[180].mxu1 %v12519_v40  ;;  %v11047_v40 = vld [vmem:[%s13634_s10 + $0x98] sm:$0xff]  }
 0x32d   : > { %10280 = vmatpush3.bf16.msra.mxu1 %v11047_v40 }
 0x32e   : > { %10273 = vmatprep.subr.bf16.mxu1 %v11048_v26 }
 0x331   : > { %10281 = vmatpush3.bf16.msra.mxu1 %v13168_v56 }
 0x332   : > { %10274 = vmatprep.subr.bf16.mxu1 %v13173_v41 }
 0x335   : > { %10282 = vmatpush3.bf16.msra.mxu1 %v13180_v19 }
 0x336   : > { %10275 = vmatprep.subr.bf16.mxu1 %v13186_v45 }
 0x339   : > { %10283 = vmatpush3.bf16.msra.mxu1 %v13191_v42 }
 0x33a   : > { %10276 = vmatprep.subr.bf16.mxu1 %v13198_v5 }
 0x33d   : > { %10284 = vmatpush3.bf16.msra.mxu1 %v13203_v31 }
 0x386   : > { %v6399_v25 = vpop.f32.mrb[152].mxu1 }
 0x387   : > { %v6401_v36 = vpop.f32.mrb[153].mxu1  ;;  %v6606_v53 = vadd.f32 %v6589_v51, %v6399_v25 }
 0x388   : > { %v6403_v24 = vpop.f32.mrb[154].mxu1  ;;  %v6607_v9 = vadd.f32 %v6593_v50, %v6401_v36 }
 0x389   : > { %v6610_v35 = vadd.f32 %v6589_v51, %v6403_v24  ;;  %v6405_v55 = vpop.f32.mrb[155].mxu1 }
 0x38a   : > { %v6611_v22 = vadd.f32 %v6593_v50, %v6405_v55 }
 0x38b   : > { %v6638_v47 = vpack.c.bf16 %v6610_v35, %v6606_v53 }
 0x38c   : > { %v6639_v23 = vpack.c.bf16 %v6611_v22, %v6607_v9 }
 0x38e   : > { %v6409_v20 = vpop.f32.mrb[156].mxu1  ;;  %6942 = vmatprep.mubr.bf16.mxu0 %v6639_v23 }
 0x38f   : > { %v6411_v4 = vpop.f32.mrb[157].mxu1  ;;  %6943 = vmatmul.mubr.bf16.vlgmr.msra.gmra.mrb[56].mxu0 %v6638_v47  ;;  %v6614_v38 = vadd.f32 %v6589_v51, %v6409_v20  ;;  %v11056_v20 = vld [vmem:[%s13635_s11] sm:$0xff]  }
 0x390   : > { %v6413_v10 = vpop.f32.mrb[158].mxu1  ;;  %9824 = vmatpush3.bf16.msra.mxu0 %v11041_v49  ;;  %v6615_v46 = vadd.f32 %v6593_v50, %v6411_v4  ;;  %v11057_v4 = vld [vmem:[%s13635_s11 + $0x8] sm:$0xff]  }
 0x391   : > { %v6618_v33 = vadd.f32 %v6589_v51, %v6413_v10  ;;  %v6415_v0 = vpop.f32.mrb[159].mxu1  ;;  %9825 = vmatprep.subr.bf16.mxu0 %v11042_v59 }
 0x392   : > { %v6619_v15 = vadd.f32 %v6593_v50, %v6415_v0 }
 0x393   : > { %v6642_v1 = vpack.c.bf16 %v6618_v33, %v6614_v38  ;;  %v11058_v33 = vld [vmem:[%s13242_s30] sm:$0xff]  }
 0x394   : > { %v6643_v61 = vpack.c.bf16 %v6619_v15, %v6615_v46  ;;  %9826 = vmatpush3.bf16.msra.mxu0 %v11043_v2 }
 0x395   : > { %9827 = vmatprep.subr.bf16.mxu0 %v11044_v16 }
 0x396   : > { %v6419_v30 = vpop.f32.mrb[160].mxu1  ;;  %6950 = vmatprep.mubr.bf16.mxu0 %v6643_v61 }
 0x397   : > { %v6421_v62 = vpop.f32.mrb[161].mxu1  ;;  %6951 = vmatmul.mubr.bf16.gmra.mrb[60].mxu0 %v6642_v1  ;;  %v6622_v14 = vadd.f32 %v6589_v51, %v6419_v30 }
 0x398   : > { %v6423_v28 = vpop.f32.mrb[162].mxu1  ;;  %9828 = vmatpush3.bf16.msra.mxu0 %v11045_v27  ;;  %v6623_v6 = vadd.f32 %v6593_v50, %v6421_v62 }
 0x399   : > { %v6626_v37 = vadd.f32 %v6589_v51, %v6423_v28  ;;  %v6425_v58 = vpop.f32.mrb[163].mxu1  ;;  %9829 = vmatprep.subr.bf16.mxu0 %v11046_v60  ;;  %v11059_v28 = vld [vmem:[%s13242_s30 + $0x8] sm:$0xff]  }
 0x39a   : > { %v6627_v48 = vadd.f32 %v6593_v50, %v6425_v58  ;;  %v11062_v58 = vld [vmem:[%s13242_s30 + $0x20] sm:$0xff]  }
 0x39b   : > { %v6646_v8 = vpack.c.bf16 %v6626_v37, %v6622_v14  ;;  %v11060_v14 = vld [vmem:[%s13242_s30 + $0x10] sm:$0xff]   ;;  %v11061_v37 = vld [vmem:[%s13242_s30 + $0x18] sm:$0xff]  }
 0x39c   : > { %v6647_v39 = vpack.c.bf16 %v6627_v48, %v6623_v6  ;;  %9830 = vmatpush3.bf16.msra.mxu0 %v11047_v40  ;;  %v11063_v6 = vld [vmem:[%s13242_s30 + $0x28] sm:$0xff]   ;;  %v11064_v48 = vld [vmem:[%s13242_s30 + $0x30] sm:$0xff]  }
 0x39d   : > { %9831 = vmatprep.subr.bf16.mxu0 %v11048_v26 }
 0x39e   : > { %v6429_v11 = vpop.f32.mrb[164].mxu1  ;;  %6958 = vmatprep.mubr.bf16.mxu0 %v6647_v39  ;;  %v11066_v39 = vld [vmem:[%s13242_s30 + $0x40] sm:$0xff]  }
 0x39f   : > { %v6431_v17 = vpop.f32.mrb[165].mxu1  ;;  %6959 = vmatmul.mubr.bf16.gmra.mrb[64].mxu0 %v6646_v8  ;;  %v6630_v54 = vadd.f32 %v6589_v51, %v6429_v11  ;;  %v11065_v8 = vld [vmem:[%s13242_s30 + $0x38] sm:$0xff]   ;;  %v11067_v11 = vld [vmem:[%s13242_s30 + $0x48] sm:$0xff]  }
 0x3a0   : > { %v6433_v63 = vpop.f32.mrb[166].mxu1  ;;  %9832 = vmatpush3.bf16.msra.mxu0 %v13168_v56  ;;  %v6631_v44 = vadd.f32 %v6593_v50, %v6431_v17  ;;  %v11068_v17 = vld [vmem:[%s13242_s30 + $0x50] sm:$0xff]  }
 0x3a1   : > { %v6634_v18 = vadd.f32 %v6589_v51, %v6433_v63  ;;  %v6435_v3 = vpop.f32.mrb[167].mxu1  ;;  %9833 = vmatprep.subr.bf16.mxu0 %v13173_v41  ;;  %v11069_v63 = vld [vmem:[%s13242_s30 + $0x58] sm:$0xff]  }
 0x3a2   : > { %v6635_v7 = vadd.f32 %v6593_v50, %v6435_v3  ;;  %v11072_v3 = vld [vmem:[%s13242_s30 + $0x70] sm:$0xff]  }
 0x3a3   : > { %v6650_v13 = vpack.c.bf16 %v6634_v18, %v6630_v54  ;;  %v11070_v54 = vld [vmem:[%s13242_s30 + $0x60] sm:$0xff]   ;;  %v11071_v18 = vld [vmem:[%s13242_s30 + $0x68] sm:$0xff]  }
 0x3a4   : > { %v6651_v57 = vpack.c.bf16 %v6635_v7, %v6631_v44  ;;  %9834 = vmatpush3.bf16.msra.mxu0 %v13180_v19  ;;  %v11073_v44 = vld [vmem:[%s13242_s30 + $0x78] sm:$0xff]  }
 0x3a5   : > { %9835 = vmatprep.subr.bf16.mxu0 %v13186_v45 }
 0x3a6   : > { %6966 = vmatprep.mubr.bf16.mxu0 %v6651_v57 }
 0x3a7   : > { %6967 = vmatmul.mubr.bf16.gmra.mrb[68].mxu0 %v6650_v13 }
 0x3a8   : > { %9836 = vmatpush3.bf16.msra.mxu0 %v13191_v42 }
 0x3a9   : > { %9837 = vmatprep.subr.bf16.mxu0 %v13198_v5 }
 0x3ac   : > { %9838 = vmatpush3.bf16.msra.mxu0 %v13203_v31 }
 0x3ad   : > { %10105 = vmatprep.subr.bf16.mxu0 %v11056_v20 }
 0x3e6   : > { %v6545_v32 = vpop.f32.mrb[168].mxu1 }
 0x3e7   : > { %v6547_v49 = vpop.f32.mrb[169].mxu1  ;;  %v6608_v2 = vadd.f32 %v6597_v29, %v6545_v32  ;;  %v7040_v32 = vld [vmem:[%s13633_s9] sm:$0xff] }
 0x3e8   : > { %v6549_v59 = vpop.f32.mrb[170].mxu1  ;;  %v6609_v60 = vadd.f32 %v6601_v34, %v6547_v49 }
 0x3e9   : > { %v6612_v16 = vadd.f32 %v6597_v29, %v6549_v59  ;;  %v6551_v27 = vpop.f32.mrb[171].mxu1 }
 0x3ea   : > { %v6613_v40 = vadd.f32 %v6601_v34, %v6551_v27 }
 0x3eb   : > { %v6640_v26 = vpack.c.bf16 %v6612_v16, %v6608_v2 }
 0x3ec   : > { %v6641_v56 = vpack.c.bf16 %v6613_v40, %v6609_v60 }
 0x3ee   : > { %v6555_v41 = vpop.f32.mrb[172].mxu1  ;;  %7007 = vmatprep.mubr.bf16.mxu0 %v6641_v56 }
 0x3ef   : > { %v6557_v19 = vpop.f32.mrb[173].mxu1  ;;  %7008 = vmatmul.mubr.bf16.vlgmr.msra.gmra.mrb[72].mxu0 %v6640_v26  ;;  %v6616_v12 = vadd.f32 %v6597_v29, %v6555_v41 }
 0x3f0   : > { %v6559_v45 = vpop.f32.mrb[174].mxu1  ;;  %v6617_v5 = vadd.f32 %v6601_v34, %v6557_v19  ;;  %10106 = vmatpush3.bf16.msra.mxu0 %v11056_v20 }
 0x3f1   : > { %v6620_v42 = vadd.f32 %v6597_v29, %v6559_v45  ;;  %v6561_v52 = vpop.f32.mrb[175].mxu1  ;;  %10107 = vmatprep.subr.bf16.mxu0 %v11057_v4 }
 0x3f2   : > { %v6621_v31 = vadd.f32 %v6601_v34, %v6561_v52 }
 0x3f3   : > { %v6644_v21 = vpack.c.bf16 %v6620_v42, %v6616_v12 }
 0x3f4   : > { %v6645_v51 = vpack.c.bf16 %v6621_v31, %v6617_v5  ;;  %10108 = vmatpush3.bf16.msra.mxu0 %v11057_v4 }
 0x3f6   : > { %v6565_v25 = vpop.f32.mrb[176].mxu1  ;;  %7015 = vmatprep.mubr.bf16.mxu0 %v6645_v51 }
 0x3f7   : > { %v6567_v50 = vpop.f32.mrb[177].mxu1  ;;  %7016 = vmatmul.mubr.bf16.gmra.mrb[76].mxu0 %v6644_v21  ;;  %v6624_v24 = vadd.f32 %v6597_v29, %v6565_v25 }
 0x3f8   : > { %v6569_v36 = vpop.f32.mrb[178].mxu1  ;;  %v6625_v55 = vadd.f32 %v6601_v34, %v6567_v50 }
 0x3f9   : > { %v6628_v53 = vadd.f32 %v6597_v29, %v6569_v36  ;;  %v6571_v35 = vpop.f32.mrb[179].mxu1 }
 0x3fa   : > { %v6629_v9 = vadd.f32 %v6601_v34, %v6571_v35 }
 0x3fb   : > { %v6648_v22 = vpack.c.bf16 %v6628_v53, %v6624_v24 }
 0x3fc   : > { %v6649_v47 = vpack.c.bf16 %v6629_v9, %v6625_v55 }
 0x3fe   : > { %v6575_v23 = vpop.f32.mrb[180].mxu1  ;;  %7023 = vmatprep.mubr.bf16.mxu0 %v6649_v47 }
 0x3ff   : > { %v6577_v10 = vpop.f32.mrb[181].mxu1  ;;  %7024 = vmatmul.mubr.bf16.gmra.mrb[80].mxu0 %v6648_v22  ;;  %v6632_v0 = vadd.f32 %v6597_v29, %v6575_v23 }
 0x400   : > { %v6579_v38 = vpop.f32.mrb[182].mxu1  ;;  %v6633_v1 = vadd.f32 %v6601_v34, %v6577_v10  ;;  %10109 = vmatprep.mubr.msk.bf16.mxu0 %vm7200_vm7, %v11058_v33 }
 0x401   : > { %v6636_v46 = vadd.f32 %v6597_v29, %v6579_v38  ;;  %v6581_v15 = vpop.f32.mrb[183].mxu1 }
 0x402   : > { %v6637_v61 = vadd.f32 %v6601_v34, %v6581_v15 }
 0x403   : > { %v6652_v30 = vpack.c.bf16 %v6636_v46, %v6632_v0 }
 0x404   : > { %v6653_v62 = vpack.c.bf16 %v6637_v61, %v6633_v1 }
 0x406   : > { %7031 = vmatprep.mubr.bf16.mxu1 %v6653_v62 }
 0x407   : > { %7032 = vmatmul.mubr.bf16.vlgmr.msra.gmra.mrb[184].mxu1 %v6652_v30  ;;  %10110 = vmatmul.mubr.msk.bf16.vlgmr.msra.gmra.mrb[84].mxu0 %vm7200_vm7, %v11059_v28 }
 0x408   : > { %10113 = vmatprep.mubr.msk.bf16.mxu0 %vm7200_vm7, %v11060_v14 }
 0x40f   : > { %10114 = vmatmul.mubr.msk.bf16.gmra.mrb[88].mxu0 %vm7200_vm7, %v11061_v37 }
 0x410   : > { %10117 = vmatprep.mubr.msk.bf16.mxu0 %vm7200_vm7, %v11062_v58 }
 0x417   : > { %10118 = vmatmul.mubr.msk.bf16.gmra.mrb[92].mxu0 %vm7200_vm7, %v11063_v6 }
 0x418   : > { %10121 = vmatprep.mubr.msk.bf16.mxu0 %vm7200_vm7, %v11064_v48 }
 0x41f   : > { %10122 = vmatmul.mubr.msk.bf16.gmra.mrb[96].mxu0 %vm7200_vm7, %v11065_v8 }
 0x420   : > { %10125 = vmatprep.mubr.msk.bf16.mxu0 %vm7200_vm7, %v11066_v39 }
 0x427   : > { %10126 = vmatmul.mubr.msk.bf16.gmra.mrb[100].mxu0 %vm7200_vm7, %v11067_v11 }
 0x428   : > { %10129 = vmatprep.mubr.msk.bf16.mxu0 %vm7200_vm7, %v11068_v17 }
 0x42f   : > { %10130 = vmatmul.mubr.msk.bf16.gmra.mrb[104].mxu0 %vm7200_vm7, %v11069_v63 }
 0x430   : > { %10133 = vmatprep.mubr.msk.bf16.mxu0 %vm7200_vm7, %v11070_v54 }
 0x437   : > { %10134 = vmatmul.mubr.msk.bf16.gmra.mrb[108].mxu0 %vm7200_vm7, %v11071_v18 }
 0x438   : > { %10137 = vmatprep.mubr.msk.bf16.mxu0 %vm7200_vm7, %v11072_v3 }
 0x43f   : > { %10138 = vmatmul.mubr.msk.bf16.gmra.mrb[112].mxu0 %vm7200_vm7, %v11073_v44 }
 0x440   : > { %10157 = vmatprep.mubr.msk.f32.mxu0 %vm1109_vm3, %v7040_v32 }
 0x462   : > { %v9799_v7 = vpop.f32.mrb[56].mxu0 }
 0x463   : > { %v9800_v13 = vpop.f32.mrb[57].mxu0 }
 0x464   : > { %v9801_v57 = vadd.f32 %v9800_v13, %v9799_v7  ;;  %v9802_v43 = vpop.f32.mrb[58].mxu0  ;;  %v11074_v13 = vld [vmem:[%s13637_s13] sm:$0xff]  }
 0x465   : > { %v9803_v29 = vpop.f32.mrb[59].mxu0 }
 0x466   : > { %v9804_v34 = vadd.f32 %v9803_v29, %v9802_v43  ;;  %v7041_v29 = vld [vmem:[%s13633_s9 + $0x8] sm:$0xff] }
 0x46a   : > { %v9805_v49 = vpop.f32.mrb[60].mxu0 }
 0x46b   : > { %v9806_v59 = vpop.f32.mrb[61].mxu0 }
 0x46c   : > { %v9807_v2 = vadd.f32 %v9806_v59, %v9805_v49  ;;  %v9808_v16 = vpop.f32.mrb[62].mxu0  ;;  %v11075_v59 = vld [vmem:[%s13637_s13 + $0x8] sm:$0xff]  }
 0x46d   : > { %v9809_v27 = vpop.f32.mrb[63].mxu0 }
 0x46e   : > { %v9810_v60 = vadd.f32 %v9809_v27, %v9808_v16  ;;  %v7044_v16 = vld [vmem:[%s13633_s9 + $0x20] sm:$0xff]  ;;  %v11076_v27 = vld [vmem:[%s13637_s13 + $0x10] sm:$0xff]  }
 0x472   : > { %v9811_v40 = vpop.f32.mrb[64].mxu0 }
 0x473   : > { %v9812_v26 = vpop.f32.mrb[65].mxu0 }
 0x474   : > { %v9813_v56 = vadd.f32 %v9812_v26, %v9811_v40  ;;  %v9814_v41 = vpop.f32.mrb[66].mxu0  ;;  %v7045_v26 = vld [vmem:[%s13633_s9 + $0x28] sm:$0xff] }
 0x475   : > { %v9815_v19 = vpop.f32.mrb[67].mxu0 }
 0x476   : > { %v9816_v45 = vadd.f32 %v9815_v19, %v9814_v41  ;;  %v7046_v41 = vld [vmem:[%s13633_s9 + $0x30] sm:$0xff] }
 0x47a   : > { %v9817_v12 = vpop.f32.mrb[68].mxu0 }
 0x47b   : > { %v9818_v42 = vpop.f32.mrb[69].mxu0 }
 0x47c   : > { %v9819_v52 = vadd.f32 %v9818_v42, %v9817_v12  ;;  %v9820_v5 = vpop.f32.mrb[70].mxu0  ;;  %v7047_v12 = vld [vmem:[%s13633_s9 + $0x38] sm:$0xff]  ;;  %v7048_v42 = vld [vmem:[%s13633_s9 + $0x40] sm:$0xff] }
 0x47d   : > { %v9821_v31 = vpop.f32.mrb[71].mxu0 }
 0x47e   : > { %v9822_v21 = vadd.f32 %v9821_v31, %v9820_v5 }
 0x4c2   : > { %v9839_v51 = vpop.f32.mrb[72].mxu0 }
 0x4c3   : > { %v9840_v25 = vpop.f32.mrb[73].mxu0 }
 0x4c4   : > { %v9841_v50 = vadd.f32 %v9840_v25, %v9839_v51  ;;  %v9842_v36 = vpop.f32.mrb[74].mxu0  ;;  %v7050_v25 = vld [vmem:[%s13633_s9 + $0x50] sm:$0xff] }
 0x4c5   : > { %v9843_v24 = vpop.f32.mrb[75].mxu0 }
 0x4c6   : > { %v7010_v53 = vadd.f32 %v9841_v50, %v9801_v57  ;;  %v9844_v35 = vadd.f32 %v9843_v24, %v9842_v36  ;;  %v7051_v36 = vld [vmem:[%s13633_s9 + $0x58] sm:$0xff]  ;;  %v7052_v24 = vld [vmem:[%s13633_s9 + $0x60] sm:$0xff] }
 0x4c8   : > { %v7013_v55 = vadd.f32 %v9844_v35, %v9804_v34  ;;  %v7042_v34 = vld [vmem:[%s13633_s9 + $0x10] sm:$0xff] }
 0x4c9   : > { %v7054_v35 = vld [vmem:[%s13633_s9 + $0x70] sm:$0xff] }
 0x4ca   : > { %v9845_v9 = vpop.f32.mrb[76].mxu0  ;;  %v10253_v22 = vpack.c.bf16 %v7013_v55, %v7010_v53  ;;  %v7053_v53 = vld [vmem:[%s13633_s9 + $0x68] sm:$0xff]  ;;  %v7055_v55 = vld [vmem:[%s13633_s9 + $0x78] sm:$0xff] }
 0x4cb   : > { %v9846_v47 = vpop.f32.mrb[77].mxu0 }
 0x4cc   : > { %v9847_v23 = vadd.f32 %v9846_v47, %v9845_v9  ;;  %v9848_v20 = vpop.f32.mrb[78].mxu0  ;;  %10254 = vmatprep.subr.bf16.mxu0 %v10253_v22  ;;  %v7056_v9 = vld [vmem:[%s13633_s9 + $0x80] sm:$0xff]  ;;  %v7058_v47 = vld [vmem:[%s13633_s9 + $0x90] sm:$0xff] }
 0x4cd   : > { %v9849_v4 = vpop.f32.mrb[79].mxu0  ;;  %10256 = vmatpush3.bf16.msra.mxu0 %v10253_v22  ;;  %v7057_v22 = vld [vmem:[%s13633_s9 + $0x88] sm:$0xff] }
 0x4ce   : > { %v7018_v10 = vadd.f32 %v9847_v23, %v9807_v2  ;;  %v9850_v38 = vadd.f32 %v9849_v4, %v9848_v20  ;;  %v7043_v2 = vld [vmem:[%s13633_s9 + $0x18] sm:$0xff]  ;;  %v7060_v20 = vld [vmem:[%s13633_s9 + $0xa0] sm:$0xff]  ;;  %v7061_v4 = vld [vmem:[%s13633_s9 + $0xa8] sm:$0xff] }
 0x4cf   : > { %v7059_v23 = vld [vmem:[%s13633_s9 + $0x98] sm:$0xff] }
 0x4d0   : > { %v7021_v33 = vadd.f32 %v9850_v38, %v9810_v60  ;;  %v7063_v38 = vld [vmem:[%s13633_s9 + $0xb8] sm:$0xff] }
 0x4d2   : > { %v9851_v0 = vpop.f32.mrb[80].mxu0  ;;  %v10257_v46 = vpack.c.bf16 %v7021_v33, %v7018_v10  ;;  %v7062_v10 = vld [vmem:[%s13633_s9 + $0xb0] sm:$0xff]  ;;  %v7064_v33 = vld [vmem:[%s13633_s9 + $0xc0] sm:$0xff] }
 0x4d3   : > { %v9852_v15 = vpop.f32.mrb[81].mxu0 }
 0x4d4   : > { %v9853_v1 = vadd.f32 %v9852_v15, %v9851_v0  ;;  %v9854_v61 = vpop.f32.mrb[82].mxu0  ;;  %10258 = vmatprep.subr.bf16.mxu0 %v10257_v46  ;;  %v7065_v0 = vld [vmem:[%s13633_s9 + $0xc8] sm:$0xff]  ;;  %v7067_v15 = vld [vmem:[%s13633_s9 + $0xd8] sm:$0xff] }
 0x4d5   : > { %v9855_v30 = vpop.f32.mrb[83].mxu0  ;;  %10260 = vmatpush3.bf16.msra.mxu0 %v10257_v46  ;;  %v7066_v46 = vld [vmem:[%s13633_s9 + $0xd0] sm:$0xff] }
 0x4d6   : > { %v7026_v62 = vadd.f32 %v9853_v1, %v9813_v56  ;;  %v9856_v28 = vadd.f32 %v9855_v30, %v9854_v61  ;;  %v7068_v1 = vld [vmem:[%s13633_s9 + $0xe0] sm:$0xff] }
 0x4d8   : > { %v7029_v14 = vadd.f32 %v9856_v28, %v9816_v45  ;;  %v11077_v45 = vld [vmem:[%s13637_s13 + $0x18] sm:$0xff]   ;;  %v7069_v28 = vld [vmem:[%s13633_s9 + $0xe8] sm:$0xff] }
 0x4da   : > { %v9857_v37 = vpop.f32.mrb[184].mxu1  ;;  %v10261_v58 = vpack.c.bf16 %v7029_v14, %v7026_v62  ;;  %v13280_v48 = vpop.f32.mrb[84].mxu0 }
 0x4db   : > { %v9858_v6 = vpop.f32.mrb[185].mxu1  ;;  %v13282_v11 = vpop.f32.mrb[85].mxu0 }
 0x4dc   : > { %v9859_v8 = vadd.f32 %v9858_v6, %v9857_v37  ;;  %v9860_v39 = vpop.f32.mrb[186].mxu1  ;;  %10262 = vmatprep.subr.bf16.mxu0 %v10261_v58  ;;  %v13284_v63 = vpop.f32.mrb[86].mxu0  ;;  %v7070_v37 = vld [vmem:[%s13633_s9 + $0xf0] sm:$0xff] }
 0x4dd   : > { %v9861_v17 = vpop.f32.mrb[187].mxu1  ;;  %10264 = vmatpush3.bf16.msra.mxu0 %v10261_v58  ;;  %v13286_v3 = vpop.f32.mrb[87].mxu0  ;;  %v7071_v58 = vld [vmem:[%s13633_s9 + $0xf8] sm:$0xff] }
 0x4de   : > { %v7034_v54 = vadd.f32 %v9859_v8, %v9819_v52  ;;  %v9862_v18 = vadd.f32 %v9861_v17, %v9860_v39  ;;  %v11078_v52 = vld [vmem:[%s13637_s13 + $0x20] sm:$0xff]  }
 0x4e0   : > { %v7037_v44 = vadd.f32 %v9862_v18, %v9822_v21  ;;  %v7049_v21 = vld [vmem:[%s13633_s9 + $0x48] sm:$0xff] }
 0x4e2   : > { %v10265_v7 = vpack.c.bf16 %v7037_v44, %v7034_v54  ;;  %v13291_v57 = vpop.f32.mrb[88].mxu0 }
 0x4e3   : > { %v13293_v43 = vpop.f32.mrb[89].mxu0 }
 0x4e4   : > { %10266 = vmatprep.subr.bf16.mxu0 %v10265_v7  ;;  %v13298_v32 = vpop.f32.mrb[90].mxu0 }
 0x4e5   : > { %10268 = vmatpush3.bf16.msra.mxu0 %v10265_v7  ;;  %v13303_v49 = vpop.f32.mrb[91].mxu0 }
 0x4e6   : > { %10205 = vmatprep.subr.bf16.mxu0 %v11074_v13 }
 0x4e8   : > { %10158 = vmatmul.mubr.msk.f32.vlgmr.msra.gmra.mrb[116].mxu0 %vm1109_vm3, %v7041_v29 }
 0x4e9   : > { %10160 = vmatprep.mubr.msk.f32.mxu0 %vm1109_vm3, %v7042_v34  ;;  %10206 = vmatpush3.bf16.msra.mxu0 %v11074_v13 }
 0x4ea   : > { %10207 = vmatprep.subr.bf16.mxu0 %v11075_v59  ;;  %v13319_v60 = vpop.f32.mrb[92].mxu0 }
 0x4eb   : > { %v13322_v40 = vpop.f32.mrb[93].mxu0 }
 0x4ec   : > { %10161 = vmatmul.mubr.msk.f32.gmra.mrb[118].mxu0 %vm1109_vm3, %v7043_v2  ;;  %v13328_v56 = vpop.f32.mrb[94].mxu0  ;;  %v11079_v2 = vld [vmem:[%s13637_s13 + $0x28] sm:$0xff]  }
 0x4ed   : > { %10163 = vmatprep.mubr.msk.f32.mxu0 %vm1109_vm3, %v7044_v16  ;;  %10208 = vmatpush3.bf16.msra.mxu0 %v11075_v59  ;;  %v13333_v19 = vpop.f32.mrb[95].mxu0  ;;  %v11080_v16 = vld [vmem:[%s13637_s13 + $0x30] sm:$0xff]  }
 0x4ee   : > { %10209 = vmatprep.subr.bf16.mxu0 %v11076_v27 }
 0x4f0   : > { %10164 = vmatmul.mubr.msk.f32.gmra.mrb[120].mxu0 %vm1109_vm3, %v7045_v26 }
 0x4f1   : > { %10166 = vmatprep.mubr.msk.f32.mxu0 %vm1109_vm3, %v7046_v41  ;;  %10210 = vmatpush3.bf16.msra.mxu0 %v11076_v27  ;;  %v11081_v27 = vld [vmem:[%s13637_s13 + $0x38] sm:$0xff]   ;;  %v13495_v41 = vld [vmem:[%s13636_s12] ss:$0 sm:$0xff] }
 0x4f2   : > { %10211 = vmatprep.subr.bf16.mxu0 %v11077_v45  ;;  %v13349_v5 = vpop.f32.mrb[96].mxu0 }
 0x4f3   : > { %v13352_v31 = vpop.f32.mrb[97].mxu0 }
 0x4f4   : > { %10167 = vmatmul.mubr.msk.f32.gmra.mrb[122].mxu0 %vm1109_vm3, %v7047_v12  ;;  %v13358_v51 = vpop.f32.mrb[98].mxu0 }
 0x4f5   : > { %10169 = vmatprep.mubr.msk.f32.mxu0 %vm1109_vm3, %v7048_v42  ;;  %10212 = vmatpush3.bf16.msra.mxu0 %v11077_v45  ;;  %v13363_v50 = vpop.f32.mrb[99].mxu0 }
 0x4f6   : > { %10213 = vmatprep.subr.bf16.mxu0 %v11078_v52 }
 0x4f8   : > { %10170 = vmatmul.mubr.msk.f32.gmra.mrb[124].mxu0 %vm1109_vm3, %v7049_v21 }
 0x4f9   : > { %10172 = vmatprep.mubr.msk.f32.mxu0 %vm1109_vm3, %v7050_v25  ;;  %10214 = vmatpush3.bf16.msra.mxu0 %v11078_v52 }
 0x4fa   : > { %v13437_v61 = vpop.f32.mrb[100].mxu0  ;;  %10215 = vmatprep.subr.bf16.mxu0 %v11079_v2 }
 0x4fb   : > { %v13439_v30 = vpop.f32.mrb[101].mxu0 }
 0x4fc   : > { %10173 = vmatmul.mubr.msk.f32.gmra.mrb[126].mxu0 %vm1109_vm3, %v7051_v36  ;;  %v13442_v62 = vpop.f32.mrb[102].mxu0 }
 0x4fd   : > { %10175 = vmatprep.mubr.msk.f32.mxu0 %vm1109_vm3, %v7052_v24  ;;  %v13448_v14 = vpop.f32.mrb[103].mxu0  ;;  %10216 = vmatpush3.bf16.msra.mxu0 %v11079_v2 }
 0x4fe   : > { %10217 = vmatprep.subr.bf16.mxu0 %v11080_v16 }
 0x500   : > { %10176 = vmatmul.mubr.msk.f32.gmra.mrb[128].mxu0 %vm1109_vm3, %v7053_v53 }
 0x501   : > { %10178 = vmatprep.mubr.msk.f32.mxu0 %vm1109_vm3, %v7054_v35  ;;  %10218 = vmatpush3.bf16.msra.mxu0 %v11080_v16 }
 0x502   : > { %v13458_v6 = vpop.f32.mrb[104].mxu0  ;;  %10219 = vmatprep.subr.bf16.mxu0 %v11081_v27 }
 0x503   : > { %v13460_v8 = vpop.f32.mrb[105].mxu0 }
 0x504   : > { %10179 = vmatmul.mubr.msk.f32.gmra.mrb[130].mxu0 %vm1109_vm3, %v7055_v55  ;;  %v13463_v39 = vpop.f32.mrb[106].mxu0 }
 0x505   : > { %10181 = vmatprep.mubr.msk.f32.mxu0 %vm1109_vm3, %v7056_v9  ;;  %v13465_v17 = vpop.f32.mrb[107].mxu0  ;;  %10220 = vmatpush3.bf16.msra.mxu0 %v11081_v27 }
 0x508   : > { %10182 = vmatmul.mubr.msk.f32.gmra.mrb[132].mxu0 %vm1109_vm3, %v7057_v22 }
 0x509   : > { %10184 = vmatprep.mubr.msk.f32.mxu0 %vm1109_vm3, %v7058_v47 }
 0x50a   : > { %v13467_v54 = vpop.f32.mrb[108].mxu0 }
 0x50b   : > { %v13469_v18 = vpop.f32.mrb[109].mxu0 }
 0x50c   : > { %10185 = vmatmul.mubr.msk.f32.gmra.mrb[134].mxu0 %vm1109_vm3, %v7059_v23  ;;  %v13471_v44 = vpop.f32.mrb[110].mxu0 }
 0x50d   : > { %10187 = vmatprep.mubr.msk.f32.mxu0 %vm1109_vm3, %v7060_v20  ;;  %v13473_v7 = vpop.f32.mrb[111].mxu0 }
 0x510   : > { %10188 = vmatmul.mubr.msk.f32.gmra.mrb[136].mxu0 %vm1109_vm3, %v7061_v4 }
 0x511   : > { %10190 = vmatprep.mubr.msk.f32.mxu0 %vm1109_vm3, %v7062_v10 }
 0x512   : > { %v13475_v13 = vpop.f32.mrb[112].mxu0 }
 0x513   : > { %v13477_v29 = vpop.f32.mrb[113].mxu0 }
 0x514   : > { %10191 = vmatmul.mubr.msk.f32.gmra.mrb[138].mxu0 %vm1109_vm3, %v7063_v38  ;;  %v13479_v34 = vpop.f32.mrb[114].mxu0 }
 0x515   : > { %10193 = vmatprep.mubr.msk.f32.mxu0 %vm1109_vm3, %v7064_v33  ;;  %v13481_v59 = vpop.f32.mrb[115].mxu0 }
 0x518   : > { %10194 = vmatmul.mubr.msk.f32.gmra.mrb[140].mxu0 %vm1109_vm3, %v7065_v0 }
 0x519   : > { %10196 = vmatprep.mubr.msk.f32.mxu0 %vm1109_vm3, %v7066_v46 }
 0x51c   : > { %10197 = vmatmul.mubr.msk.f32.gmra.mrb[142].mxu0 %vm1109_vm3, %v7067_v15 }
 0x51d   : > { %10199 = vmatprep.mubr.msk.f32.mxu0 %vm1109_vm3, %v7068_v1 }
 0x520   : > { %10200 = vmatmul.mubr.msk.f32.gmra.mrb[144].mxu0 %vm1109_vm3, %v7069_v28 }
 0x521   : > { %10202 = vmatprep.mubr.msk.f32.mxu0 %vm1109_vm3, %v7070_v37 }
 0x524   : > { %10203 = vmatmul.mubr.msk.f32.gmra.mrb[146].mxu0 %vm1109_vm3, %v7071_v58 }
 0x5bb   : > { %v10159_v26 = vpop.f32.mrb[116].mxu0 }
 0x5bc   : > { %v7578_v45 = vadd.f32 %v10159_v26, %v13286_v3  ;;  %v7572_v12 = vpop.f32.mrb[117].mxu0 }
 0x5bd   : > { %v7573_v42 = vadd.f32 %v7572_v12, %v13282_v11 }
 0x5be   : > { %v7739_v52 = vadd.f32 %v13495_v41, %v7578_v45 }
 0x5bf   : > { %v7738_v21 = vadd.f32 %v13495_v41, %v7573_v42  ;;  %v10162_v25 = vpop.f32.mrb[118].mxu0 }
 0x5c0   : > { %v7588_v36 = vadd.f32 %v10162_v25, %v13284_v63  ;;  %v7582_v24 = vpop.f32.mrb[119].mxu0 }
 0x5c1   : > { %v7583_v53 = vadd.f32 %v13280_v48, %v7582_v24  ;;  %v7770_v35 = vpack.c.bf16 %v7739_v52, %v7738_v21 }
 0x5c2   : > { %v7741_v55 = vadd.f32 %v13495_v41, %v7588_v36 }
 0x5c3   : > { %v7740_v9 = vadd.f32 %v13495_v41, %v7583_v53  ;;  %v10165_v22 = vpop.f32.mrb[120].mxu0  ;;  %10221 = vmatprep.mubr.bf16.mxu0 %v7770_v35 }
 0x5c4   : > { %v7598_v3 = vadd.f32 %v10165_v22, %v13303_v49  ;;  %v7592_v11 = vpop.f32.mrb[121].mxu0 }
 0x5c5   : > { %v7771_v47 = vpack.c.bf16 %v7741_v55, %v7740_v9  ;;  %v7593_v23 = vadd.f32 %v7592_v11, %v13293_v43 }
 0x5c6   : > { %v7743_v20 = vadd.f32 %v13495_v41, %v7598_v3 }
 0x5c7   : > { %v7742_v63 = vadd.f32 %v13495_v41, %v7593_v23  ;;  %v10168_v4 = vpop.f32.mrb[122].mxu0  ;;  %10222 = vmatmul.mubr.bf16.vlgmr.msra.gmra.mrb[148].mxu0 %v7771_v47 }
 0x5c8   : > { %v7608_v48 = vadd.f32 %v10168_v4, %v13298_v32  ;;  %v7602_v10 = vpop.f32.mrb[123].mxu0 }
 0x5c9   : > { %v7603_v38 = vadd.f32 %v13291_v57, %v7602_v10  ;;  %v7772_v33 = vpack.c.bf16 %v7743_v20, %v7742_v63 }
 0x5ca   : > { %v7745_v0 = vadd.f32 %v13495_v41, %v7608_v48 }
 0x5cb   : > { %v7744_v49 = vadd.f32 %v13495_v41, %v7603_v38  ;;  %v10171_v46 = vpop.f32.mrb[124].mxu0  ;;  %10225 = vmatprep.mubr.bf16.mxu0 %v7772_v33 }
 0x5cc   : > { %v7618_v43 = vadd.f32 %v10171_v46, %v13333_v19  ;;  %v7612_v15 = vpop.f32.mrb[125].mxu0 }
 0x5cd   : > { %v7613_v1 = vadd.f32 %v7612_v15, %v13322_v40  ;;  %v7773_v28 = vpack.c.bf16 %v7745_v0, %v7744_v49 }
 0x5ce   : > { %v7747_v37 = vadd.f32 %v13495_v41, %v7618_v43 }
 0x5cf   : > { %v7746_v32 = vadd.f32 %v13495_v41, %v7613_v1  ;;  %v10174_v58 = vpop.f32.mrb[126].mxu0  ;;  %10226 = vmatmul.mubr.bf16.gmra.mrb[152].mxu0 %v7773_v28 }
 0x5d0   : > { %v7628_v57 = vadd.f32 %v10174_v58, %v13328_v56  ;;  %v7622_v2 = vpop.f32.mrb[127].mxu0 }
 0x5d1   : > { %v7623_v16 = vadd.f32 %v13319_v60, %v7622_v2  ;;  %v7774_v27 = vpack.c.bf16 %v7747_v37, %v7746_v32 }
 0x5d2   : > { %v7749_v26 = vadd.f32 %v13495_v41, %v7628_v57 }
 0x5d3   : > { %v7748_v19 = vadd.f32 %v13495_v41, %v7623_v16  ;;  %v10177_v45 = vpop.f32.mrb[128].mxu0  ;;  %10229 = vmatprep.mubr.bf16.mxu0 %v7774_v27 }
 0x5d4   : > { %v7638_v40 = vadd.f32 %v10177_v45, %v13363_v50  ;;  %v7632_v12 = vpop.f32.mrb[129].mxu0 }
 0x5d5   : > { %v7633_v42 = vadd.f32 %v7632_v12, %v13352_v31  ;;  %v7775_v52 = vpack.c.bf16 %v7749_v26, %v7748_v19 }
 0x5d6   : > { %v7751_v21 = vadd.f32 %v13495_v41, %v7638_v40 }
 0x5d7   : > { %v7750_v56 = vadd.f32 %v13495_v41, %v7633_v42  ;;  %v10180_v25 = vpop.f32.mrb[130].mxu0  ;;  %10230 = vmatmul.mubr.bf16.gmra.mrb[156].mxu0 %v7775_v52 }
 0x5d8   : > { %v7648_v60 = vadd.f32 %v10180_v25, %v13358_v51  ;;  %v7642_v36 = vpop.f32.mrb[131].mxu0 }
 0x5d9   : > { %v7643_v24 = vadd.f32 %v13349_v5, %v7642_v36  ;;  %v7776_v53 = vpack.c.bf16 %v7751_v21, %v7750_v56 }
 0x5da   : > { %v7753_v35 = vadd.f32 %v13495_v41, %v7648_v60 }
 0x5db   : > { %v7752_v50 = vadd.f32 %v13495_v41, %v7643_v24  ;;  %v10183_v55 = vpop.f32.mrb[132].mxu0  ;;  %10233 = vmatprep.mubr.bf16.mxu0 %v7776_v53  ;;  %v13564_v53 = vld [vmem:[%s13638_s14] ss:$0 sm:$0xff] }
 0x5dc   : > { %v7658_v31 = vadd.f32 %v10183_v55, %v13448_v14  ;;  %v7652_v9 = vpop.f32.mrb[133].mxu0 }
 0x5dd   : > { %v7653_v22 = vadd.f32 %v7652_v9, %v13439_v30  ;;  %v7777_v3 = vpack.c.bf16 %v7753_v35, %v7752_v50 }
 0x5de   : > { %v7755_v11 = vadd.f32 %v13495_v41, %v7658_v31 }
 0x5df   : > { %v7754_v51 = vadd.f32 %v13495_v41, %v7653_v22  ;;  %v10186_v47 = vpop.f32.mrb[134].mxu0  ;;  %10234 = vmatmul.mubr.bf16.gmra.mrb[160].mxu0 %v7777_v3 }
 0x5e0   : > { %v7668_v5 = vadd.f32 %v10186_v47, %v13442_v62  ;;  %v7662_v23 = vpop.f32.mrb[135].mxu0 }
 0x5e1   : > { %v7663_v20 = vadd.f32 %v13437_v61, %v7662_v23  ;;  %v7778_v63 = vpack.c.bf16 %v7755_v11, %v7754_v51 }
 0x5e2   : > { %v7757_v4 = vadd.f32 %v13495_v41, %v7668_v5 }
 0x5e3   : > { %v7756_v14 = vadd.f32 %v13495_v41, %v7663_v20  ;;  %v10189_v48 = vpop.f32.mrb[136].mxu0  ;;  %10237 = vmatprep.mubr.bf16.mxu0 %v7778_v63 }
 0x5e4   : > { %v7678_v30 = vadd.f32 %v10189_v48, %v13465_v17  ;;  %v7672_v10 = vpop.f32.mrb[137].mxu0 }
 0x5e5   : > { %v7673_v38 = vadd.f32 %v7672_v10, %v13460_v8  ;;  %v7779_v33 = vpack.c.bf16 %v7757_v4, %v7756_v14 }
 0x5e6   : > { %v7759_v0 = vadd.f32 %v13495_v41, %v7678_v30 }
 0x5e7   : > { %v7758_v62 = vadd.f32 %v13495_v41, %v7673_v38  ;;  %v10192_v49 = vpop.f32.mrb[138].mxu0  ;;  %10238 = vmatmul.mubr.bf16.gmra.mrb[164].mxu0 %v7779_v33 }
 0x5e8   : > { %v7688_v61 = vadd.f32 %v10192_v49, %v13463_v39  ;;  %v7682_v46 = vpop.f32.mrb[139].mxu0 }
 0x5e9   : > { %v7683_v43 = vadd.f32 %v13458_v6, %v7682_v46  ;;  %v7780_v15 = vpack.c.bf16 %v7759_v0, %v7758_v62 }
 0x5ea   : > { %v7761_v1 = vadd.f32 %v13495_v41, %v7688_v61 }
 0x5eb   : > { %v7760_v17 = vadd.f32 %v13495_v41, %v7683_v43  ;;  %v10195_v28 = vpop.f32.mrb[140].mxu0  ;;  %10241 = vmatprep.mubr.bf16.mxu0 %v7780_v15 }
 0x5ec   : > { %v7698_v8 = vadd.f32 %v10195_v28, %v13473_v7  ;;  %v7692_v37 = vpop.f32.mrb[141].mxu0 }
 0x5ed   : > { %v7693_v32 = vadd.f32 %v7692_v37, %v13469_v18  ;;  %v7781_v58 = vpack.c.bf16 %v7761_v1, %v7760_v17 }
 0x5ee   : > { %v7763_v57 = vadd.f32 %v13495_v41, %v7698_v8 }
 0x5ef   : > { %v7762_v39 = vadd.f32 %v13495_v41, %v7693_v32  ;;  %v10198_v2 = vpop.f32.mrb[142].mxu0  ;;  %10242 = vmatmul.mubr.bf16.gmra.mrb[168].mxu0 %v7781_v58 }
 0x5f0   : > { %v7708_v6 = vadd.f32 %v10198_v2, %v13471_v44  ;;  %v7702_v16 = vpop.f32.mrb[143].mxu0 }
 0x5f1   : > { %v7703_v27 = vadd.f32 %v13467_v54, %v7702_v16  ;;  %v7782_v26 = vpack.c.bf16 %v7763_v57, %v7762_v39 }
 0x5f2   : > { %v7765_v19 = vadd.f32 %v13495_v41, %v7708_v6 }
 0x5f3   : > { %v7764_v7 = vadd.f32 %v13495_v41, %v7703_v27  ;;  %v10201_v45 = vpop.f32.mrb[144].mxu0  ;;  %10245 = vmatprep.mubr.bf16.mxu0 %v7782_v26 }
 0x5f4   : > { %v7718_v18 = vadd.f32 %v10201_v45, %v13481_v59  ;;  %v7712_v40 = vpop.f32.mrb[145].mxu0 }
 0x5f5   : > { %v7713_v12 = vadd.f32 %v7712_v40, %v13477_v29  ;;  %v7783_v42 = vpack.c.bf16 %v7765_v19, %v7764_v7 }
 0x5f6   : > { %v7767_v52 = vadd.f32 %v13495_v41, %v7718_v18 }
 0x5f7   : > { %v7766_v44 = vadd.f32 %v13495_v41, %v7713_v12  ;;  %v10204_v21 = vpop.f32.mrb[146].mxu0  ;;  %10246 = vmatmul.mubr.bf16.gmra.mrb[172].mxu0 %v7783_v42 }
 0x5f8   : > { %v7728_v54 = vadd.f32 %v10204_v21, %v13479_v34  ;;  %v7722_v56 = vpop.f32.mrb[147].mxu0 }
 0x5f9   : > { %v7723_v25 = vadd.f32 %v13475_v13, %v7722_v56  ;;  %v7784_v60 = vpack.c.bf16 %v7767_v52, %v7766_v44 }
 0x5fa   : > { %v7769_v36 = vadd.f32 %v13495_v41, %v7728_v54 }
 0x5fb   : > { %v7768_v59 = vadd.f32 %v13495_v41, %v7723_v25  ;;  %10249 = vmatprep.mubr.bf16.mxu0 %v7784_v60 }
 0x5fd   : > { %v7785_v29 = vpack.c.bf16 %v7769_v36, %v7768_v59 }
 0x5ff   : > { %10250 = vmatmul.mubr.bf16.gmra.mrb[176].mxu0 %v7785_v29 }
 0x69a   : > { %v10223_v24 = vpop.f32.mrb[148].mxu0 }
 0x69b   : > { %v7891_v35 = vpop.f32.mrb[149].mxu0  ;;  %v7900_v50 = vadd.f32 %v10223_v24, %v13564_v53 }
 0x69c   : > { %v10224_v34 = vpop.f32.mrb[150].mxu0  ;;  %v7892_v31 = vadd.f32 %v13564_v53, %v7891_v35 }
 0x69d   : > { %v7903_v13 = vadd.f32 %v10224_v34, %v13564_v53  ;;  %v7894_v55 = vpop.f32.mrb[151].mxu0 }
 0x69e   : > { %v7895_v41 = vadd.f32 %v13564_v53, %v7894_v55 }
 0x69f   : > { %v9216_v9 = vpack.c.bf16 %v7903_v13, %v7900_v50 }
 0x6a0   : > { %v9211_v22 = vpack.c.bf16 %v7895_v41, %v7892_v31 }
 0x6a1   : > { %9288 = vst [vmem:[%s13574_s17 + $0x8] sm:$0xff] %v9216_v9  }
 0x6a2   : > { %9212 = vst [vmem:[%s13574_s17] sm:$0xff] %v9211_v22   ;;  %v10227_v3 = vpop.f32.mrb[152].mxu0 }
 0x6a3   : > { %v7907_v11 = vpop.f32.mrb[153].mxu0  ;;  %v7916_v47 = vadd.f32 %v10227_v3, %v13564_v53 }
 0x6a4   : > { %v10228_v51 = vpop.f32.mrb[154].mxu0  ;;  %v7908_v20 = vadd.f32 %v13564_v53, %v7907_v11 }
 0x6a5   : > { %v7919_v5 = vadd.f32 %v10228_v51, %v13564_v53  ;;  %v7910_v23 = vpop.f32.mrb[155].mxu0 }
 0x6a6   : > { %v7911_v63 = vadd.f32 %v13564_v53, %v7910_v23 }
 0x6a7   : > { %v9226_v4 = vpack.c.bf16 %v7919_v5, %v7916_v47 }
 0x6a8   : > { %v9221_v14 = vpack.c.bf16 %v7911_v63, %v7908_v20 }
 0x6a9   : > { %9290 = vst [vmem:[%s13574_s17 + $0x18] sm:$0xff] %v9226_v4  }
 0x6aa   : > { %9289 = vst [vmem:[%s13574_s17 + $0x10] sm:$0xff] %v9221_v14   ;;  %v10231_v48 = vpop.f32.mrb[156].mxu0 }
 0x6ab   : > { %v7923_v30 = vpop.f32.mrb[157].mxu0  ;;  %v7932_v38 = vadd.f32 %v10231_v48, %v13564_v53 }
 0x6ac   : > { %v10232_v10 = vpop.f32.mrb[158].mxu0  ;;  %v7924_v62 = vadd.f32 %v13564_v53, %v7923_v30 }
 0x6ad   : > { %v7935_v33 = vadd.f32 %v10232_v10, %v13564_v53  ;;  %v7926_v0 = vpop.f32.mrb[159].mxu0 }
 0x6ae   : > { %v7927_v49 = vadd.f32 %v13564_v53, %v7926_v0 }
 0x6af   : > { %v9236_v61 = vpack.c.bf16 %v7935_v33, %v7932_v38 }
 0x6b0   : > { %v9231_v46 = vpack.c.bf16 %v7927_v49, %v7924_v62 }
 0x6b1   : > { %9292 = vst [vmem:[%s13574_s17 + $0x28] sm:$0xff] %v9236_v61  }
 0x6b2   : > { %9291 = vst [vmem:[%s13574_s17 + $0x20] sm:$0xff] %v9231_v46   ;;  %v10235_v43 = vpop.f32.mrb[160].mxu0 }
 0x6b3   : > { %v7939_v15 = vpop.f32.mrb[161].mxu0  ;;  %v7948_v17 = vadd.f32 %v10235_v43, %v13564_v53 }
 0x6b4   : > { %v10236_v1 = vpop.f32.mrb[162].mxu0  ;;  %v7940_v37 = vadd.f32 %v13564_v53, %v7939_v15 }
 0x6b5   : > { %v7951_v28 = vadd.f32 %v10236_v1, %v13564_v53  ;;  %v7942_v8 = vpop.f32.mrb[163].mxu0 }
 0x6b6   : > { %v7943_v32 = vadd.f32 %v13564_v53, %v7942_v8 }
 0x6b7   : > { %v9246_v58 = vpack.c.bf16 %v7951_v28, %v7948_v17 }
 0x6b8   : > { %v9241_v57 = vpack.c.bf16 %v7943_v32, %v7940_v37 }
 0x6b9   : > { %9294 = vst [vmem:[%s13574_s17 + $0x38] sm:$0xff] %v9246_v58  }
 0x6ba   : > { %9293 = vst [vmem:[%s13574_s17 + $0x30] sm:$0xff] %v9241_v57   ;;  %v10239_v39 = vpop.f32.mrb[164].mxu0 }
 0x6bb   : > { %v7955_v2 = vpop.f32.mrb[165].mxu0  ;;  %v7964_v16 = vadd.f32 %v10239_v39, %v13564_v53 }
 0x6bc   : > { %v10240_v6 = vpop.f32.mrb[166].mxu0  ;;  %v7956_v19 = vadd.f32 %v13564_v53, %v7955_v2 }
 0x6bd   : > { %v7967_v27 = vadd.f32 %v10240_v6, %v13564_v53  ;;  %v7958_v26 = vpop.f32.mrb[167].mxu0 }
 0x6be   : > { %v7959_v7 = vadd.f32 %v13564_v53, %v7958_v26 }
 0x6bf   : > { %v9256_v45 = vpack.c.bf16 %v7967_v27, %v7964_v16 }
 0x6c0   : > { %v9251_v18 = vpack.c.bf16 %v7959_v7, %v7956_v19 }
 0x6c1   : > { %9296 = vst [vmem:[%s13574_s17 + $0x48] sm:$0xff] %v9256_v45  }
 0x6c2   : > { %9295 = vst [vmem:[%s13574_s17 + $0x40] sm:$0xff] %v9251_v18   ;;  %v10243_v40 = vpop.f32.mrb[168].mxu0 }
 0x6c3   : > { %v7971_v12 = vpop.f32.mrb[169].mxu0  ;;  %v7980_v52 = vadd.f32 %v10243_v40, %v13564_v53 }
 0x6c4   : > { %v10244_v42 = vpop.f32.mrb[170].mxu0  ;;  %v7972_v54 = vadd.f32 %v13564_v53, %v7971_v12 }
 0x6c5   : > { %v7983_v44 = vadd.f32 %v10244_v42, %v13564_v53  ;;  %v7974_v21 = vpop.f32.mrb[171].mxu0 }
 0x6c6   : > { %v7975_v56 = vadd.f32 %v13564_v53, %v7974_v21 }
 0x6c7   : > { %v9266_v25 = vpack.c.bf16 %v7983_v44, %v7980_v52 }
 0x6c8   : > { %v9261_v60 = vpack.c.bf16 %v7975_v56, %v7972_v54 }
 0x6c9   : > { %9298 = vst [vmem:[%s13574_s17 + $0x58] sm:$0xff] %v9266_v25  }
 0x6ca   : > { %9297 = vst [vmem:[%s13574_s17 + $0x50] sm:$0xff] %v9261_v60   ;;  %v10247_v36 = vpop.f32.mrb[172].mxu0 }
 0x6cb   : > { %v7987_v59 = vpop.f32.mrb[173].mxu0  ;;  %v7996_v24 = vadd.f32 %v10247_v36, %v13564_v53 }
 0x6cc   : > { %v10248_v29 = vpop.f32.mrb[174].mxu0  ;;  %v7988_v50 = vadd.f32 %v13564_v53, %v7987_v59 }
 0x6cd   : > { %v7999_v35 = vadd.f32 %v10248_v29, %v13564_v53  ;;  %v7990_v34 = vpop.f32.mrb[175].mxu0 }
 0x6ce   : > { %v7991_v13 = vadd.f32 %v13564_v53, %v7990_v34 }
 0x6cf   : > { %v9276_v55 = vpack.c.bf16 %v7999_v35, %v7996_v24 }
 0x6d0   : > { %v9271_v31 = vpack.c.bf16 %v7991_v13, %v7988_v50 }
 0x6d1   : > { %9300 = vst [vmem:[%s13574_s17 + $0x68] sm:$0xff] %v9276_v55  }
 0x6d2   : > { %9299 = vst [vmem:[%s13574_s17 + $0x60] sm:$0xff] %v9271_v31   ;;  %v10251_v41 = vpop.f32.mrb[176].mxu0 }
 0x6d3   : > { %v8003_v9 = vpop.f32.mrb[177].mxu0  ;;  %v8012_v3 = vadd.f32 %v10251_v41, %v13564_v53 }
 0x6d4   : > { %v10252_v22 = vpop.f32.mrb[178].mxu0  ;;  %v8004_v47 = vadd.f32 %v13564_v53, %v8003_v9 }
 0x6d5   : > { %v8015_v11 = vadd.f32 %v10252_v22, %v13564_v53  ;;  %v8006_v51 = vpop.f32.mrb[179].mxu0 }
 0x6d6   : > { %v8007_v5 = vadd.f32 %v13564_v53, %v8006_v51 }
 0x6d7   : > { %v9286_v23 = vpack.c.bf16 %v8015_v11, %v8012_v3 }
 0x6d8   : > { %v9281_v20 = vpack.c.bf16 %v8007_v5, %v8004_v47 }
 0x6d9   : > { %9302 = vst [vmem:[%s13574_s17 + $0x78] sm:$0xff] %v9286_v23  }
 0x6da   : > { %9301 = vst [vmem:[%s13574_s17 + $0x70] sm:$0xff] %v9281_v20  }
 0x6db PF: > { %s25_s18 = sadd.s32 1, %s11088_s18  }
 0x6dc   : > { %p22_p4 = scmp.ge.s32.totalorder %s25_s18, 4  }
 0x6de   :  { %24 = sbr.rel (!%p22_p4) target bundleno = 1 (0x1), region = 115 }

</bundles_post_ra>
